<compile_context>
chip_gen: v6e
topology: v6e:2x2x1
jax: 0.10.0
libtpu: 0.0.40
codegen_flags: <defaults>
</compile_context>

<pallas_src>
import functools

import jax
import jax.numpy as jnp
from jax.experimental import pallas as pl
from jax.experimental.pallas import tpu as pltpu


# ---------------- Pallas hot path: Y = relu?(A @ Wbig + bias) ----------------

def _matmul_bias_kernel(a_ref, b_ref, bias_ref, o_ref, *, apply_relu):
    acc = jnp.dot(a_ref[...], b_ref[...], preferred_element_type=jnp.float32)
    acc = acc + bias_ref[...]
    if apply_relu:
        acc = jnp.maximum(acc, 0.0)
    o_ref[...] = acc.astype(o_ref.dtype)


def _pick_tm(M, K, max_tm=2048, vmem_budget=8 * 1024 * 1024):
    """Largest M-tile (multiple of 8, divisor of M) such that
       (a) the grid keeps >= 2 steps when M allows it (v7x megacore sharding),
       (b) the double-buffered bf16 A tile stays well inside scoped VMEM."""
    if M <= 8:
        return M
    cap = min(max_tm, M, max(8, vmem_budget // max(1, 4 * K)))  # 2 bufs * 2B * K
    if M >= 16 and M // cap < 2:
        cap = max(8, M // 2)
    best = None
    t = 8
    while t <= cap:
        if M % t == 0:
            best = t
        t += 8
    return best if best is not None else M  # full-dim block is always legal


def matmul_bias(a_bf16, b_bf16, bias_f32, *, apply_relu):
    """out = relu?(a @ b + bias); a:[M,K] bf16, b:[K,Co] bf16, bias:[1,Co] f32."""
    M, K = a_bf16.shape
    K2, Co = b_bf16.shape
    assert K == K2
    tm = _pick_tm(M, K)
    assert M % tm == 0
    return pl.pallas_call(
        functools.partial(_matmul_bias_kernel, apply_relu=apply_relu),
        out_shape=jax.ShapeDtypeStruct((M, Co), jnp.float32),
        grid_spec=pltpu.PrefetchScalarGridSpec(
            num_scalar_prefetch=0,
            grid=(M // tm,),
            in_specs=[
                pl.BlockSpec((tm, K), lambda i: (i, 0)),   # A tile (bf16, lane-dense K)
                pl.BlockSpec((K, Co), lambda i: (0, 0)),   # full weight, grid-resident
                pl.BlockSpec((1, Co), lambda i: (0, 0)),   # bias row, grid-resident
            ],
            out_specs=pl.BlockSpec((tm, Co), lambda i: (i, 0)),
        ),
        compiler_params=pltpu.CompilerParams(
            dimension_semantics=("parallel",)),
    )(a_bf16, b_bf16, bias_f32)


# ------------- sub-pixel (8-parity) lowering of ConvTranspose3d --------------
# per spatial dim: (output parity p, input offset delta) -> transposed-conv tap
#   p=0 (even output): only delta=0 contributes, via k=1
#   p=1 (odd output):  delta=0 via k=2, delta=1 via k=0
_TAP = {(0, 0): 1, (1, 0): 2, (1, 1): 0}


def _subpixel_weight(w, b):
    """w: [Cin, Cout, 3, 3, 3] (PyTorch ConvTranspose3d layout), b: [Cout].
    Returns Wbig [8*Cin, 8*Cout] (rows blocked by input offset (dd,dh,dw),
    cols blocked by output parity (pd,ph,pw)) in bf16, and bias [1, 8*Cout] f32."""
    Cin, Cout = w.shape[0], w.shape[1]
    wbig = jnp.zeros((8, Cin, 8, Cout), jnp.float32)
    for dd in range(2):
        for dh in range(2):
            for dw in range(2):
                d_lin = dd * 4 + dh * 2 + dw
                for pd in range(2):
                    for ph in range(2):
                        for pw in range(2):
                            kd = _TAP.get((pd, dd))
                            kh = _TAP.get((ph, dh))
                            kw = _TAP.get((pw, dw))
                            if kd is None or kh is None or kw is None:
                                continue
                            p_lin = pd * 4 + ph * 2 + pw
                            wbig = wbig.at[d_lin, :, p_lin, :].set(
                                w[:, :, kd, kh, kw].astype(jnp.float32))
    Wbig = wbig.reshape(8 * Cin, 8 * Cout).astype(jnp.bfloat16)
    bias = jnp.tile(b.astype(jnp.float32), 8).reshape(1, 8 * Cout)
    return Wbig, bias


def conv_transpose3d(x_ncdhw, w, b, *, apply_relu):
    """nn.ConvTranspose3d(Cin, Cout, 3, stride=2, padding=1, output_padding=1)
    (+ optional ReLU), semantics identical to PyTorch.
    x: [N, Cin, D, H, W] -> [N, Cout, 2D, 2H, 2W]."""
    N, Cin, D, H, W = x_ncdhw.shape
    Cout = w.shape[1]

    # glue: NCDHW -> NDHWC (bf16 for the MXU), right-pad by 1 for the m+1 taps
    x = jnp.transpose(x_ncdhw, (0, 2, 3, 4, 1)).astype(jnp.bfloat16)
    xp = jnp.pad(x, ((0, 0), (0, 1), (0, 1), (0, 1), (0, 0)))

    # glue: 2x2x2-window im2col (8x data, not 27x); column-block order (dd,dh,dw)
    cols = [xp[:, dd:dd + D, dh:dh + H, dw:dw + W, :]
            for dd in range(2) for dh in range(2) for dw in range(2)]
    A = jnp.concatenate(cols, axis=-1).reshape(N * D * H * W, 8 * Cin)

    Wbig, bias = _subpixel_weight(w, b)
    Y = matmul_bias(A, Wbig, bias, apply_relu=apply_relu)   # [M, 8*Cout] f32

    # glue: pixel-shuffle (N,D,H,W,pd,ph,pw,Cout) -> NCDHW with o = 2*m + p
    Y = Y.reshape(N, D, H, W, 2, 2, 2, Cout)
    Y = jnp.transpose(Y, (0, 7, 1, 4, 2, 5, 3, 6))
    return Y.reshape(N, Cout, 2 * D, 2 * H, 2 * W)


def decoder_forward(x, params):
    x = conv_transpose3d(x, params["w1"], params["b1"], apply_relu=True)
    x = conv_transpose3d(x, params["w2"], params["b2"], apply_relu=True)
    x = conv_transpose3d(x, params["w3"], params["b3"], apply_relu=False)
    return x


# ----- pure-JAX reference (f32, HIGHEST precision) for numerical validation -----
def _ref_conv_transpose3d(x, w, b, apply_relu):
    w_conv = jnp.transpose(w[:, :, ::-1, ::-1, ::-1], (1, 0, 2, 3, 4))  # [Cout,Cin,3,3,3]
    y = jax.lax.conv_general_dilated(
        x, w_conv, window_strides=(1, 1, 1),
        padding=((1, 2), (1, 2), (1, 2)),
        lhs_dilation=(2, 2, 2),
        dimension_numbers=("NCDHW", "OIDHW", "NCDHW"),
        precision=jax.lax.Precision.HIGHEST)
    y = y + b.reshape(1, -1, 1, 1, 1)
    if apply_relu:
        y = jnp.maximum(y, 0.0)
    return y


def _ref_decoder(x, p):
    x = _ref_conv_transpose3d(x, p["w1"], p["b1"], True)
    x = _ref_conv_transpose3d(x, p["w2"], p["b2"], True)
    x = _ref_conv_transpose3d(x, p["w3"], p["b3"], False)
    return x


if __name__ == "__main__":
    key = jax.random.PRNGKey(0)
    k_x, k1, k2, k3, kb1, kb2, kb3 = jax.random.split(key, 7)

    # latent voxel code: N=2, C=64, D=H=W=4  ->  output [2, 1, 32, 32, 32]
    x = jax.random.normal(k_x, (2, 64, 4, 4, 4), jnp.float32)

    params = {
        "w1": 0.05 * jax.random.normal(k1, (64, 32, 3, 3, 3), jnp.float32),
        "b1": 0.05 * jax.random.normal(kb1, (32,), jnp.float32),
        "w2": 0.05 * jax.random.normal(k2, (32, 16, 3, 3, 3), jnp.float32),
        "b2": 0.05 * jax.random.normal(kb2, (16,), jnp.float32),
        "w3": 0.05 * jax.random.normal(k3, (16, 1, 3, 3, 3), jnp.float32),
        "b3": 0.05 * jax.random.normal(kb3, (1,), jnp.float32),
    }

    fwd = jax.jit(decoder_forward)
    out = jax.block_until_ready(fwd(x, params))
    assert out.shape == (2, 1, 32, 32, 32), out.shape

    ref = jax.block_until_ready(_ref_decoder(x, params))
    # bf16 MXU operands (f32 accumulate) -> compare with a bf16-appropriate bound.
    num = jnp.sqrt(jnp.sum((out - ref) ** 2))
    den = jnp.sqrt(jnp.sum(ref ** 2))
    rel = float(num / den)
    assert rel < 2e-2, rel

    print("KERNEL_OK")
</pallas_src>

<mosaic_0001>
module attributes {stable_mosaic.version = 11 : i64} {
  func.func @_matmul_bias_kernel(%arg0: i32, %arg1: memref<64x512xbf16, #tpu.memory_space<vmem>>, %arg2: memref<512x256xbf16, #tpu.memory_space<vmem>>, %arg3: memref<1x256xf32, #tpu.memory_space<vmem>>, %arg4: memref<64x256xf32, #tpu.memory_space<vmem>>) attributes {dimension_semantics = [#tpu.dimension_semantics<parallel>], iteration_bounds = array<i64: 2>, scalar_prefetch = 0 : i64, scratch_operands = 0 : i64, tpu.core_type = #tpu.core_type<tc>, window_params = [{transform_indices = @transform_0, window_bounds = array<i64: 64, 512>}, {pipeline_mode = #tpu.pipeline_mode<synchronous>, transform_indices = @transform_1, window_bounds = array<i64: 512, 256>}, {pipeline_mode = #tpu.pipeline_mode<synchronous>, transform_indices = @transform_2, window_bounds = array<i64: 1, 256>}, {transform_indices = @transform_3, window_bounds = array<i64: 64, 256>}]} {
    %c0 = arith.constant 0 : index
    %c0_0 = arith.constant 0 : index
    %0 = vector.load %arg1[%c0, %c0_0] : memref<64x512xbf16, #tpu.memory_space<vmem>>, vector<64x512xbf16>
    %c0_1 = arith.constant 0 : index
    %c0_2 = arith.constant 0 : index
    %1 = vector.load %arg2[%c0_1, %c0_2] : memref<512x256xbf16, #tpu.memory_space<vmem>>, vector<512x256xbf16>
    %cst = arith.constant dense<0.000000e+00> : vector<64x256xf32>
    %2 = tpu.matmul %0, %1, %cst {dimension_numbers = #tpu.dot_dimension_numbers<[1], [0], [0], [1], [0, 0, 1, 1], [], []>} : vector<64x512xbf16>, vector<512x256xbf16>, vector<64x256xf32> -> vector<64x256xf32>
    %c0_3 = arith.constant 0 : index
    %c0_4 = arith.constant 0 : index
    %3 = vector.load %arg3[%c0_3, %c0_4] : memref<1x256xf32, #tpu.memory_space<vmem>>, vector<1x256xf32>
    %4 = vector.broadcast %3 : vector<1x256xf32> to vector<64x256xf32>
    %5 = arith.addf %2, %4 : vector<64x256xf32>
    %cst_5 = arith.constant 0.000000e+00 : f32
    %6 = vector.broadcast %cst_5 : f32 to vector<64x256xf32>
    %7 = arith.maximumf %5, %6 : vector<64x256xf32>
    %c0_6 = arith.constant 0 : index
    %c0_7 = arith.constant 0 : index
    %8 = vector.load %arg4[%c0_6, %c0_7] : memref<64x256xf32, #tpu.memory_space<vmem>>, vector<64x256xf32>
    tpu.vector_store %arg4[%c0_6, %c0_7], %7 {strides = array<i32>} : memref<64x256xf32, #tpu.memory_space<vmem>>, vector<64x256xf32>,
    return
  }
  func.func @transform_0(%arg0: i32) -> (i32, i32) {
    %c0_i32 = arith.constant 0 : i32
    %c0_i32_0 = arith.constant 0 : i32
    return %arg0, %c0_i32 : i32, i32
  }
  func.func @transform_1(%arg0: i32) -> (i32, i32) {
    %c0_i32 = arith.constant 0 : i32
    %c0_i32_0 = arith.constant 0 : i32
    %c0_i32_1 = arith.constant 0 : i32
    return %c0_i32, %c0_i32_0 : i32, i32
  }
  func.func @transform_2(%arg0: i32) -> (i32, i32) {
    %c0_i32 = arith.constant 0 : i32
    %c0_i32_0 = arith.constant 0 : i32
    %c0_i32_1 = arith.constant 0 : i32
    return %c0_i32, %c0_i32_0 : i32, i32
  }
  func.func @transform_3(%arg0: i32) -> (i32, i32) {
    %c0_i32 = arith.constant 0 : i32
    %c0_i32_0 = arith.constant 0 : i32
    return %arg0, %c0_i32 : i32, i32
  }
}

module attributes {stable_mosaic.version = 11 : i64} {
  func.func @_matmul_bias_kernel(%arg0: i32, %arg1: memref<512x256xbf16, #tpu.memory_space<vmem>>, %arg2: memref<256x128xbf16, #tpu.memory_space<vmem>>, %arg3: memref<1x128xf32, #tpu.memory_space<vmem>>, %arg4: memref<512x128xf32, #tpu.memory_space<vmem>>) attributes {dimension_semantics = [#tpu.dimension_semantics<parallel>], iteration_bounds = array<i64: 2>, scalar_prefetch = 0 : i64, scratch_operands = 0 : i64, tpu.core_type = #tpu.core_type<tc>, window_params = [{transform_indices = @transform_0, window_bounds = array<i64: 512, 256>}, {pipeline_mode = #tpu.pipeline_mode<synchronous>, transform_indices = @transform_1, window_bounds = array<i64: 256, 128>}, {pipeline_mode = #tpu.pipeline_mode<synchronous>, transform_indices = @transform_2, window_bounds = array<i64: 1, 128>}, {transform_indices = @transform_3, window_bounds = array<i64: 512, 128>}]} {
    %c0 = arith.constant 0 : index
    %c0_0 = arith.constant 0 : index
    %0 = vector.load %arg1[%c0, %c0_0] : memref<512x256xbf16, #tpu.memory_space<vmem>>, vector<512x256xbf16>
    %c0_1 = arith.constant 0 : index
    %c0_2 = arith.constant 0 : index
    %1 = vector.load %arg2[%c0_1, %c0_2] : memref<256x128xbf16, #tpu.memory_space<vmem>>, vector<256x128xbf16>
    %cst = arith.constant dense<0.000000e+00> : vector<512x128xf32>
    %2 = tpu.matmul %0, %1, %cst {dimension_numbers = #tpu.dot_dimension_numbers<[1], [0], [0], [1], [0, 0, 1, 1], [], []>} : vector<512x256xbf16>, vector<256x128xbf16>, vector<512x128xf32> -> vector<512x128xf32>
    %c0_3 = arith.constant 0 : index
    %c0_4 = arith.constant 0 : index
    %3 = vector.load %arg3[%c0_3, %c0_4] : memref<1x128xf32, #tpu.memory_space<vmem>>, vector<1x128xf32>
    %4 = vector.broadcast %3 : vector<1x128xf32> to vector<512x128xf32>
    %5 = arith.addf %2, %4 : vector<512x128xf32>
    %cst_5 = arith.constant 0.000000e+00 : f32
    %6 = vector.broadcast %cst_5 : f32 to vector<512x128xf32>
    %7 = arith.maximumf %5, %6 : vector<512x128xf32>
    %c0_6 = arith.constant 0 : index
    %c0_7 = arith.constant 0 : index
    %8 = vector.load %arg4[%c0_6, %c0_7] : memref<512x128xf32, #tpu.memory_space<vmem>>, vector<512x128xf32>
    tpu.vector_store %arg4[%c0_6, %c0_7], %7 {strides = array<i32>} : memref<512x128xf32, #tpu.memory_space<vmem>>, vector<512x128xf32>,
    return
  }
  func.func @transform_0(%arg0: i32) -> (i32, i32) {
    %c0_i32 = arith.constant 0 : i32
    %c0_i32_0 = arith.constant 0 : i32
    return %arg0, %c0_i32 : i32, i32
  }
  func.func @transform_1(%arg0: i32) -> (i32, i32) {
    %c0_i32 = arith.constant 0 : i32
    %c0_i32_0 = arith.constant 0 : i32
    %c0_i32_1 = arith.constant 0 : i32
    return %c0_i32, %c0_i32_0 : i32, i32
  }
  func.func @transform_2(%arg0: i32) -> (i32, i32) {
    %c0_i32 = arith.constant 0 : i32
    %c0_i32_0 = arith.constant 0 : i32
    %c0_i32_1 = arith.constant 0 : i32
    return %c0_i32, %c0_i32_0 : i32, i32
  }
  func.func @transform_3(%arg0: i32) -> (i32, i32) {
    %c0_i32 = arith.constant 0 : i32
    %c0_i32_0 = arith.constant 0 : i32
    return %arg0, %c0_i32 : i32, i32
  }
}

module attributes {stable_mosaic.version = 11 : i64} {
  func.func @_matmul_bias_kernel(%arg0: i32, %arg1: memref<2048x128xbf16, #tpu.memory_space<vmem>>, %arg2: memref<128x8xbf16, #tpu.memory_space<vmem>>, %arg3: memref<1x8xf32, #tpu.memory_space<vmem>>, %arg4: memref<2048x8xf32, #tpu.memory_space<vmem>>) attributes {dimension_semantics = [#tpu.dimension_semantics<parallel>], iteration_bounds = array<i64: 4>, scalar_prefetch = 0 : i64, scratch_operands = 0 : i64, tpu.core_type = #tpu.core_type<tc>, window_params = [{transform_indices = @transform_0, window_bounds = array<i64: 2048, 128>}, {pipeline_mode = #tpu.pipeline_mode<synchronous>, transform_indices = @transform_1, window_bounds = array<i64: 128, 8>}, {pipeline_mode = #tpu.pipeline_mode<synchronous>, transform_indices = @transform_2, window_bounds = array<i64: 1, 8>}, {transform_indices = @transform_3, window_bounds = array<i64: 2048, 8>}]} {
    %c0 = arith.constant 0 : index
    %c0_0 = arith.constant 0 : index
    %0 = vector.load %arg1[%c0, %c0_0] : memref<2048x128xbf16, #tpu.memory_space<vmem>>, vector<2048x128xbf16>
    %c0_1 = arith.constant 0 : index
    %c0_2 = arith.constant 0 : index
    %1 = vector.load %arg2[%c0_1, %c0_2] : memref<128x8xbf16, #tpu.memory_space<vmem>>, vector<128x8xbf16>
    %cst = arith.constant dense<0.000000e+00> : vector<2048x8xf32>
    %2 = tpu.matmul %0, %1, %cst {dimension_numbers = #tpu.dot_dimension_numbers<[1], [0], [0], [1], [0, 0, 1, 1], [], []>} : vector<2048x128xbf16>, vector<128x8xbf16>, vector<2048x8xf32> -> vector<2048x8xf32>
    %c0_3 = arith.constant 0 : index
    %c0_4 = arith.constant 0 : index
    %3 = vector.load %arg3[%c0_3, %c0_4] : memref<1x8xf32, #tpu.memory_space<vmem>>, vector<1x8xf32>
    %4 = vector.broadcast %3 : vector<1x8xf32> to vector<2048x8xf32>
    %5 = arith.addf %2, %4 : vector<2048x8xf32>
    %c0_5 = arith.constant 0 : index
    %c0_6 = arith.constant 0 : index
    %6 = vector.load %arg4[%c0_5, %c0_6] : memref<2048x8xf32, #tpu.memory_space<vmem>>, vector<2048x8xf32>
    tpu.vector_store %arg4[%c0_5, %c0_6], %5 {strides = array<i32>} : memref<2048x8xf32, #tpu.memory_space<vmem>>, vector<2048x8xf32>,
    return
  }
  func.func @transform_0(%arg0: i32) -> (i32, i32) {
    %c0_i32 = arith.constant 0 : i32
    %c0_i32_0 = arith.constant 0 : i32
    return %arg0, %c0_i32 : i32, i32
  }
  func.func @transform_1(%arg0: i32) -> (i32, i32) {
    %c0_i32 = arith.constant 0 : i32
    %c0_i32_0 = arith.constant 0 : i32
    %c0_i32_1 = arith.constant 0 : i32
    return %c0_i32, %c0_i32_0 : i32, i32
  }
  func.func @transform_2(%arg0: i32) -> (i32, i32) {
    %c0_i32 = arith.constant 0 : i32
    %c0_i32_0 = arith.constant 0 : i32
    %c0_i32_1 = arith.constant 0 : i32
    return %c0_i32, %c0_i32_0 : i32, i32
  }
  func.func @transform_3(%arg0: i32) -> (i32, i32) {
    %c0_i32 = arith.constant 0 : i32
    %c0_i32_0 = arith.constant 0 : i32
    return %arg0, %c0_i32 : i32, i32
  }
}

</mosaic_0001>

<bundles_post_ra>
// kernel: tile.18
= control target key start
LH: loop header
LB: loop body
LE: loop exit
PB: predicated region body
PF: predicated region fallthrough
CT: control target
= control target key end

     0   :  { %s22_s0 = inlined_call_operand.vmem [shape: f32[32], index: 0, kind: input, shape index: {}]   ;;  %s23_s1 = inlined_call_operand.vmem [shape: f32[8,32], index: 1, kind: output, shape index: {}]  }
   0x1   :  { %v4_v0 = vld [vmem:[%s22_s0] ss:$0 sm:$0xff] }
   0x2   :  { %5 = vst [vmem:[%s23_s1] sm:$0xff] %v4_v0 }

// kernel: tile.19
= control target key start
LH: loop header
LB: loop body
LE: loop exit
PB: predicated region body
PF: predicated region fallthrough
CT: control target
= control target key end

     0   :  { %s7_s6 = smov 3  ;;  %s14_s9 = smov 3  ;;  %vm4_vm0 = vcmask 261120   ;;  %vm11_vm1 = vcmask 1048320   ;;  %vm18_vm2 = vcmask 785920   ;;  %vm25_vm3 = vcmask 523520   ;;  %s79_s0 = inlined_call_operand.vmem [shape: f32[8,32], index: 0, kind: input, shape index: {}]   ;;  %s80_s1 = inlined_call_operand.vmem [shape: f32[1,256], index: 1, kind: output, shape index: {}]  }
   0x1   :  { %v41_v0 = vld [vmem:[%s79_s0 + $0x3] ss:$4 sm:%s7_s6]   ;;  %s48_s10 = smov 96   ;;  %s21_s11 = smov 3  ;;  %v42_v1 = vld [vmem:[%s79_s0 + $0x2] ss:$4 sm:%s14_s9]  }
   0x2   :  { %9 = vrot.lane.b32.xlu0 %v41_v0, %s48_s10  ;;  %v43_v2 = vld [vmem:[%s79_s0 + $0x1] ss:$4 sm:%s21_s11]   ;;  %s2_s16 = smov 3  ;;  %s49_s17 = smov 32  }
   0x3   :  { %23 = vrot.lane.b32.xlu1 %v43_v2, %s49_s17  ;;  %v3_v3 = vld [vmem:[%s79_s0] ss:$4 sm:%s2_s16]   ;;  %s50_s0 = smov 64  }
   0x4   :  { %5 = vst.msk [vmem:[#allocation0] ss:$8 sm:$0x3] %vm4_vm0, %v3_v3  }
   0x6   :  { %16 = vrot.lane.b32.xlu0 %v42_v1, %s50_s0 }
  0x74   :  { %v10_v4 = vpop.permute.xlu0 %9  }
  0x75   :  { %12 = vst.msk [vmem:[#allocation0] ss:$8 sm:$0x3] %vm11_vm1, %v10_v4   ;;  %v24_v5 = vpop.permute.xlu1 %23  }
  0x78   :  { %v17_v6 = vpop.permute.xlu0 %16  }
  0x79   :  { %19 = vst.msk [vmem:[#allocation0] ss:$8 sm:$0x3] %vm18_vm2, %v17_v6  }
  0x7a   :  { %26 = vst.msk [vmem:[#allocation0] ss:$8 sm:$0x3] %vm25_vm3, %v24_v5  }
  0x81   :  { %v31_v7 = vld [vmem:[#allocation0] sm:$0x1]  ;;  %v36_v8 = vld [vmem:[#allocation0 + $0x8] sm:$0x1] }
  0x82   :  { %34 = vst [vmem:[%s80_s1] sm:$0x1] %v31_v7  ;;  %44 = vst [vmem:[%s80_s1 + $0x1] sm:$0x1] %v36_v8 }

// kernel: decoder_forward.3
= control target key start
LH: loop header
LB: loop body
LE: loop exit
PB: predicated region body
PF: predicated region fallthrough
CT: control target
= control target key end

     0   :  { %s1158_s12 = smov 0   ;;  %s1435_s0 = inlined_call_operand.vmem [shape: bf16[128,512], index: 0, kind: input, shape index: {}]   ;;  %s1436_s1 = inlined_call_operand.vmem [shape: bf16[512,256], index: 1, kind: input, shape index: {}]   ;;  %s1437_s2 = inlined_call_operand.vmem [shape: f32[1,256], index: 2, kind: input, shape index: {}]   ;;  %s1438_s3 = inlined_call_operand.vmem [shape: f32[128,256], index: 3, kind: output, shape index: {}]  }
   0x1 LB: > { %s907_s13 = sadd.s32 4294967295, %s1136_s12   ;;  %p911_p0 = scmp.ge.s32.totalorder %s1136_s12, 1  ;;  %s1136_s12 = sphi %s1158_s12, %s13_s12  }
   0x2   : > { %p139_p1 = scmp.lt.s32.totalorder %s1136_s12, 3 }
   0x4   : > { %p140_p2 = pnand %p911_p0, %p139_p1 }
   0x5   : > { %s912_s24 = sshll.u32 (!%p140_p2), %s907_s13, 3 }
   0x6   : > { %143 = sbr.rel (%p140_p2) target bundleno = 306 (0x132), region = 32  ;;  %p166_p3 = scmp.lt.s32.totalorder (!%p140_p2), %s912_s24, 15 }
   0xb   : > { %v1010_v0 = vld [vmem:[%s1436_s1 + $0x74] ss:$8 sps:$4 sm:$0xff]   ;;  %v1014_v2 = vld [vmem:[%s1436_s1 + $0x70] ss:$8 sps:$4 sm:$0xff]   ;;  %v1016_v4 = vld [vmem:[%s1436_s1 + $0x64] ss:$8 sps:$4 sm:$0xff]  }
   0xc   : > { %v1012_v1 = vld [vmem:[%s1436_s1 + $0x174] ss:$8 sps:$4 sm:$0xff]   ;;  %671 = vmatprep.subr.bf16.mxu0 %v1010_v0  ;;  %v1015_v3 = vld [vmem:[%s1436_s1 + $0x170] ss:$8 sps:$4 sm:$0xff]   ;;  %v1018_v5 = vld [vmem:[%s1436_s1 + $0x164] ss:$8 sps:$4 sm:$0xff]  }
   0xd   : > { %744 = vmatprep.subr.bf16.mxu1 %v1012_v1  ;;  %672 = vmatpush1.bf16.msra.mxu0 %v1014_v2  ;;  %v1020_v6 = vld [vmem:[%s1436_s1 + $0x60] ss:$8 sps:$4 sm:$0xff]   ;;  %v1022_v8 = vld [vmem:[%s1436_s1 + $0x54] ss:$8 sps:$4 sm:$0xff]   ;;  %v1026_v10 = vld [vmem:[%s1436_s1 + $0x50] ss:$8 sps:$4 sm:$0xff]  }
   0xe   : > { %745 = vmatpush1.bf16.msra.mxu1 %v1015_v3  ;;  %673 = vmatprep.subr.bf16.mxu0 %v1016_v4  ;;  %v1021_v7 = vld [vmem:[%s1436_s1 + $0x160] ss:$8 sps:$4 sm:$0xff]   ;;  %v1024_v9 = vld [vmem:[%s1436_s1 + $0x154] ss:$8 sps:$4 sm:$0xff]   ;;  %v1027_v11 = vld [vmem:[%s1436_s1 + $0x150] ss:$8 sps:$4 sm:$0xff]  }
   0xf   : > { %746 = vmatprep.subr.bf16.mxu1 %v1018_v5  ;;  %v1028_v12 = vld [vmem:[%s1436_s1 + $0x44] ss:$8 sps:$4 sm:$0xff]   ;;  %v1032_v14 = vld [vmem:[%s1436_s1 + $0x40] ss:$8 sps:$4 sm:$0xff]   ;;  %v1034_v16 = vld [vmem:[%s1436_s1 + $0x34] ss:$8 sps:$4 sm:$0xff]  }
  0x10   : > { %v1030_v13 = vld [vmem:[%s1436_s1 + $0x144] ss:$8 sps:$4 sm:$0xff]   ;;  %v1033_v15 = vld [vmem:[%s1436_s1 + $0x140] ss:$8 sps:$4 sm:$0xff]   ;;  %v1036_v17 = vld [vmem:[%s1436_s1 + $0x134] ss:$8 sps:$4 sm:$0xff]  }
  0x11   : > { %674 = vmatpush1.bf16.msra.mxu0 %v1020_v6  ;;  %v1038_v18 = vld [vmem:[%s1436_s1 + $0x30] ss:$8 sps:$4 sm:$0xff]   ;;  %v1040_v20 = vld [vmem:[%s1436_s1 + $0x24] ss:$8 sps:$4 sm:$0xff]   ;;  %v1044_v22 = vld [vmem:[%s1436_s1 + $0x20] ss:$8 sps:$4 sm:$0xff]  }
  0x12   : > { %747 = vmatpush1.bf16.msra.mxu1 %v1021_v7  ;;  %675 = vmatprep.subr.bf16.mxu0 %v1022_v8  ;;  %v1039_v19 = vld [vmem:[%s1436_s1 + $0x130] ss:$8 sps:$4 sm:$0xff]   ;;  %v1042_v21 = vld [vmem:[%s1436_s1 + $0x124] ss:$8 sps:$4 sm:$0xff]   ;;  %v1045_v23 = vld [vmem:[%s1436_s1 + $0x120] ss:$8 sps:$4 sm:$0xff]  }
  0x13   : > { %748 = vmatprep.subr.bf16.mxu1 %v1024_v9  ;;  %v1046_v24 = vld [vmem:[%s1436_s1 + $0x14] ss:$8 sps:$4 sm:$0xff]   ;;  %v1050_v26 = vld [vmem:[%s1436_s1 + $0x10] ss:$8 sps:$4 sm:$0xff]   ;;  %v1052_v28 = vld [vmem:[%s1436_s1 + $0x4] ss:$8 sps:$4 sm:$0xff]  }
  0x14   : > { %v1048_v25 = vld [vmem:[%s1436_s1 + $0x114] ss:$8 sps:$4 sm:$0xff]   ;;  %v1051_v27 = vld [vmem:[%s1436_s1 + $0x110] ss:$8 sps:$4 sm:$0xff]   ;;  %v1054_v29 = vld [vmem:[%s1436_s1 + $0x104] ss:$8 sps:$4 sm:$0xff]  }
  0x15   : > { %676 = vmatpush1.bf16.msra.mxu0 %v1026_v10  ;;  %v1056_v30 = vld [vmem:[%s1436_s1] ss:$8 sps:$4 sm:$0xff]   ;;  %v1058_v32 = vld [vmem:[%s1436_s1 + $0xf4] ss:$8 sps:$4 sm:$0xff]   ;;  %v1062_v34 = vld [vmem:[%s1436_s1 + $0xf0] ss:$8 sps:$4 sm:$0xff]  }
  0x16   : > { %749 = vmatpush1.bf16.msra.mxu1 %v1027_v11  ;;  %677 = vmatprep.subr.bf16.mxu0 %v1028_v12  ;;  %v1057_v31 = vld [vmem:[%s1436_s1 + $0x100] ss:$8 sps:$4 sm:$0xff]   ;;  %v1060_v33 = vld [vmem:[%s1436_s1 + $0x1f4] ss:$8 sps:$4 sm:$0xff]   ;;  %v1063_v35 = vld [vmem:[%s1436_s1 + $0x1f0] ss:$8 sps:$4 sm:$0xff]  }
  0x17   : > { %750 = vmatprep.subr.bf16.mxu1 %v1030_v13  ;;  %v1064_v36 = vld [vmem:[%s1436_s1 + $0xe4] ss:$8 sps:$4 sm:$0xff]   ;;  %s1440_s24 = smov (!%p166_p3, %s912_s24), 15  ;;  %v1068_v38 = vld [vmem:[%s1436_s1 + $0xe0] ss:$8 sps:$4 sm:$0xff]  }
  0x18   : > { %v1066_v37 = vld [vmem:[%s1436_s1 + $0x1e4] ss:$8 sps:$4 sm:$0xff]   ;;  %v1069_v39 = vld [vmem:[%s1436_s1 + $0x1e0] ss:$8 sps:$4 sm:$0xff]   ;;  %v1070_v40 = vld [vmem:[%s1436_s1 + $0xd4] ss:$8 sps:$4 sm:$0xff]  }
  0x19   : > { %678 = vmatpush1.bf16.msra.mxu0 %v1032_v14  ;;  %v1072_v41 = vld [vmem:[%s1436_s1 + $0x1d4] ss:$8 sps:$4 sm:$0xff]   ;;  %s1000_s23 = sshll.u32 %s1440_s24, 4  ;;  %v1074_v42 = vld [vmem:[%s1436_s1 + $0xd0] ss:$8 sps:$4 sm:$0xff]  }
  0x1a   : > { %751 = vmatpush1.bf16.msra.mxu1 %v1033_v15  ;;  %679 = vmatprep.subr.bf16.mxu0 %v1034_v16  ;;  %v1075_v43 = vld [vmem:[%s1436_s1 + $0x1d0] ss:$8 sps:$4 sm:$0xff]   ;;  %v1076_v44 = vld [vmem:[%s1436_s1 + $0xc4] ss:$8 sps:$4 sm:$0xff]   ;;  %s1311_s13 = scalar_lea.vmem %s1435_s0, %s1000_s23  ;;  %v1080_v46 = vld [vmem:[%s1436_s1 + $0xc0] ss:$8 sps:$4 sm:$0xff]   ;;  %v261_v16 = vlaneseq  ;;  %s1400_s28 = scalar_lea.vmem %s1438_s3, %s1000_s23 }
  0x1b   : > { %752 = vmatprep.subr.bf16.mxu1 %v1036_v17  ;;  %v1078_v45 = vld [vmem:[%s1436_s1 + $0x1c4] ss:$8 sps:$4 sm:$0xff]   ;;  %v1081_v47 = vld [vmem:[%s1436_s1 + $0x1c0] ss:$8 sps:$4 sm:$0xff]   ;;  %v1082_v48 = vld [vmem:[%s1436_s1 + $0xb4] ss:$8 sps:$4 sm:$0xff]  }
  0x1c   : > { %v1108_v49 = vld [vmem:[%s1311_s13 + $0x4] ss:$16 sps:$4 sm:$0xff]   ;;  %v1111_v51 = vld [vmem:[%s1311_s13 + $0xc] ss:$16 sps:$4 sm:$0xff]   ;;  %v1086_v52 = vld [vmem:[%s1436_s1 + $0xb0] ss:$8 sps:$4 sm:$0xff]  }
  0x1d   : > { %680 = vmatpush1.bf16.msra.mxu0 %v1038_v18  ;;  %v1084_v50 = vld [vmem:[%s1436_s1 + $0x1b4] ss:$8 sps:$4 sm:$0xff]   ;;  %703 = vmatprep.mubr.bf16.mxu0 %v1108_v49  ;;  %v1087_v53 = vld [vmem:[%s1436_s1 + $0x1b0] ss:$8 sps:$4 sm:$0xff]   ;;  %v1088_v54 = vld [vmem:[%s1436_s1 + $0xa4] ss:$8 sps:$4 sm:$0xff]  }
  0x1e   : > { %753 = vmatpush1.bf16.msra.mxu1 %v1039_v19  ;;  %681 = vmatprep.subr.bf16.mxu0 %v1040_v20  ;;  %v1090_v55 = vld [vmem:[%s1436_s1 + $0x1a4] ss:$8 sps:$4 sm:$0xff]   ;;  %v1092_v56 = vld [vmem:[%s1436_s1 + $0xa0] ss:$8 sps:$4 sm:$0xff]   ;;  %v1094_v58 = vld [vmem:[%s1436_s1 + $0x94] ss:$8 sps:$4 sm:$0xff]  }
  0x1f   : > { %754 = vmatprep.subr.bf16.mxu1 %v1042_v21  ;;  %776 = vmatprep.mubr.bf16.mxu1 %v1111_v51  ;;  %v1093_v57 = vld [vmem:[%s1436_s1 + $0x1a0] ss:$8 sps:$4 sm:$0xff]   ;;  %v1096_v59 = vld [vmem:[%s1436_s1 + $0x194] ss:$8 sps:$4 sm:$0xff]   ;;  %v1098_v60 = vld [vmem:[%s1436_s1 + $0x90] ss:$8 sps:$4 sm:$0xff]  }
  0x20   : > { %v1099_v61 = vld [vmem:[%s1436_s1 + $0x190] ss:$8 sps:$4 sm:$0xff]   ;;  %v1100_v62 = vld [vmem:[%s1436_s1 + $0x84] ss:$8 sps:$4 sm:$0xff]   ;;  %v1104_v0 = vld [vmem:[%s1436_s1 + $0x80] ss:$8 sps:$4 sm:$0xff]  }
  0x21   : > { %682 = vmatpush1.bf16.msra.mxu0 %v1044_v22  ;;  %v1102_v63 = vld [vmem:[%s1436_s1 + $0x184] ss:$8 sps:$4 sm:$0xff]   ;;  %v1105_v1 = vld [vmem:[%s1436_s1 + $0x180] ss:$8 sps:$4 sm:$0xff]   ;;  %v262_v17 = vshrl.u32 %v261_v16, 7 }
  0x22   : > { %755 = vmatpush1.bf16.msra.mxu1 %v1045_v23  ;;  %683 = vmatprep.subr.bf16.mxu0 %v1046_v24  ;;  %v1106_v2 = vld [vmem:[%s1311_s13] ss:$16 sps:$4 sm:$0xff]   ;;  %v1109_v3 = vld [vmem:[%s1311_s13 + $0x8] ss:$16 sps:$4 sm:$0xff]   ;;  %v1112_v4 = vld [vmem:[%s1311_s13 + $0x24] ss:$16 sps:$4 sm:$0xff]  }
  0x23   : > { %756 = vmatprep.subr.bf16.mxu1 %v1048_v25  ;;  %v1114_v5 = vld [vmem:[%s1311_s13 + $0x2c] ss:$16 sps:$4 sm:$0xff]   ;;  %v1116_v6 = vld [vmem:[%s1311_s13 + $0x20] ss:$16 sps:$4 sm:$0xff]   ;;  %v1117_v7 = vld [vmem:[%s1311_s13 + $0x28] ss:$16 sps:$4 sm:$0xff]  }
  0x24   : > { %v1118_v8 = vld [vmem:[%s1311_s13 + $0x44] ss:$16 sps:$4 sm:$0xff]   ;;  %v1120_v9 = vld [vmem:[%s1311_s13 + $0x4c] ss:$16 sps:$4 sm:$0xff]   ;;  %v1122_v10 = vld [vmem:[%s1311_s13 + $0x40] ss:$16 sps:$4 sm:$0xff]  }
  0x25   : > { %684 = vmatpush1.bf16.msra.mxu0 %v1050_v26  ;;  %v1123_v11 = vld [vmem:[%s1311_s13 + $0x48] ss:$16 sps:$4 sm:$0xff]   ;;  %v1124_v12 = vld [vmem:[%s1311_s13 + $0x64] ss:$16 sps:$4 sm:$0xff]   ;;  %v1126_v13 = vld [vmem:[%s1311_s13 + $0x6c] ss:$16 sps:$4 sm:$0xff]  }
  0x26   : > { %757 = vmatpush1.bf16.msra.mxu1 %v1051_v27  ;;  %685 = vmatprep.subr.bf16.mxu0 %v1052_v28  ;;  %v1128_v14 = vld [vmem:[%s1311_s13 + $0x60] ss:$16 sps:$4 sm:$0xff]   ;;  %v1129_v15 = vld [vmem:[%s1311_s13 + $0x68] ss:$16 sps:$4 sm:$0xff]   ;;  %v263_v18 = vsub.s32 0, %v262_v17  ;;  %v267_v20 = vsub.s32 1, %v262_v17 }
  0x27   : > { %758 = vmatprep.subr.bf16.mxu1 %v1054_v29  ;;  %v259_v19 = vld [vmem:[%s1437_s2] sm:$0x3] }
  0x28   : > { %v1389_v21 = vrot.slane %v259_v19, %v263_v18  ;;  %v1391_v22 = vrot.slane %v259_v19, %v267_v20 }
  0x29   : > { %686 = vmatpush1.bf16.msra.mxu0 %v1056_v30 }
  0x2a   : > { %759 = vmatpush1.bf16.msra.mxu1 %v1057_v31  ;;  %687 = vmatprep.subr.bf16.mxu0 %v1058_v32 }
  0x2b   : > { %760 = vmatprep.subr.bf16.mxu1 %v1060_v33 }
  0x2d   : > { %688 = vmatpush2.bf16.msra.mxu0 %v1062_v34 }
  0x2e   : > { %761 = vmatpush2.bf16.msra.mxu1 %v1063_v35  ;;  %689 = vmatprep.subr.bf16.mxu0 %v1064_v36 }
  0x2f   : > { %762 = vmatprep.subr.bf16.mxu1 %v1066_v37 }
  0x31   : > { %690 = vmatpush2.bf16.msra.mxu0 %v1068_v38 }
  0x32   : > { %763 = vmatpush2.bf16.msra.mxu1 %v1069_v39  ;;  %691 = vmatprep.subr.bf16.mxu0 %v1070_v40 }
  0x33   : > { %764 = vmatprep.subr.bf16.mxu1 %v1072_v41 }
  0x35   : > { %692 = vmatpush2.bf16.msra.mxu0 %v1074_v42 }
  0x36   : > { %765 = vmatpush2.bf16.msra.mxu1 %v1075_v43  ;;  %693 = vmatprep.subr.bf16.mxu0 %v1076_v44 }
  0x37   : > { %766 = vmatprep.subr.bf16.mxu1 %v1078_v45 }
  0x39   : > { %694 = vmatpush2.bf16.msra.mxu0 %v1080_v46 }
  0x3a   : > { %767 = vmatpush2.bf16.msra.mxu1 %v1081_v47  ;;  %695 = vmatprep.subr.bf16.mxu0 %v1082_v48 }
  0x3b   : > { %768 = vmatprep.subr.bf16.mxu1 %v1084_v50 }
  0x3d   : > { %696 = vmatpush2.bf16.msra.mxu0 %v1086_v52 }
  0x3e   : > { %769 = vmatpush2.bf16.msra.mxu1 %v1087_v53  ;;  %697 = vmatprep.subr.bf16.mxu0 %v1088_v54 }
  0x3f   : > { %770 = vmatprep.subr.bf16.mxu1 %v1090_v55 }
  0x41   : > { %698 = vmatpush2.bf16.msra.mxu0 %v1092_v56 }
  0x42   : > { %771 = vmatpush2.bf16.msra.mxu1 %v1093_v57  ;;  %699 = vmatprep.subr.bf16.mxu0 %v1094_v58 }
  0x43   : > { %772 = vmatprep.subr.bf16.mxu1 %v1096_v59 }
  0x45   : > { %700 = vmatpush2.bf16.msra.mxu0 %v1098_v60 }
  0x46   : > { %773 = vmatpush2.bf16.msra.mxu1 %v1099_v61  ;;  %701 = vmatprep.subr.bf16.mxu0 %v1100_v62 }
  0x47   : > { %774 = vmatprep.subr.bf16.mxu1 %v1102_v63 }
  0x49   : > { %702 = vmatpush2.bf16.msra.mxu0 %v1104_v0 }
  0x4a   : > { %775 = vmatpush2.bf16.msra.mxu1 %v1105_v1 }
  0x4c   : > { %704 = vmatmul.mubr.bf16.vlgmr.msra.gmra.mxu0 %v1106_v2 }
  0x4d   : > { %777 = vmatmul.mubr.bf16.vlgmr.msra.gmra.mxu1 %v1109_v3  ;;  %713 = vmatprep.mubr.bf16.mxu0 %v1112_v4 }
  0x4e   : > { %786 = vmatprep.mubr.bf16.mxu1 %v1114_v5 }
  0x54   : > { %714 = vmatmul.mubr.bf16.gmra.mxu0 %v1116_v6 }
  0x55   : > { %787 = vmatmul.mubr.bf16.gmra.mxu1 %v1117_v7  ;;  %723 = vmatprep.mubr.bf16.mxu0 %v1118_v8 }
  0x56   : > { %796 = vmatprep.mubr.bf16.mxu1 %v1120_v9 }
  0x5c   : > { %724 = vmatmul.mubr.bf16.gmra.mxu0 %v1122_v10 }
  0x5d   : > { %797 = vmatmul.mubr.bf16.gmra.mxu1 %v1123_v11  ;;  %733 = vmatprep.mubr.bf16.mxu0 %v1124_v12 }
  0x5e   : > { %806 = vmatprep.mubr.bf16.mxu1 %v1126_v13 }
  0x64   : > { %734 = vmatmul.mubr.bf16.gmra.mxu0 %v1128_v14 }
  0x65   : > { %807 = vmatmul.mubr.bf16.gmra.mxu1 %v1129_v15 }
 0x10c   : > { %v705_v23 = vpop.f32.mrf.mxu0 }
 0x10d   : > { %v778_v24 = vpop.f32.mrf.mxu1  ;;  %v706_v25 = vadd.f32 %v705_v23, %v1389_v21 }
 0x10e   : > { %v707_v26 = vpop.f32.mrf.mxu0 }
 0x10f   : > { %v780_v27 = vpop.f32.mrf.mxu1  ;;  %v779_v28 = vadd.f32 %v778_v24, %v706_v25  ;;  %v708_v29 = vadd.f32 %v707_v26, %v1391_v22 }
 0x110   : > { %v709_v30 = vpop.f32.mrf.mxu0 }
 0x111   : > { %v782_v31 = vpop.f32.mrf.mxu1  ;;  %v817_v32 = vmax.f32 %v779_v28, 0.0  ;;  %v781_v33 = vadd.f32 %v780_v27, %v708_v29  ;;  %v710_v34 = vadd.f32 %v709_v30, %v1389_v21 }
 0x112   : > { %v711_v35 = vpop.f32.mrf.mxu0 }
 0x113   : > { %v784_v36 = vpop.f32.mrf.mxu1  ;;  %833 = vst [vmem:[%s1400_s28] sm:$0xff] %v817_v32  ;;  %v818_v37 = vmax.f32 %v781_v33, 0.0  ;;  %v783_v38 = vadd.f32 %v782_v31, %v710_v34  ;;  %v712_v39 = vadd.f32 %v711_v35, %v1391_v22 }
 0x114   : > { %v715_v40 = vpop.f32.mrf.mxu0 }
 0x115   : > { %v788_v41 = vpop.f32.mrf.mxu1  ;;  %834 = vst [vmem:[%s1400_s28 + $0x8] sm:$0xff] %v818_v37  ;;  %v819_v42 = vmax.f32 %v783_v38, 0.0  ;;  %v785_v43 = vadd.f32 %v784_v36, %v712_v39  ;;  %v716_v44 = vadd.f32 %v715_v40, %v1389_v21 }
 0x116   : > { %v717_v45 = vpop.f32.mrf.mxu0 }
 0x117   : > { %v790_v46 = vpop.f32.mrf.mxu1  ;;  %835 = vst [vmem:[%s1400_s28 + $0x10] sm:$0xff] %v819_v42  ;;  %v820_v47 = vmax.f32 %v785_v43, 0.0  ;;  %v789_v48 = vadd.f32 %v788_v41, %v716_v44  ;;  %v718_v49 = vadd.f32 %v717_v45, %v1391_v22 }
 0x118   : > { %v719_v50 = vpop.f32.mrf.mxu0 }
 0x119   : > { %v792_v51 = vpop.f32.mrf.mxu1  ;;  %836 = vst [vmem:[%s1400_s28 + $0x18] sm:$0xff] %v820_v47  ;;  %v821_v52 = vmax.f32 %v789_v48, 0.0  ;;  %v791_v53 = vadd.f32 %v790_v46, %v718_v49  ;;  %v720_v54 = vadd.f32 %v719_v50, %v1389_v21 }
 0x11a   : > { %v721_v55 = vpop.f32.mrf.mxu0 }
 0x11b   : > { %v794_v56 = vpop.f32.mrf.mxu1  ;;  %837 = vst [vmem:[%s1400_s28 + $0x20] sm:$0xff] %v821_v52  ;;  %v822_v57 = vmax.f32 %v791_v53, 0.0  ;;  %v793_v58 = vadd.f32 %v792_v51, %v720_v54  ;;  %v722_v59 = vadd.f32 %v721_v55, %v1391_v22 }
 0x11c   : > { %v725_v60 = vpop.f32.mrf.mxu0 }
 0x11d   : > { %v798_v61 = vpop.f32.mrf.mxu1  ;;  %838 = vst [vmem:[%s1400_s28 + $0x28] sm:$0xff] %v822_v57  ;;  %v823_v62 = vmax.f32 %v793_v58, 0.0  ;;  %v795_v63 = vadd.f32 %v794_v56, %v722_v59  ;;  %v726_v0 = vadd.f32 %v725_v60, %v1389_v21 }
 0x11e   : > { %v727_v1 = vpop.f32.mrf.mxu0 }
 0x11f   : > { %v800_v2 = vpop.f32.mrf.mxu1  ;;  %839 = vst [vmem:[%s1400_s28 + $0x30] sm:$0xff] %v823_v62  ;;  %v824_v3 = vmax.f32 %v795_v63, 0.0  ;;  %v799_v4 = vadd.f32 %v798_v61, %v726_v0  ;;  %v728_v5 = vadd.f32 %v727_v1, %v1391_v22 }
 0x120   : > { %v729_v6 = vpop.f32.mrf.mxu0 }
 0x121   : > { %v802_v7 = vpop.f32.mrf.mxu1  ;;  %840 = vst [vmem:[%s1400_s28 + $0x38] sm:$0xff] %v824_v3  ;;  %v825_v8 = vmax.f32 %v799_v4, 0.0  ;;  %v801_v9 = vadd.f32 %v800_v2, %v728_v5  ;;  %v730_v10 = vadd.f32 %v729_v6, %v1389_v21 }
 0x122   : > { %v731_v11 = vpop.f32.mrf.mxu0 }
 0x123   : > { %v804_v12 = vpop.f32.mrf.mxu1  ;;  %841 = vst [vmem:[%s1400_s28 + $0x40] sm:$0xff] %v825_v8  ;;  %v826_v13 = vmax.f32 %v801_v9, 0.0  ;;  %v803_v14 = vadd.f32 %v802_v7, %v730_v10  ;;  %v732_v15 = vadd.f32 %v731_v11, %v1391_v22 }
 0x124   : > { %v735_v16 = vpop.f32.mrf.mxu0 }
 0x125   : > { %v808_v17 = vpop.f32.mrf.mxu1  ;;  %842 = vst [vmem:[%s1400_s28 + $0x48] sm:$0xff] %v826_v13  ;;  %v827_v18 = vmax.f32 %v803_v14, 0.0  ;;  %v805_v19 = vadd.f32 %v804_v12, %v732_v15  ;;  %v736_v20 = vadd.f32 %v735_v16, %v1389_v21 }
 0x126   : > { %v737_v23 = vpop.f32.mrf.mxu0 }
 0x127   : > { %v810_v24 = vpop.f32.mrf.mxu1  ;;  %843 = vst [vmem:[%s1400_s28 + $0x50] sm:$0xff] %v827_v18  ;;  %v828_v25 = vmax.f32 %v805_v19, 0.0  ;;  %v809_v26 = vadd.f32 %v808_v17, %v736_v20  ;;  %v738_v27 = vadd.f32 %v737_v23, %v1391_v22 }
 0x128   : > { %v739_v28 = vpop.f32.mrf.mxu0 }
 0x129   : > { %v812_v29 = vpop.f32.mrf.mxu1  ;;  %844 = vst [vmem:[%s1400_s28 + $0x58] sm:$0xff] %v828_v25  ;;  %v829_v30 = vmax.f32 %v809_v26, 0.0  ;;  %v811_v31 = vadd.f32 %v810_v24, %v738_v27  ;;  %v740_v32 = vadd.f32 %v739_v28, %v1389_v21 }
 0x12a   : > { %v741_v33 = vpop.f32.mrf.mxu0 }
 0x12b   : > { %845 = vst [vmem:[%s1400_s28 + $0x60] sm:$0xff] %v829_v30  ;;  %v830_v34 = vmax.f32 %v811_v31, 0.0  ;;  %v813_v35 = vadd.f32 %v812_v29, %v740_v32  ;;  %v742_v36 = vadd.f32 %v741_v33, %v1391_v22  ;;  %v814_v37 = vpop.f32.mrf.mxu1 }
 0x12d   : > { %846 = vst [vmem:[%s1400_s28 + $0x68] sm:$0xff] %v830_v34  ;;  %v831_v38 = vmax.f32 %v813_v35, 0.0  ;;  %v815_v39 = vadd.f32 %v814_v37, %v742_v36 }
 0x12f   : > { %847 = vst [vmem:[%s1400_s28 + $0x70] sm:$0xff] %v831_v38  ;;  %v832_v40 = vmax.f32 %v815_v39, 0.0 }
 0x131   : > { %848 = vst [vmem:[%s1400_s28 + $0x78] sm:$0xff] %v832_v40 }
 0x132 PF: > { %s13_s12 = sadd.s32 1, %s1136_s12  }
 0x133   : > { %p10_p4 = scmp.ge.s32.totalorder %s13_s12, 4  }
 0x135   :  { %12 = sbr.rel (!%p10_p4) target bundleno = 1 (0x1), region = 62 }

// kernel: tile.23
= control target key start
LH: loop header
LB: loop body
LE: loop exit
PB: predicated region body
PF: predicated region fallthrough
CT: control target
= control target key end

     0   :  { %s22_s0 = inlined_call_operand.vmem [shape: f32[16], index: 0, kind: input, shape index: {}]   ;;  %s23_s1 = inlined_call_operand.vmem [shape: f32[8,16], index: 1, kind: output, shape index: {}]  }
   0x1   :  { %v4_v0 = vld [vmem:[%s22_s0] ss:$0 sm:$0xff] }
   0x2   :  { %5 = vst [vmem:[%s23_s1] sm:$0xff] %v4_v0 }

// kernel: tile.24
= control target key start
LH: loop header
LB: loop body
LE: loop exit
PB: predicated region body
PF: predicated region fallthrough
CT: control target
= control target key end

     0   :  { %s69_s10 = smov 112   ;;  %s70_s11 = smov 80   ;;  %vm3_vm0 = vcmask 130048   ;;  %vm9_vm1 = vcmask 1048448   ;;  %vm15_vm2 = vcmask 917248   ;;  %vm21_vm3 = vcmask 786048   ;;  %s113_s0 = inlined_call_operand.vmem [shape: f32[8,16], index: 0, kind: input, shape index: {}]   ;;  %s114_s1 = inlined_call_operand.vmem [shape: f32[1,128], index: 1, kind: output, shape index: {}]  }
   0x1   :  { %v55_v0 = vld [vmem:[%s113_s0 + $0x7] sm:$0x1]   ;;  %v57_v1 = vld [vmem:[%s113_s0 + $0x5] sm:$0x1]   ;;  %v56_v2 = vld [vmem:[%s113_s0 + $0x6] sm:$0x1]  }
   0x2   :  { %7 = vrot.lane.b32.xlu0 %v55_v0, %s69_s10  ;;  %19 = vrot.lane.b32.xlu1 %v57_v1, %s70_s11  ;;  %v58_v3 = vld [vmem:[%s113_s0 + $0x4] sm:$0x1]   ;;  %v2_v4 = vld [vmem:[%s113_s0] sm:$0x1]   ;;  %s71_s18 = smov 96   ;;  %s72_s19 = smov 64  }
   0x3   :  { %4 = vst.msk [vmem:[#allocation0] sm:$0x1] %vm3_vm0, %v2_v4   ;;  %v59_v5 = vld [vmem:[%s113_s0 + $0x3] sm:$0x1]   ;;  %v60_v6 = vld [vmem:[%s113_s0 + $0x2] sm:$0x1]  }
   0x4   :  { %s73_s24 = smov 48   ;;  %s74_s25 = smov 32   ;;  %v61_v7 = vld [vmem:[%s113_s0 + $0x1] sm:$0x1]   ;;  %vm27_vm4 = vcmask 654848   ;;  %vm33_vm5 = vcmask 523648  }
   0x5   :  { %s75_s0 = smov 16   ;;  %vm39_vm6 = vcmask 392448   ;;  %vm45_vm7 = vcmask 261248  }
   0x6   :  { %13 = vrot.lane.b32.xlu0 %v56_v2, %s71_s18  ;;  %25 = vrot.lane.b32.xlu1 %v58_v3, %s72_s19 }
   0xa   :  { %31 = vrot.lane.b32.xlu0 %v59_v5, %s73_s24  ;;  %37 = vrot.lane.b32.xlu1 %v60_v6, %s74_s25 }
   0xe   :  { %43 = vrot.lane.b32.xlu0 %v61_v7, %s75_s0 }
  0x74   :  { %v8_v8 = vpop.permute.xlu0 %7   ;;  %v20_v9 = vpop.permute.xlu1 %19  }
  0x75   :  { %10 = vst.msk [vmem:[#allocation0] sm:$0x1] %vm9_vm1, %v8_v8  }
  0x78   :  { %v14_v10 = vpop.permute.xlu0 %13   ;;  %v26_v11 = vpop.permute.xlu1 %25  }
  0x79   :  { %16 = vst.msk [vmem:[#allocation0] sm:$0x1] %vm15_vm2, %v14_v10  }
  0x7a   :  { %22 = vst.msk [vmem:[#allocation0] sm:$0x1] %vm21_vm3, %v20_v9  }
  0x7b   :  { %28 = vst.msk [vmem:[#allocation0] sm:$0x1] %vm27_vm4, %v26_v11  }
  0x7c   :  { %v32_v12 = vpop.permute.xlu0 %31   ;;  %v38_v13 = vpop.permute.xlu1 %37  }
  0x7d   :  { %34 = vst.msk [vmem:[#allocation0] sm:$0x1] %vm33_vm5, %v32_v12  }
  0x7e   :  { %40 = vst.msk [vmem:[#allocation0] sm:$0x1] %vm39_vm6, %v38_v13  }
  0x80   :  { %v44_v14 = vpop.permute.xlu0 %43  }
  0x81   :  { %46 = vst.msk [vmem:[#allocation0] sm:$0x1] %vm45_vm7, %v44_v14  }
  0x88   :  { %v51_v15 = vld [vmem:[#allocation0] sm:$0x1] }
  0x89   :  { %54 = vst [vmem:[%s114_s1] sm:$0x1] %v51_v15 }

// kernel: decoder_forward.4
= control target key start
LH: loop header
LB: loop body
LE: loop exit
PB: predicated region body
PF: predicated region fallthrough
CT: control target
= control target key end

     0   :  { %s1446_s12 = smov 0   ;;  %s1751_s0 = inlined_call_operand.vmem [shape: bf16[1024,256], index: 0, kind: input, shape index: {}]   ;;  %s1752_s1 = inlined_call_operand.vmem [shape: bf16[256,128], index: 1, kind: input, shape index: {}]   ;;  %s1753_s2 = inlined_call_operand.vmem [shape: f32[1,128], index: 2, kind: input, shape index: {}]   ;;  %s1754_s3 = inlined_call_operand.vmem [shape: f32[1024,128], index: 3, kind: output, shape index: {}]  }
   0x1 LB: > { %s1170_s13 = sadd.s32 4294967295, %s1423_s12   ;;  %p1174_p0 = scmp.ge.s32.totalorder %s1423_s12, 1  ;;  %s1423_s12 = sphi %s1446_s12, %s13_s12  }
   0x2   : > { %p139_p1 = scmp.lt.s32.totalorder %s1423_s12, 3 }
   0x4   : > { %p140_p2 = pnand %p1174_p0, %p139_p1 }
   0x5   : > { %s1175_s16 = sshll.u32 (!%p140_p2), %s1170_s13, 6 }
   0x6   : > { %143 = sbr.rel (%p140_p2) target bundleno = 398 (0x18e), region = 32  ;;  %p165_p3 = scmp.lt.s32.totalorder (!%p140_p2), %s1175_s16, 127 }
   0xb   : > { %v1305_v0 = vld [vmem:[%s1752_s1 + $0x38] sm:$0xff]   ;;  %v1425_v1 = vmov 0   ;;  %v1306_v2 = vld [vmem:[%s1752_s1 + $0x30] sm:$0xff]   ;;  %v1307_v3 = vld [vmem:[%s1752_s1 + $0x28] sm:$0xff]   ;;  %s1756_s16 = smov (!%p165_p3, %s1175_s16), 127 }
   0xc   : > { %697 = vmatprep.subr.bf16.mxu0 %v1425_v1  ;;  %1264 = vmatprep.subr.bf16.mxu1 %v1425_v1  ;;  %v1308_v4 = vld [vmem:[%s1752_s1 + $0x20] sm:$0xff]   ;;  %s1263_s23 = sshll.u32 %s1756_s16, 3  ;;  %v1309_v5 = vld [vmem:[%s1752_s1 + $0x18] sm:$0xff]   ;;  %v1310_v7 = vld [vmem:[%s1752_s1 + $0x10] sm:$0xff]  }
   0xd   : > { %698 = vmatpush1.bf16.msra.mxu0 %v1305_v0  ;;  %1280 = vmatpush1.bf16.msra.mxu1 %v1305_v0  ;;  %s1485_s28 = scalar_lea.vmem %s1751_s0, %s1263_s23  ;;  %v1311_v9 = vld [vmem:[%s1752_s1 + $0x8] sm:$0xff]   ;;  %v1312_v10 = vld [vmem:[%s1752_s1] sm:$0xff]   ;;  %v1313_v11 = vld [vmem:[%s1752_s1 + $0x78] sm:$0xff]   ;;  %s1620_s5 = scalar_lea.vmem %s1754_s3, %s1263_s23 }
   0xe   : > { %699 = vmatprep.subr.bf16.mxu0 %v1425_v1  ;;  %1265 = vmatprep.subr.bf16.mxu1 %v1425_v1  ;;  %v1323_v6 = vld [vmem:[%s1485_s28 + $0x4] ss:$8 sps:$4 sm:$0xff]   ;;  %v1314_v12 = vld [vmem:[%s1752_s1 + $0x70] sm:$0xff]   ;;  %v1317_v15 = vld [vmem:[%s1752_s1 + $0x58] sm:$0xff]  }
   0xf   : > { %v1326_v8 = vld [vmem:[%s1485_s28 + $0x104] ss:$8 sps:$4 sm:$0xff]   ;;  %729 = vmatprep.mubr.bf16.mxu0 %v1323_v6  ;;  %v1318_v16 = vld [vmem:[%s1752_s1 + $0x50] sm:$0xff]   ;;  %v1321_v19 = vld [vmem:[%s1485_s28] ss:$8 sps:$4 sm:$0xff]  }
  0x10   : > { %857 = vmatprep.mubr.bf16.mxu1 %v1326_v8  ;;  %v1315_v13 = vld [vmem:[%s1752_s1 + $0x68] sm:$0xff]   ;;  %v1316_v14 = vld [vmem:[%s1752_s1 + $0x60] sm:$0xff]   ;;  %v1327_v21 = vld [vmem:[%s1485_s28 + $0x14] ss:$8 sps:$4 sm:$0xff]  }
  0x11   : > { %700 = vmatpush1.bf16.msra.mxu0 %v1306_v2  ;;  %1281 = vmatpush1.bf16.msra.mxu1 %v1306_v2  ;;  %v1319_v17 = vld [vmem:[%s1752_s1 + $0x48] sm:$0xff]   ;;  %v1320_v18 = vld [vmem:[%s1752_s1 + $0x40] sm:$0xff]   ;;  %v1329_v22 = vld [vmem:[%s1485_s28 + $0x114] ss:$8 sps:$4 sm:$0xff]  }
  0x12   : > { %701 = vmatprep.subr.bf16.mxu0 %v1425_v1  ;;  %1266 = vmatprep.subr.bf16.mxu1 %v1425_v1  ;;  %v1324_v20 = vld [vmem:[%s1485_s28 + $0x100] ss:$8 sps:$4 sm:$0xff]   ;;  %v1331_v23 = vld [vmem:[%s1485_s28 + $0x10] ss:$8 sps:$4 sm:$0xff]   ;;  %v1333_v25 = vld [vmem:[%s1485_s28 + $0x24] ss:$8 sps:$4 sm:$0xff]  }
  0x13   : > { %v1332_v24 = vld [vmem:[%s1485_s28 + $0x110] ss:$8 sps:$4 sm:$0xff]   ;;  %v1335_v26 = vld [vmem:[%s1485_s28 + $0x124] ss:$8 sps:$4 sm:$0xff]   ;;  %v1337_v27 = vld [vmem:[%s1485_s28 + $0x20] ss:$8 sps:$4 sm:$0xff]  }
  0x14   : > { %v1338_v28 = vld [vmem:[%s1485_s28 + $0x120] ss:$8 sps:$4 sm:$0xff]   ;;  %v1339_v29 = vld [vmem:[%s1485_s28 + $0x34] ss:$8 sps:$4 sm:$0xff]   ;;  %v1343_v31 = vld [vmem:[%s1485_s28 + $0x30] ss:$8 sps:$4 sm:$0xff]  }
  0x15   : > { %702 = vmatpush1.bf16.msra.mxu0 %v1307_v3  ;;  %1282 = vmatpush1.bf16.msra.mxu1 %v1307_v3  ;;  %v1341_v30 = vld [vmem:[%s1485_s28 + $0x134] ss:$8 sps:$4 sm:$0xff]   ;;  %v1344_v32 = vld [vmem:[%s1485_s28 + $0x130] ss:$8 sps:$4 sm:$0xff]   ;;  %v1345_v33 = vld [vmem:[%s1485_s28 + $0x44] ss:$8 sps:$4 sm:$0xff]  }
  0x16   : > { %703 = vmatprep.subr.bf16.mxu0 %v1425_v1  ;;  %1267 = vmatprep.subr.bf16.mxu1 %v1425_v1  ;;  %v1347_v34 = vld [vmem:[%s1485_s28 + $0x144] ss:$8 sps:$4 sm:$0xff]   ;;  %v1349_v35 = vld [vmem:[%s1485_s28 + $0x40] ss:$8 sps:$4 sm:$0xff]   ;;  %v1351_v37 = vld [vmem:[%s1485_s28 + $0x54] ss:$8 sps:$4 sm:$0xff]  }
  0x17   : > { %v1350_v36 = vld [vmem:[%s1485_s28 + $0x140] ss:$8 sps:$4 sm:$0xff]   ;;  %v1353_v38 = vld [vmem:[%s1485_s28 + $0x154] ss:$8 sps:$4 sm:$0xff]   ;;  %v1355_v39 = vld [vmem:[%s1485_s28 + $0x50] ss:$8 sps:$4 sm:$0xff]  }
  0x18   : > { %v1356_v40 = vld [vmem:[%s1485_s28 + $0x150] ss:$8 sps:$4 sm:$0xff]   ;;  %v1357_v41 = vld [vmem:[%s1485_s28 + $0x64] ss:$8 sps:$4 sm:$0xff]   ;;  %v1361_v43 = vld [vmem:[%s1485_s28 + $0x60] ss:$8 sps:$4 sm:$0xff]  }
  0x19   : > { %704 = vmatpush1.bf16.msra.mxu0 %v1308_v4  ;;  %1283 = vmatpush1.bf16.msra.mxu1 %v1308_v4  ;;  %v1359_v42 = vld [vmem:[%s1485_s28 + $0x164] ss:$8 sps:$4 sm:$0xff]   ;;  %v1362_v44 = vld [vmem:[%s1485_s28 + $0x160] ss:$8 sps:$4 sm:$0xff]   ;;  %v1363_v45 = vld [vmem:[%s1485_s28 + $0x74] ss:$8 sps:$4 sm:$0xff]  }
  0x1a   : > { %705 = vmatprep.subr.bf16.mxu0 %v1425_v1  ;;  %1268 = vmatprep.subr.bf16.mxu1 %v1425_v1  ;;  %v1365_v46 = vld [vmem:[%s1485_s28 + $0x174] ss:$8 sps:$4 sm:$0xff]   ;;  %v1367_v47 = vld [vmem:[%s1485_s28 + $0x70] ss:$8 sps:$4 sm:$0xff]   ;;  %v1369_v49 = vld [vmem:[%s1485_s28 + $0x84] ss:$8 sps:$4 sm:$0xff]  }
  0x1b   : > { %v1368_v48 = vld [vmem:[%s1485_s28 + $0x170] ss:$8 sps:$4 sm:$0xff]   ;;  %v1371_v50 = vld [vmem:[%s1485_s28 + $0x184] ss:$8 sps:$4 sm:$0xff]   ;;  %v1373_v51 = vld [vmem:[%s1485_s28 + $0x80] ss:$8 sps:$4 sm:$0xff]  }
  0x1c   : > { %v1374_v52 = vld [vmem:[%s1485_s28 + $0x180] ss:$8 sps:$4 sm:$0xff]   ;;  %v1375_v53 = vld [vmem:[%s1485_s28 + $0x94] ss:$8 sps:$4 sm:$0xff]   ;;  %v1379_v55 = vld [vmem:[%s1485_s28 + $0x90] ss:$8 sps:$4 sm:$0xff]  }
  0x1d   : > { %706 = vmatpush1.bf16.msra.mxu0 %v1309_v5  ;;  %1284 = vmatpush1.bf16.msra.mxu1 %v1309_v5  ;;  %v1377_v54 = vld [vmem:[%s1485_s28 + $0x194] ss:$8 sps:$4 sm:$0xff]   ;;  %v1380_v56 = vld [vmem:[%s1485_s28 + $0x190] ss:$8 sps:$4 sm:$0xff]   ;;  %v1381_v57 = vld [vmem:[%s1485_s28 + $0xa4] ss:$8 sps:$4 sm:$0xff]  }
  0x1e   : > { %707 = vmatprep.subr.bf16.mxu0 %v1425_v1  ;;  %1269 = vmatprep.subr.bf16.mxu1 %v1425_v1  ;;  %v1383_v58 = vld [vmem:[%s1485_s28 + $0x1a4] ss:$8 sps:$4 sm:$0xff]   ;;  %v1385_v59 = vld [vmem:[%s1485_s28 + $0xa0] ss:$8 sps:$4 sm:$0xff]   ;;  %v1387_v61 = vld [vmem:[%s1485_s28 + $0xb4] ss:$8 sps:$4 sm:$0xff]  }
  0x1f   : > { %v1386_v60 = vld [vmem:[%s1485_s28 + $0x1a0] ss:$8 sps:$4 sm:$0xff]   ;;  %v1389_v62 = vld [vmem:[%s1485_s28 + $0x1b4] ss:$8 sps:$4 sm:$0xff]   ;;  %v1391_v63 = vld [vmem:[%s1485_s28 + $0xb0] ss:$8 sps:$4 sm:$0xff]  }
  0x20   : > { %v1392_v0 = vld [vmem:[%s1485_s28 + $0x1b0] ss:$8 sps:$4 sm:$0xff]   ;;  %v1395_v2 = vld [vmem:[%s1485_s28 + $0x1c4] ss:$8 sps:$4 sm:$0xff]   ;;  %v1397_v3 = vld [vmem:[%s1485_s28 + $0xc0] ss:$8 sps:$4 sm:$0xff]  }
  0x21   : > { %708 = vmatpush1.bf16.msra.mxu0 %v1310_v7  ;;  %1285 = vmatpush1.bf16.msra.mxu1 %v1310_v7  ;;  %v1398_v4 = vld [vmem:[%s1485_s28 + $0x1c0] ss:$8 sps:$4 sm:$0xff]   ;;  %v1399_v5 = vld [vmem:[%s1485_s28 + $0xd4] ss:$8 sps:$4 sm:$0xff]   ;;  %v1403_v7 = vld [vmem:[%s1485_s28 + $0xd0] ss:$8 sps:$4 sm:$0xff]  }
  0x22   : > { %709 = vmatprep.subr.bf16.mxu0 %v1425_v1  ;;  %1270 = vmatprep.subr.bf16.mxu1 %v1425_v1  ;;  %v1401_v6 = vld [vmem:[%s1485_s28 + $0x1d4] ss:$8 sps:$4 sm:$0xff]   ;;  %v1404_v8 = vld [vmem:[%s1485_s28 + $0x1d0] ss:$8 sps:$4 sm:$0xff]  }
  0x25   : > { %710 = vmatpush1.bf16.msra.mxu0 %v1311_v9  ;;  %1286 = vmatpush1.bf16.msra.mxu1 %v1311_v9  ;;  %v1405_v9 = vld [vmem:[%s1485_s28 + $0xe4] ss:$8 sps:$4 sm:$0xff]  }
  0x26   : > { %711 = vmatprep.subr.bf16.mxu0 %v1425_v1  ;;  %1271 = vmatprep.subr.bf16.mxu1 %v1425_v1 }
  0x29   : > { %712 = vmatpush1.bf16.msra.mxu0 %v1312_v10  ;;  %1287 = vmatpush1.bf16.msra.mxu1 %v1312_v10  ;;  %v1407_v10 = vld [vmem:[%s1485_s28 + $0x1e4] ss:$8 sps:$4 sm:$0xff]  }
  0x2a   : > { %713 = vmatprep.subr.bf16.mxu0 %v1425_v1  ;;  %1272 = vmatprep.subr.bf16.mxu1 %v1425_v1 }
  0x2d   : > { %714 = vmatpush2.bf16.msra.mxu0 %v1313_v11  ;;  %1288 = vmatpush2.bf16.msra.mxu1 %v1313_v11  ;;  %v1409_v11 = vld [vmem:[%s1485_s28 + $0xe0] ss:$8 sps:$4 sm:$0xff]  }
  0x2e   : > { %715 = vmatprep.subr.bf16.mxu0 %v1425_v1  ;;  %1273 = vmatprep.subr.bf16.mxu1 %v1425_v1 }
  0x31   : > { %716 = vmatpush2.bf16.msra.mxu0 %v1314_v12  ;;  %1289 = vmatpush2.bf16.msra.mxu1 %v1314_v12  ;;  %v1410_v12 = vld [vmem:[%s1485_s28 + $0x1e0] ss:$8 sps:$4 sm:$0xff]  }
  0x32   : > { %717 = vmatprep.subr.bf16.mxu0 %v1425_v1  ;;  %1274 = vmatprep.subr.bf16.mxu1 %v1425_v1 }
  0x35   : > { %718 = vmatpush2.bf16.msra.mxu0 %v1315_v13  ;;  %1290 = vmatpush2.bf16.msra.mxu1 %v1315_v13  ;;  %v1411_v13 = vld [vmem:[%s1485_s28 + $0xf4] ss:$8 sps:$4 sm:$0xff]  }
  0x36   : > { %719 = vmatprep.subr.bf16.mxu0 %v1425_v1  ;;  %1275 = vmatprep.subr.bf16.mxu1 %v1425_v1 }
  0x39   : > { %720 = vmatpush2.bf16.msra.mxu0 %v1316_v14  ;;  %1291 = vmatpush2.bf16.msra.mxu1 %v1316_v14  ;;  %v1413_v14 = vld [vmem:[%s1485_s28 + $0x1f4] ss:$8 sps:$4 sm:$0xff]  }
  0x3a   : > { %721 = vmatprep.subr.bf16.mxu0 %v1425_v1  ;;  %1276 = vmatprep.subr.bf16.mxu1 %v1425_v1 }
  0x3d   : > { %722 = vmatpush2.bf16.msra.mxu0 %v1317_v15  ;;  %1292 = vmatpush2.bf16.msra.mxu1 %v1317_v15  ;;  %v1415_v15 = vld [vmem:[%s1485_s28 + $0xf0] ss:$8 sps:$4 sm:$0xff]  }
  0x3e   : > { %723 = vmatprep.subr.bf16.mxu0 %v1425_v1  ;;  %1277 = vmatprep.subr.bf16.mxu1 %v1425_v1 }
  0x41   : > { %724 = vmatpush2.bf16.msra.mxu0 %v1318_v16  ;;  %1293 = vmatpush2.bf16.msra.mxu1 %v1318_v16  ;;  %v1416_v16 = vld [vmem:[%s1485_s28 + $0x1f0] ss:$8 sps:$4 sm:$0xff]  }
  0x42   : > { %725 = vmatprep.subr.bf16.mxu0 %v1425_v1  ;;  %1278 = vmatprep.subr.bf16.mxu1 %v1425_v1 }
  0x45   : > { %726 = vmatpush2.bf16.msra.mxu0 %v1319_v17  ;;  %1294 = vmatpush2.bf16.msra.mxu1 %v1319_v17  ;;  %v1611_v17 = vld [vmem:[%s1753_s2] ss:$0 sm:$0xff] }
  0x46   : > { %727 = vmatprep.subr.bf16.mxu0 %v1425_v1  ;;  %1279 = vmatprep.subr.bf16.mxu1 %v1425_v1  ;;  %v1393_v1 = vld [vmem:[%s1485_s28 + $0xc4] ss:$8 sps:$4 sm:$0xff]  }
  0x49   : > { %728 = vmatpush2.bf16.msra.mxu0 %v1320_v18  ;;  %1295 = vmatpush2.bf16.msra.mxu1 %v1320_v18 }
  0x4c   : > { %730 = vmatmul.mubr.bf16.vlgmr.msra.gmra.mxu0 %v1321_v19  ;;  %858 = vmatmul.mubr.bf16.vlgmr.msra.gmra.mxu1 %v1324_v20 }
  0x4d   : > { %737 = vmatprep.mubr.bf16.mxu0 %v1327_v21  ;;  %865 = vmatprep.mubr.bf16.mxu1 %v1329_v22 }
  0x54   : > { %738 = vmatmul.mubr.bf16.gmra.mxu0 %v1331_v23  ;;  %866 = vmatmul.mubr.bf16.gmra.mxu1 %v1332_v24 }
  0x55   : > { %745 = vmatprep.mubr.bf16.mxu0 %v1333_v25  ;;  %873 = vmatprep.mubr.bf16.mxu1 %v1335_v26 }
  0x5c   : > { %746 = vmatmul.mubr.bf16.gmra.mxu0 %v1337_v27  ;;  %874 = vmatmul.mubr.bf16.gmra.mxu1 %v1338_v28 }
  0x5d   : > { %753 = vmatprep.mubr.bf16.mxu0 %v1339_v29  ;;  %881 = vmatprep.mubr.bf16.mxu1 %v1341_v30 }
  0x64   : > { %754 = vmatmul.mubr.bf16.gmra.mxu0 %v1343_v31  ;;  %882 = vmatmul.mubr.bf16.gmra.mxu1 %v1344_v32 }
  0x65   : > { %761 = vmatprep.mubr.bf16.mxu0 %v1345_v33  ;;  %889 = vmatprep.mubr.bf16.mxu1 %v1347_v34 }
  0x6c   : > { %762 = vmatmul.mubr.bf16.gmra.mxu0 %v1349_v35  ;;  %890 = vmatmul.mubr.bf16.gmra.mxu1 %v1350_v36 }
  0x6d   : > { %769 = vmatprep.mubr.bf16.mxu0 %v1351_v37  ;;  %897 = vmatprep.mubr.bf16.mxu1 %v1353_v38 }
  0x74   : > { %770 = vmatmul.mubr.bf16.gmra.mxu0 %v1355_v39  ;;  %898 = vmatmul.mubr.bf16.gmra.mxu1 %v1356_v40 }
  0x75   : > { %777 = vmatprep.mubr.bf16.mxu0 %v1357_v41  ;;  %905 = vmatprep.mubr.bf16.mxu1 %v1359_v42 }
  0x7c   : > { %778 = vmatmul.mubr.bf16.gmra.mxu0 %v1361_v43  ;;  %906 = vmatmul.mubr.bf16.gmra.mxu1 %v1362_v44 }
  0x7d   : > { %785 = vmatprep.mubr.bf16.mxu0 %v1363_v45  ;;  %913 = vmatprep.mubr.bf16.mxu1 %v1365_v46 }
  0x84   : > { %786 = vmatmul.mubr.bf16.gmra.mxu0 %v1367_v47  ;;  %914 = vmatmul.mubr.bf16.gmra.mxu1 %v1368_v48 }
  0x85   : > { %793 = vmatprep.mubr.bf16.mxu0 %v1369_v49  ;;  %921 = vmatprep.mubr.bf16.mxu1 %v1371_v50 }
  0x8c   : > { %794 = vmatmul.mubr.bf16.gmra.mxu0 %v1373_v51  ;;  %922 = vmatmul.mubr.bf16.gmra.mxu1 %v1374_v52 }
  0x8d   : > { %801 = vmatprep.mubr.bf16.mxu0 %v1375_v53  ;;  %929 = vmatprep.mubr.bf16.mxu1 %v1377_v54 }
  0x94   : > { %802 = vmatmul.mubr.bf16.gmra.mxu0 %v1379_v55  ;;  %930 = vmatmul.mubr.bf16.gmra.mxu1 %v1380_v56 }
  0x95   : > { %809 = vmatprep.mubr.bf16.mxu0 %v1381_v57  ;;  %937 = vmatprep.mubr.bf16.mxu1 %v1383_v58 }
  0x9c   : > { %810 = vmatmul.mubr.bf16.gmra.mxu0 %v1385_v59  ;;  %938 = vmatmul.mubr.bf16.gmra.mxu1 %v1386_v60 }
  0x9d   : > { %817 = vmatprep.mubr.bf16.mxu0 %v1387_v61  ;;  %945 = vmatprep.mubr.bf16.mxu1 %v1389_v62 }
  0xa4   : > { %818 = vmatmul.mubr.bf16.gmra.mxu0 %v1391_v63  ;;  %946 = vmatmul.mubr.bf16.gmra.mxu1 %v1392_v0 }
  0xa5   : > { %825 = vmatprep.mubr.bf16.mxu0 %v1393_v1  ;;  %953 = vmatprep.mubr.bf16.mxu1 %v1395_v2 }
  0xac   : > { %826 = vmatmul.mubr.bf16.gmra.mxu0 %v1397_v3  ;;  %954 = vmatmul.mubr.bf16.gmra.mxu1 %v1398_v4 }
  0xad   : > { %833 = vmatprep.mubr.bf16.mxu0 %v1399_v5  ;;  %961 = vmatprep.mubr.bf16.mxu1 %v1401_v6 }
  0xb4   : > { %834 = vmatmul.mubr.bf16.gmra.mxu0 %v1403_v7  ;;  %962 = vmatmul.mubr.bf16.gmra.mxu1 %v1404_v8 }
  0xb5   : > { %841 = vmatprep.mubr.bf16.mxu0 %v1405_v9  ;;  %969 = vmatprep.mubr.bf16.mxu1 %v1407_v10 }
  0xbc   : > { %842 = vmatmul.mubr.bf16.gmra.mxu0 %v1409_v11  ;;  %970 = vmatmul.mubr.bf16.gmra.mxu1 %v1410_v12 }
  0xbd   : > { %849 = vmatprep.mubr.bf16.mxu0 %v1411_v13  ;;  %977 = vmatprep.mubr.bf16.mxu1 %v1413_v14 }
  0xc4   : > { %850 = vmatmul.mubr.bf16.gmra.mxu0 %v1415_v15  ;;  %978 = vmatmul.mubr.bf16.gmra.mxu1 %v1416_v16 }
 0x10c   : > { %v731_v18 = vpop.f32.mrf.mxu0  ;;  %v859_v19 = vpop.f32.mrf.mxu1 }
 0x10d   : > { %v732_v20 = vadd.f32 %v1611_v17, %v731_v18  ;;  %v860_v21 = vadd.f32 %v1611_v17, %v859_v19 }
 0x10e   : > { %v733_v22 = vpop.f32.mrf.mxu0  ;;  %v861_v23 = vpop.f32.mrf.mxu1 }
 0x10f   : > { %v986_v24 = vmax.f32 %v732_v20, 0.0  ;;  %v1018_v25 = vmax.f32 %v860_v21, 0.0 }
 0x110   : > { %v734_v26 = vpop.f32.mrf.mxu0  ;;  %v862_v27 = vpop.f32.mrf.mxu1 }
 0x111   : > { %1050 = vst [vmem:[%s1620_s5] sm:$0xff] %v986_v24  ;;  %1082 = vst [vmem:[%s1620_s5 + $0x100] sm:$0xff] %v1018_v25  ;;  %v735_v28 = vadd.f32 %v1611_v17, %v734_v26  ;;  %v863_v29 = vadd.f32 %v1611_v17, %v862_v27 }
 0x112   : > { %v736_v30 = vpop.f32.mrf.mxu0  ;;  %v864_v31 = vpop.f32.mrf.mxu1 }
 0x113   : > { %v987_v32 = vmax.f32 %v735_v28, 0.0  ;;  %v1019_v33 = vmax.f32 %v863_v29, 0.0 }
 0x114   : > { %v739_v34 = vpop.f32.mrf.mxu0  ;;  %v867_v35 = vpop.f32.mrf.mxu1 }
 0x115   : > { %1051 = vst [vmem:[%s1620_s5 + $0x8] sm:$0xff] %v987_v32  ;;  %1083 = vst [vmem:[%s1620_s5 + $0x108] sm:$0xff] %v1019_v33  ;;  %v740_v36 = vadd.f32 %v1611_v17, %v739_v34  ;;  %v868_v37 = vadd.f32 %v1611_v17, %v867_v35 }
 0x116   : > { %v741_v38 = vpop.f32.mrf.mxu0  ;;  %v869_v39 = vpop.f32.mrf.mxu1 }
 0x117   : > { %v988_v40 = vmax.f32 %v740_v36, 0.0  ;;  %v1020_v41 = vmax.f32 %v868_v37, 0.0 }
 0x118   : > { %v742_v42 = vpop.f32.mrf.mxu0  ;;  %v870_v43 = vpop.f32.mrf.mxu1 }
 0x119   : > { %1052 = vst [vmem:[%s1620_s5 + $0x10] sm:$0xff] %v988_v40  ;;  %1084 = vst [vmem:[%s1620_s5 + $0x110] sm:$0xff] %v1020_v41  ;;  %v743_v44 = vadd.f32 %v1611_v17, %v742_v42  ;;  %v871_v45 = vadd.f32 %v1611_v17, %v870_v43 }
 0x11a   : > { %v744_v46 = vpop.f32.mrf.mxu0  ;;  %v872_v47 = vpop.f32.mrf.mxu1 }
 0x11b   : > { %v989_v48 = vmax.f32 %v743_v44, 0.0  ;;  %v1021_v49 = vmax.f32 %v871_v45, 0.0 }
 0x11c   : > { %v747_v50 = vpop.f32.mrf.mxu0  ;;  %v875_v51 = vpop.f32.mrf.mxu1 }
 0x11d   : > { %1053 = vst [vmem:[%s1620_s5 + $0x18] sm:$0xff] %v989_v48  ;;  %1085 = vst [vmem:[%s1620_s5 + $0x118] sm:$0xff] %v1021_v49  ;;  %v748_v52 = vadd.f32 %v1611_v17, %v747_v50  ;;  %v876_v53 = vadd.f32 %v1611_v17, %v875_v51 }
 0x11e   : > { %v749_v54 = vpop.f32.mrf.mxu0  ;;  %v877_v55 = vpop.f32.mrf.mxu1 }
 0x11f   : > { %v990_v56 = vmax.f32 %v748_v52, 0.0  ;;  %v1022_v57 = vmax.f32 %v876_v53, 0.0 }
 0x120   : > { %v750_v58 = vpop.f32.mrf.mxu0  ;;  %v878_v59 = vpop.f32.mrf.mxu1 }
 0x121   : > { %1054 = vst [vmem:[%s1620_s5 + $0x20] sm:$0xff] %v990_v56  ;;  %1086 = vst [vmem:[%s1620_s5 + $0x120] sm:$0xff] %v1022_v57  ;;  %v751_v60 = vadd.f32 %v1611_v17, %v750_v58  ;;  %v879_v61 = vadd.f32 %v1611_v17, %v878_v59 }
 0x122   : > { %v752_v62 = vpop.f32.mrf.mxu0  ;;  %v880_v63 = vpop.f32.mrf.mxu1 }
 0x123   : > { %v991_v0 = vmax.f32 %v751_v60, 0.0  ;;  %v1023_v1 = vmax.f32 %v879_v61, 0.0 }
 0x124   : > { %v755_v2 = vpop.f32.mrf.mxu0  ;;  %v883_v3 = vpop.f32.mrf.mxu1 }
 0x125   : > { %1055 = vst [vmem:[%s1620_s5 + $0x28] sm:$0xff] %v991_v0  ;;  %1087 = vst [vmem:[%s1620_s5 + $0x128] sm:$0xff] %v1023_v1  ;;  %v756_v4 = vadd.f32 %v1611_v17, %v755_v2  ;;  %v884_v5 = vadd.f32 %v1611_v17, %v883_v3 }
 0x126   : > { %v757_v6 = vpop.f32.mrf.mxu0  ;;  %v885_v7 = vpop.f32.mrf.mxu1 }
 0x127   : > { %v992_v8 = vmax.f32 %v756_v4, 0.0  ;;  %v1024_v9 = vmax.f32 %v884_v5, 0.0 }
 0x128   : > { %v758_v10 = vpop.f32.mrf.mxu0  ;;  %v886_v11 = vpop.f32.mrf.mxu1 }
 0x129   : > { %1056 = vst [vmem:[%s1620_s5 + $0x30] sm:$0xff] %v992_v8  ;;  %1088 = vst [vmem:[%s1620_s5 + $0x130] sm:$0xff] %v1024_v9  ;;  %v759_v12 = vadd.f32 %v1611_v17, %v758_v10  ;;  %v887_v13 = vadd.f32 %v1611_v17, %v886_v11 }
 0x12a   : > { %v760_v14 = vpop.f32.mrf.mxu0  ;;  %v888_v15 = vpop.f32.mrf.mxu1 }
 0x12b   : > { %v993_v16 = vmax.f32 %v759_v12, 0.0  ;;  %v1025_v18 = vmax.f32 %v887_v13, 0.0 }
 0x12c   : > { %v763_v19 = vpop.f32.mrf.mxu0  ;;  %v891_v20 = vpop.f32.mrf.mxu1 }
 0x12d   : > { %1057 = vst [vmem:[%s1620_s5 + $0x38] sm:$0xff] %v993_v16  ;;  %1089 = vst [vmem:[%s1620_s5 + $0x138] sm:$0xff] %v1025_v18  ;;  %v764_v21 = vadd.f32 %v1611_v17, %v763_v19  ;;  %v892_v22 = vadd.f32 %v1611_v17, %v891_v20 }
 0x12e   : > { %v765_v23 = vpop.f32.mrf.mxu0  ;;  %v893_v24 = vpop.f32.mrf.mxu1 }
 0x12f   : > { %v994_v25 = vmax.f32 %v764_v21, 0.0  ;;  %v1026_v26 = vmax.f32 %v892_v22, 0.0 }
 0x130   : > { %v766_v27 = vpop.f32.mrf.mxu0  ;;  %v894_v28 = vpop.f32.mrf.mxu1 }
 0x131   : > { %1058 = vst [vmem:[%s1620_s5 + $0x40] sm:$0xff] %v994_v25  ;;  %1090 = vst [vmem:[%s1620_s5 + $0x140] sm:$0xff] %v1026_v26  ;;  %v767_v29 = vadd.f32 %v1611_v17, %v766_v27  ;;  %v895_v30 = vadd.f32 %v1611_v17, %v894_v28 }
 0x132   : > { %v768_v31 = vpop.f32.mrf.mxu0  ;;  %v896_v32 = vpop.f32.mrf.mxu1 }
 0x133   : > { %v995_v33 = vmax.f32 %v767_v29, 0.0  ;;  %v1027_v34 = vmax.f32 %v895_v30, 0.0 }
 0x134   : > { %v771_v35 = vpop.f32.mrf.mxu0  ;;  %v899_v36 = vpop.f32.mrf.mxu1 }
 0x135   : > { %1059 = vst [vmem:[%s1620_s5 + $0x48] sm:$0xff] %v995_v33  ;;  %1091 = vst [vmem:[%s1620_s5 + $0x148] sm:$0xff] %v1027_v34  ;;  %v772_v37 = vadd.f32 %v1611_v17, %v771_v35  ;;  %v900_v38 = vadd.f32 %v1611_v17, %v899_v36 }
 0x136   : > { %v773_v39 = vpop.f32.mrf.mxu0  ;;  %v901_v40 = vpop.f32.mrf.mxu1 }
 0x137   : > { %v996_v41 = vmax.f32 %v772_v37, 0.0  ;;  %v1028_v42 = vmax.f32 %v900_v38, 0.0 }
 0x138   : > { %v774_v43 = vpop.f32.mrf.mxu0  ;;  %v902_v44 = vpop.f32.mrf.mxu1 }
 0x139   : > { %1060 = vst [vmem:[%s1620_s5 + $0x50] sm:$0xff] %v996_v41  ;;  %1092 = vst [vmem:[%s1620_s5 + $0x150] sm:$0xff] %v1028_v42  ;;  %v775_v45 = vadd.f32 %v1611_v17, %v774_v43  ;;  %v903_v46 = vadd.f32 %v1611_v17, %v902_v44 }
 0x13a   : > { %v776_v47 = vpop.f32.mrf.mxu0  ;;  %v904_v48 = vpop.f32.mrf.mxu1 }
 0x13b   : > { %v997_v49 = vmax.f32 %v775_v45, 0.0  ;;  %v1029_v50 = vmax.f32 %v903_v46, 0.0 }
 0x13c   : > { %v779_v51 = vpop.f32.mrf.mxu0  ;;  %v907_v52 = vpop.f32.mrf.mxu1 }
 0x13d   : > { %1061 = vst [vmem:[%s1620_s5 + $0x58] sm:$0xff] %v997_v49  ;;  %1093 = vst [vmem:[%s1620_s5 + $0x158] sm:$0xff] %v1029_v50  ;;  %v780_v53 = vadd.f32 %v1611_v17, %v779_v51  ;;  %v908_v54 = vadd.f32 %v1611_v17, %v907_v52 }
 0x13e   : > { %v781_v55 = vpop.f32.mrf.mxu0  ;;  %v909_v56 = vpop.f32.mrf.mxu1 }
 0x13f   : > { %v998_v57 = vmax.f32 %v780_v53, 0.0  ;;  %v1030_v58 = vmax.f32 %v908_v54, 0.0 }
 0x140   : > { %v782_v59 = vpop.f32.mrf.mxu0  ;;  %v910_v60 = vpop.f32.mrf.mxu1 }
 0x141   : > { %1062 = vst [vmem:[%s1620_s5 + $0x60] sm:$0xff] %v998_v57  ;;  %1094 = vst [vmem:[%s1620_s5 + $0x160] sm:$0xff] %v1030_v58  ;;  %v783_v61 = vadd.f32 %v1611_v17, %v782_v59  ;;  %v911_v62 = vadd.f32 %v1611_v17, %v910_v60 }
 0x142   : > { %v784_v63 = vpop.f32.mrf.mxu0  ;;  %v912_v0 = vpop.f32.mrf.mxu1 }
 0x143   : > { %v999_v1 = vmax.f32 %v783_v61, 0.0  ;;  %v1031_v2 = vmax.f32 %v911_v62, 0.0 }
 0x144   : > { %v787_v3 = vpop.f32.mrf.mxu0  ;;  %v915_v4 = vpop.f32.mrf.mxu1 }
 0x145   : > { %1063 = vst [vmem:[%s1620_s5 + $0x68] sm:$0xff] %v999_v1  ;;  %1095 = vst [vmem:[%s1620_s5 + $0x168] sm:$0xff] %v1031_v2  ;;  %v788_v5 = vadd.f32 %v1611_v17, %v787_v3  ;;  %v916_v6 = vadd.f32 %v1611_v17, %v915_v4 }
 0x146   : > { %v789_v7 = vpop.f32.mrf.mxu0  ;;  %v917_v8 = vpop.f32.mrf.mxu1 }
 0x147   : > { %v1000_v9 = vmax.f32 %v788_v5, 0.0  ;;  %v1032_v10 = vmax.f32 %v916_v6, 0.0 }
 0x148   : > { %v790_v11 = vpop.f32.mrf.mxu0  ;;  %v918_v12 = vpop.f32.mrf.mxu1 }
 0x149   : > { %1064 = vst [vmem:[%s1620_s5 + $0x70] sm:$0xff] %v1000_v9  ;;  %1096 = vst [vmem:[%s1620_s5 + $0x170] sm:$0xff] %v1032_v10  ;;  %v791_v13 = vadd.f32 %v1611_v17, %v790_v11  ;;  %v919_v14 = vadd.f32 %v1611_v17, %v918_v12 }
 0x14a   : > { %v792_v15 = vpop.f32.mrf.mxu0  ;;  %v920_v16 = vpop.f32.mrf.mxu1 }
 0x14b   : > { %v1001_v18 = vmax.f32 %v791_v13, 0.0  ;;  %v1033_v19 = vmax.f32 %v919_v14, 0.0 }
 0x14c   : > { %v795_v20 = vpop.f32.mrf.mxu0  ;;  %v923_v21 = vpop.f32.mrf.mxu1 }
 0x14d   : > { %1065 = vst [vmem:[%s1620_s5 + $0x78] sm:$0xff] %v1001_v18  ;;  %1097 = vst [vmem:[%s1620_s5 + $0x178] sm:$0xff] %v1033_v19  ;;  %v796_v22 = vadd.f32 %v1611_v17, %v795_v20  ;;  %v924_v23 = vadd.f32 %v1611_v17, %v923_v21 }
 0x14e   : > { %v797_v24 = vpop.f32.mrf.mxu0  ;;  %v925_v25 = vpop.f32.mrf.mxu1 }
 0x14f   : > { %v1002_v26 = vmax.f32 %v796_v22, 0.0  ;;  %v1034_v27 = vmax.f32 %v924_v23, 0.0 }
 0x150   : > { %v798_v28 = vpop.f32.mrf.mxu0  ;;  %v926_v29 = vpop.f32.mrf.mxu1 }
 0x151   : > { %1066 = vst [vmem:[%s1620_s5 + $0x80] sm:$0xff] %v1002_v26  ;;  %1098 = vst [vmem:[%s1620_s5 + $0x180] sm:$0xff] %v1034_v27  ;;  %v799_v30 = vadd.f32 %v1611_v17, %v798_v28  ;;  %v927_v31 = vadd.f32 %v1611_v17, %v926_v29 }
 0x152   : > { %v800_v32 = vpop.f32.mrf.mxu0  ;;  %v928_v33 = vpop.f32.mrf.mxu1 }
 0x153   : > { %v1003_v34 = vmax.f32 %v799_v30, 0.0  ;;  %v1035_v35 = vmax.f32 %v927_v31, 0.0 }
 0x154   : > { %v803_v36 = vpop.f32.mrf.mxu0  ;;  %v931_v37 = vpop.f32.mrf.mxu1 }
 0x155   : > { %1067 = vst [vmem:[%s1620_s5 + $0x88] sm:$0xff] %v1003_v34  ;;  %1099 = vst [vmem:[%s1620_s5 + $0x188] sm:$0xff] %v1035_v35  ;;  %v804_v38 = vadd.f32 %v1611_v17, %v803_v36  ;;  %v932_v39 = vadd.f32 %v1611_v17, %v931_v37 }
 0x156   : > { %v805_v40 = vpop.f32.mrf.mxu0  ;;  %v933_v41 = vpop.f32.mrf.mxu1 }
 0x157   : > { %v1004_v42 = vmax.f32 %v804_v38, 0.0  ;;  %v1036_v43 = vmax.f32 %v932_v39, 0.0 }
 0x158   : > { %v806_v44 = vpop.f32.mrf.mxu0  ;;  %v934_v45 = vpop.f32.mrf.mxu1 }
 0x159   : > { %1068 = vst [vmem:[%s1620_s5 + $0x90] sm:$0xff] %v1004_v42  ;;  %1100 = vst [vmem:[%s1620_s5 + $0x190] sm:$0xff] %v1036_v43  ;;  %v807_v46 = vadd.f32 %v1611_v17, %v806_v44  ;;  %v935_v47 = vadd.f32 %v1611_v17, %v934_v45 }
 0x15a   : > { %v808_v48 = vpop.f32.mrf.mxu0  ;;  %v936_v49 = vpop.f32.mrf.mxu1 }
 0x15b   : > { %v1005_v50 = vmax.f32 %v807_v46, 0.0  ;;  %v1037_v51 = vmax.f32 %v935_v47, 0.0 }
 0x15c   : > { %v811_v52 = vpop.f32.mrf.mxu0  ;;  %v939_v53 = vpop.f32.mrf.mxu1 }
 0x15d   : > { %1069 = vst [vmem:[%s1620_s5 + $0x98] sm:$0xff] %v1005_v50  ;;  %1101 = vst [vmem:[%s1620_s5 + $0x198] sm:$0xff] %v1037_v51  ;;  %v812_v54 = vadd.f32 %v1611_v17, %v811_v52  ;;  %v940_v55 = vadd.f32 %v1611_v17, %v939_v53 }
 0x15e   : > { %v813_v56 = vpop.f32.mrf.mxu0  ;;  %v941_v57 = vpop.f32.mrf.mxu1 }
 0x15f   : > { %v1006_v58 = vmax.f32 %v812_v54, 0.0  ;;  %v1038_v59 = vmax.f32 %v940_v55, 0.0 }
 0x160   : > { %v814_v60 = vpop.f32.mrf.mxu0  ;;  %v942_v61 = vpop.f32.mrf.mxu1 }
 0x161   : > { %1070 = vst [vmem:[%s1620_s5 + $0xa0] sm:$0xff] %v1006_v58  ;;  %1102 = vst [vmem:[%s1620_s5 + $0x1a0] sm:$0xff] %v1038_v59  ;;  %v815_v62 = vadd.f32 %v1611_v17, %v814_v60  ;;  %v943_v63 = vadd.f32 %v1611_v17, %v942_v61 }
 0x162   : > { %v816_v0 = vpop.f32.mrf.mxu0  ;;  %v944_v1 = vpop.f32.mrf.mxu1 }
 0x163   : > { %v1007_v2 = vmax.f32 %v815_v62, 0.0  ;;  %v1039_v3 = vmax.f32 %v943_v63, 0.0 }
 0x164   : > { %v819_v4 = vpop.f32.mrf.mxu0  ;;  %v947_v5 = vpop.f32.mrf.mxu1 }
 0x165   : > { %1071 = vst [vmem:[%s1620_s5 + $0xa8] sm:$0xff] %v1007_v2  ;;  %1103 = vst [vmem:[%s1620_s5 + $0x1a8] sm:$0xff] %v1039_v3  ;;  %v820_v6 = vadd.f32 %v1611_v17, %v819_v4  ;;  %v948_v7 = vadd.f32 %v1611_v17, %v947_v5 }
 0x166   : > { %v821_v8 = vpop.f32.mrf.mxu0  ;;  %v949_v9 = vpop.f32.mrf.mxu1 }
 0x167   : > { %v1008_v10 = vmax.f32 %v820_v6, 0.0  ;;  %v1040_v11 = vmax.f32 %v948_v7, 0.0 }
 0x168   : > { %v822_v12 = vpop.f32.mrf.mxu0  ;;  %v950_v13 = vpop.f32.mrf.mxu1 }
 0x169   : > { %1072 = vst [vmem:[%s1620_s5 + $0xb0] sm:$0xff] %v1008_v10  ;;  %1104 = vst [vmem:[%s1620_s5 + $0x1b0] sm:$0xff] %v1040_v11  ;;  %v823_v14 = vadd.f32 %v1611_v17, %v822_v12  ;;  %v951_v15 = vadd.f32 %v1611_v17, %v950_v13 }
 0x16a   : > { %v824_v16 = vpop.f32.mrf.mxu0  ;;  %v952_v18 = vpop.f32.mrf.mxu1 }
 0x16b   : > { %v1009_v19 = vmax.f32 %v823_v14, 0.0  ;;  %v1041_v20 = vmax.f32 %v951_v15, 0.0 }
 0x16c   : > { %v827_v21 = vpop.f32.mrf.mxu0  ;;  %v955_v22 = vpop.f32.mrf.mxu1 }
 0x16d   : > { %1073 = vst [vmem:[%s1620_s5 + $0xb8] sm:$0xff] %v1009_v19  ;;  %1105 = vst [vmem:[%s1620_s5 + $0x1b8] sm:$0xff] %v1041_v20  ;;  %v828_v23 = vadd.f32 %v1611_v17, %v827_v21  ;;  %v956_v24 = vadd.f32 %v1611_v17, %v955_v22 }
 0x16e   : > { %v829_v25 = vpop.f32.mrf.mxu0  ;;  %v957_v26 = vpop.f32.mrf.mxu1 }
 0x16f   : > { %v1010_v27 = vmax.f32 %v828_v23, 0.0  ;;  %v1042_v28 = vmax.f32 %v956_v24, 0.0 }
 0x170   : > { %v830_v29 = vpop.f32.mrf.mxu0  ;;  %v958_v30 = vpop.f32.mrf.mxu1 }
 0x171   : > { %1074 = vst [vmem:[%s1620_s5 + $0xc0] sm:$0xff] %v1010_v27  ;;  %1106 = vst [vmem:[%s1620_s5 + $0x1c0] sm:$0xff] %v1042_v28  ;;  %v831_v31 = vadd.f32 %v1611_v17, %v830_v29  ;;  %v959_v32 = vadd.f32 %v1611_v17, %v958_v30 }
 0x172   : > { %v832_v33 = vpop.f32.mrf.mxu0  ;;  %v960_v34 = vpop.f32.mrf.mxu1 }
 0x173   : > { %v1011_v35 = vmax.f32 %v831_v31, 0.0  ;;  %v1043_v36 = vmax.f32 %v959_v32, 0.0 }
 0x174   : > { %v835_v37 = vpop.f32.mrf.mxu0  ;;  %v963_v38 = vpop.f32.mrf.mxu1 }
 0x175   : > { %1075 = vst [vmem:[%s1620_s5 + $0xc8] sm:$0xff] %v1011_v35  ;;  %1107 = vst [vmem:[%s1620_s5 + $0x1c8] sm:$0xff] %v1043_v36  ;;  %v836_v39 = vadd.f32 %v1611_v17, %v835_v37  ;;  %v964_v40 = vadd.f32 %v1611_v17, %v963_v38 }
 0x176   : > { %v837_v41 = vpop.f32.mrf.mxu0  ;;  %v965_v42 = vpop.f32.mrf.mxu1 }
 0x177   : > { %v1012_v43 = vmax.f32 %v836_v39, 0.0  ;;  %v1044_v44 = vmax.f32 %v964_v40, 0.0 }
 0x178   : > { %v838_v45 = vpop.f32.mrf.mxu0  ;;  %v966_v46 = vpop.f32.mrf.mxu1 }
 0x179   : > { %1076 = vst [vmem:[%s1620_s5 + $0xd0] sm:$0xff] %v1012_v43  ;;  %1108 = vst [vmem:[%s1620_s5 + $0x1d0] sm:$0xff] %v1044_v44  ;;  %v839_v47 = vadd.f32 %v1611_v17, %v838_v45  ;;  %v967_v48 = vadd.f32 %v1611_v17, %v966_v46 }
 0x17a   : > { %v840_v49 = vpop.f32.mrf.mxu0  ;;  %v968_v50 = vpop.f32.mrf.mxu1 }
 0x17b   : > { %v1013_v51 = vmax.f32 %v839_v47, 0.0  ;;  %v1045_v52 = vmax.f32 %v967_v48, 0.0 }
 0x17c   : > { %v843_v53 = vpop.f32.mrf.mxu0  ;;  %v971_v54 = vpop.f32.mrf.mxu1 }
 0x17d   : > { %1077 = vst [vmem:[%s1620_s5 + $0xd8] sm:$0xff] %v1013_v51  ;;  %1109 = vst [vmem:[%s1620_s5 + $0x1d8] sm:$0xff] %v1045_v52  ;;  %v844_v55 = vadd.f32 %v1611_v17, %v843_v53  ;;  %v972_v56 = vadd.f32 %v1611_v17, %v971_v54 }
 0x17e   : > { %v845_v57 = vpop.f32.mrf.mxu0  ;;  %v973_v58 = vpop.f32.mrf.mxu1 }
 0x17f   : > { %v1014_v59 = vmax.f32 %v844_v55, 0.0  ;;  %v1046_v60 = vmax.f32 %v972_v56, 0.0 }
 0x180   : > { %v846_v61 = vpop.f32.mrf.mxu0  ;;  %v974_v62 = vpop.f32.mrf.mxu1 }
 0x181   : > { %1078 = vst [vmem:[%s1620_s5 + $0xe0] sm:$0xff] %v1014_v59  ;;  %1110 = vst [vmem:[%s1620_s5 + $0x1e0] sm:$0xff] %v1046_v60  ;;  %v847_v63 = vadd.f32 %v1611_v17, %v846_v61  ;;  %v975_v0 = vadd.f32 %v1611_v17, %v974_v62 }
 0x182   : > { %v848_v1 = vpop.f32.mrf.mxu0  ;;  %v976_v2 = vpop.f32.mrf.mxu1 }
 0x183   : > { %v1015_v3 = vmax.f32 %v847_v63, 0.0  ;;  %v1047_v4 = vmax.f32 %v975_v0, 0.0 }
 0x184   : > { %v851_v5 = vpop.f32.mrf.mxu0  ;;  %v979_v6 = vpop.f32.mrf.mxu1 }
 0x185   : > { %1079 = vst [vmem:[%s1620_s5 + $0xe8] sm:$0xff] %v1015_v3  ;;  %1111 = vst [vmem:[%s1620_s5 + $0x1e8] sm:$0xff] %v1047_v4  ;;  %v852_v7 = vadd.f32 %v1611_v17, %v851_v5  ;;  %v980_v8 = vadd.f32 %v1611_v17, %v979_v6 }
 0x186   : > { %v853_v9 = vpop.f32.mrf.mxu0  ;;  %v981_v10 = vpop.f32.mrf.mxu1 }
 0x187   : > { %v1016_v11 = vmax.f32 %v852_v7, 0.0  ;;  %v1048_v12 = vmax.f32 %v980_v8, 0.0 }
 0x188   : > { %v854_v13 = vpop.f32.mrf.mxu0  ;;  %v982_v14 = vpop.f32.mrf.mxu1 }
 0x189   : > { %1080 = vst [vmem:[%s1620_s5 + $0xf0] sm:$0xff] %v1016_v11  ;;  %1112 = vst [vmem:[%s1620_s5 + $0x1f0] sm:$0xff] %v1048_v12  ;;  %v855_v15 = vadd.f32 %v1611_v17, %v854_v13  ;;  %v983_v16 = vadd.f32 %v1611_v17, %v982_v14 }
 0x18a   : > { %v856_v18 = vpop.f32.mrf.mxu0  ;;  %v984_v19 = vpop.f32.mrf.mxu1 }
 0x18b   : > { %v1017_v20 = vmax.f32 %v855_v15, 0.0  ;;  %v1049_v21 = vmax.f32 %v983_v16, 0.0 }
 0x18d   : > { %1081 = vst [vmem:[%s1620_s5 + $0xf8] sm:$0xff] %v1017_v20  ;;  %1113 = vst [vmem:[%s1620_s5 + $0x1f8] sm:$0xff] %v1049_v21 }
 0x18e PF: > { %s13_s12 = sadd.s32 1, %s1423_s12  }
 0x18f   : > { %p10_p4 = scmp.ge.s32.totalorder %s13_s12, 4  }
 0x191   :  { %12 = sbr.rel (!%p10_p4) target bundleno = 1 (0x1), region = 62 }

// kernel: decoder_forward.5
= control target key start
LH: loop header
LB: loop body
LE: loop exit
PB: predicated region body
PF: predicated region fallthrough
CT: control target
= control target key end

     0   :  { %s3385_s12 = smov 0   ;;  %s4340_s0 = inlined_call_operand.vmem [shape: bf16[8192,128], index: 0, kind: input, shape index: {}]   ;;  %s4341_s1 = inlined_call_operand.vmem [shape: bf16[128,8], index: 1, kind: input, shape index: {}]   ;;  %s4342_s2 = inlined_call_operand.vmem [shape: f32[1,8], index: 2, kind: input, shape index: {}]   ;;  %s4343_s3 = inlined_call_operand.vmem [shape: f32[8192,8], index: 3, kind: output, shape index: {}]  }
   0x1 LB: > { %s2640_s13 = sadd.s32 4294967295, %s3363_s12   ;;  %p2644_p0 = scmp.ge.s32.totalorder %s3363_s12, 1  ;;  %s3363_s12 = sphi %s3385_s12, %s13_s12  }
   0x2   : > { %p138_p1 = scmp.lt.s32.totalorder %s3363_s12, 5 }
   0x4   : > { %p139_p2 = pnand %p2644_p0, %p138_p1 }
   0x5   : > { %s2645_s16 = sshll.u32 (!%p139_p2), %s2640_s13, 8 }
   0x6   : > { %142 = sbr.rel (%p139_p2) target bundleno = 494 (0x1ee), region = 32  ;;  %p163_p3 = scmp.lt.s32.totalorder (!%p139_p2), %s2645_s16, 1023 }
   0xb   : > { %v3220_v0 = vld [vmem:[%s4341_s1 + $0x38] sm:$0xff]   ;;  %v3221_v1 = vld [vmem:[%s4341_s1 + $0x30] sm:$0xff]   ;;  %s4345_s16 = smov (!%p163_p3, %s2645_s16), 1023  ;;  %v3222_v2 = vld [vmem:[%s4341_s1 + $0x28] sm:$0xff]   ;;  %vm2327_vm0 = vcmask 64512  }
   0xc   : > { %2924 = vmatprep.subr.bf16.mxu0 %v3220_v0  ;;  %3196 = vmatprep.subr.bf16.mxu1 %v3220_v0  ;;  %s2646_s21 = sshll.u32 %s4345_s16, 2  ;;  %v3223_v3 = vld [vmem:[%s4341_s1 + $0x20] sm:$0xff]   ;;  %v3224_v6 = vld [vmem:[%s4341_s1 + $0x18] sm:$0xff]   ;;  %v3225_v7 = vld [vmem:[%s4341_s1 + $0x10] sm:$0xff]   ;;  %s2648_s8 = sshll.u32 %s4345_s16, 3 }
   0xd   : > { %2925 = vmatpush3.bf16.msra.mxu0 %v3220_v0  ;;  %3204 = vmatpush3.bf16.msra.mxu1 %v3220_v0  ;;  %s3408_s24 = scalar_lea.vmem %s4340_s0, %s2646_s21  ;;  %v3226_v8 = vld [vmem:[%s4341_s1 + $0x8] sm:$0xff]   ;;  %v3227_v9 = vld [vmem:[%s4341_s1] sm:$0xff]   ;;  %s3536_s14 = scalar_lea.vmem %s4343_s3, %s2648_s8 }
   0xe   : > { %2926 = vmatprep.subr.bf16.mxu0 %v3221_v1  ;;  %3197 = vmatprep.subr.bf16.mxu1 %v3221_v1  ;;  %v3228_v4 = vld [vmem:[%s3408_s24] sm:$0xff]   ;;  %v3230_v10 = vld [vmem:[%s3408_s24 + $0x8] sm:$0xff]   ;;  %v3232_v12 = vld [vmem:[%s3408_s24 + $0x10] sm:$0xff]  }
   0xf   : > { %v3229_v5 = vld [vmem:[%s3408_s24 + $0x200] sm:$0xff]   ;;  %2940 = vmatprep.mubr.bf16.mxu0 %v3228_v4  ;;  %v3231_v11 = vld [vmem:[%s3408_s24 + $0x208] sm:$0xff]   ;;  %v3233_v13 = vld [vmem:[%s3408_s24 + $0x210] sm:$0xff]  }
  0x10   : > { %3068 = vmatprep.mubr.bf16.mxu1 %v3229_v5  ;;  %v3234_v14 = vld [vmem:[%s3408_s24 + $0x18] sm:$0xff]   ;;  %v3236_v16 = vld [vmem:[%s3408_s24 + $0x20] sm:$0xff]   ;;  %v3238_v18 = vld [vmem:[%s3408_s24 + $0x28] sm:$0xff]  }
  0x11   : > { %2927 = vmatpush3.bf16.msra.mxu0 %v3221_v1  ;;  %3205 = vmatpush3.bf16.msra.mxu1 %v3221_v1  ;;  %v3235_v15 = vld [vmem:[%s3408_s24 + $0x218] sm:$0xff]   ;;  %v3237_v17 = vld [vmem:[%s3408_s24 + $0x220] sm:$0xff]   ;;  %v3239_v19 = vld [vmem:[%s3408_s24 + $0x228] sm:$0xff]  }
  0x12   : > { %2928 = vmatprep.subr.bf16.mxu0 %v3222_v2  ;;  %3198 = vmatprep.subr.bf16.mxu1 %v3222_v2  ;;  %v3240_v20 = vld [vmem:[%s3408_s24 + $0x30] sm:$0xff]   ;;  %v3242_v22 = vld [vmem:[%s3408_s24 + $0x38] sm:$0xff]   ;;  %v3244_v24 = vld [vmem:[%s3408_s24 + $0x40] sm:$0xff]  }
  0x13   : > { %v3241_v21 = vld [vmem:[%s3408_s24 + $0x230] sm:$0xff]   ;;  %v3243_v23 = vld [vmem:[%s3408_s24 + $0x238] sm:$0xff]   ;;  %v3245_v25 = vld [vmem:[%s3408_s24 + $0x240] sm:$0xff]  }
  0x14   : > { %v3246_v26 = vld [vmem:[%s3408_s24 + $0x48] sm:$0xff]   ;;  %v3248_v28 = vld [vmem:[%s3408_s24 + $0x50] sm:$0xff]   ;;  %v3250_v30 = vld [vmem:[%s3408_s24 + $0x58] sm:$0xff]  }
  0x15   : > { %2929 = vmatpush3.bf16.msra.mxu0 %v3222_v2  ;;  %3206 = vmatpush3.bf16.msra.mxu1 %v3222_v2  ;;  %v3247_v27 = vld [vmem:[%s3408_s24 + $0x248] sm:$0xff]   ;;  %v3249_v29 = vld [vmem:[%s3408_s24 + $0x250] sm:$0xff]   ;;  %v3251_v31 = vld [vmem:[%s3408_s24 + $0x258] sm:$0xff]  }
  0x16   : > { %2930 = vmatprep.subr.bf16.mxu0 %v3223_v3  ;;  %3199 = vmatprep.subr.bf16.mxu1 %v3223_v3  ;;  %v3252_v32 = vld [vmem:[%s3408_s24 + $0x60] sm:$0xff]   ;;  %v3254_v34 = vld [vmem:[%s3408_s24 + $0x68] sm:$0xff]   ;;  %v3256_v36 = vld [vmem:[%s3408_s24 + $0x70] sm:$0xff]  }
  0x17   : > { %v3253_v33 = vld [vmem:[%s3408_s24 + $0x260] sm:$0xff]   ;;  %v3255_v35 = vld [vmem:[%s3408_s24 + $0x268] sm:$0xff]   ;;  %v3257_v37 = vld [vmem:[%s3408_s24 + $0x270] sm:$0xff]  }
  0x18   : > { %v3258_v38 = vld [vmem:[%s3408_s24 + $0x78] sm:$0xff]   ;;  %v3260_v40 = vld [vmem:[%s3408_s24 + $0x80] sm:$0xff]   ;;  %v3262_v42 = vld [vmem:[%s3408_s24 + $0x88] sm:$0xff]  }
  0x19   : > { %2931 = vmatpush3.bf16.msra.mxu0 %v3223_v3  ;;  %3207 = vmatpush3.bf16.msra.mxu1 %v3223_v3  ;;  %v3259_v39 = vld [vmem:[%s3408_s24 + $0x278] sm:$0xff]   ;;  %v3261_v41 = vld [vmem:[%s3408_s24 + $0x280] sm:$0xff]   ;;  %v3263_v43 = vld [vmem:[%s3408_s24 + $0x288] sm:$0xff]  }
  0x1a   : > { %2932 = vmatprep.subr.bf16.mxu0 %v3224_v6  ;;  %3200 = vmatprep.subr.bf16.mxu1 %v3224_v6  ;;  %v3264_v44 = vld [vmem:[%s3408_s24 + $0x90] sm:$0xff]   ;;  %v3266_v46 = vld [vmem:[%s3408_s24 + $0x98] sm:$0xff]   ;;  %v3268_v48 = vld [vmem:[%s3408_s24 + $0xa0] sm:$0xff]  }
  0x1b   : > { %v3265_v45 = vld [vmem:[%s3408_s24 + $0x290] sm:$0xff]   ;;  %v3267_v47 = vld [vmem:[%s3408_s24 + $0x298] sm:$0xff]   ;;  %v3269_v49 = vld [vmem:[%s3408_s24 + $0x2a0] sm:$0xff]  }
  0x1c   : > { %v3270_v50 = vld [vmem:[%s3408_s24 + $0xa8] sm:$0xff]   ;;  %v3272_v52 = vld [vmem:[%s3408_s24 + $0xb0] sm:$0xff]   ;;  %v3274_v54 = vld [vmem:[%s3408_s24 + $0xb8] sm:$0xff]  }
  0x1d   : > { %2933 = vmatpush3.bf16.msra.mxu0 %v3224_v6  ;;  %3208 = vmatpush3.bf16.msra.mxu1 %v3224_v6  ;;  %v3271_v51 = vld [vmem:[%s3408_s24 + $0x2a8] sm:$0xff]   ;;  %v3273_v53 = vld [vmem:[%s3408_s24 + $0x2b0] sm:$0xff]   ;;  %v3275_v55 = vld [vmem:[%s3408_s24 + $0x2b8] sm:$0xff]  }
  0x1e   : > { %2934 = vmatprep.subr.bf16.mxu0 %v3225_v7  ;;  %3201 = vmatprep.subr.bf16.mxu1 %v3225_v7  ;;  %v3276_v56 = vld [vmem:[%s3408_s24 + $0xc0] sm:$0xff]   ;;  %v3278_v58 = vld [vmem:[%s3408_s24 + $0xc8] sm:$0xff]   ;;  %v3280_v60 = vld [vmem:[%s3408_s24 + $0xd0] sm:$0xff]  }
  0x1f   : > { %v3277_v57 = vld [vmem:[%s3408_s24 + $0x2c0] sm:$0xff]   ;;  %v3279_v59 = vld [vmem:[%s3408_s24 + $0x2c8] sm:$0xff]   ;;  %v3281_v61 = vld [vmem:[%s3408_s24 + $0x2d0] sm:$0xff]  }
  0x20   : > { %v3282_v62 = vld [vmem:[%s3408_s24 + $0xd8] sm:$0xff]   ;;  %v3284_v0 = vld [vmem:[%s3408_s24 + $0xe0] sm:$0xff]   ;;  %v3286_v2 = vld [vmem:[%s3408_s24 + $0xe8] sm:$0xff]  }
  0x21   : > { %2935 = vmatpush3.bf16.msra.mxu0 %v3225_v7  ;;  %3209 = vmatpush3.bf16.msra.mxu1 %v3225_v7  ;;  %v3283_v63 = vld [vmem:[%s3408_s24 + $0x2d8] sm:$0xff]   ;;  %v3285_v1 = vld [vmem:[%s3408_s24 + $0x2e0] sm:$0xff]   ;;  %v3287_v3 = vld [vmem:[%s3408_s24 + $0x2e8] sm:$0xff]  }
  0x22   : > { %2936 = vmatprep.subr.bf16.mxu0 %v3226_v8  ;;  %3202 = vmatprep.subr.bf16.mxu1 %v3226_v8  ;;  %v3288_v4 = vld [vmem:[%s3408_s24 + $0xf0] sm:$0xff]   ;;  %v3290_v6 = vld [vmem:[%s3408_s24 + $0xf8] sm:$0xff]  }
  0x23   : > { %v3289_v5 = vld [vmem:[%s3408_s24 + $0x2f0] sm:$0xff]   ;;  %v3291_v7 = vld [vmem:[%s3408_s24 + $0x2f8] sm:$0xff]  }
  0x25   : > { %2937 = vmatpush3.bf16.msra.mxu0 %v3226_v8  ;;  %3210 = vmatpush3.bf16.msra.mxu1 %v3226_v8  ;;  %v3292_v8 = vld [vmem:[%s3408_s24 + $0x100] sm:$0xff]  }
  0x26   : > { %2938 = vmatprep.subr.bf16.mxu0 %v3227_v9  ;;  %3203 = vmatprep.subr.bf16.mxu1 %v3227_v9 }
  0x29   : > { %2939 = vmatpush3.bf16.msra.mxu0 %v3227_v9  ;;  %3211 = vmatpush3.bf16.msra.mxu1 %v3227_v9  ;;  %v3293_v9 = vld [vmem:[%s3408_s24 + $0x300] sm:$0xff]  }
  0x2c   : > { %2941 = vmatmul.mubr.bf16.vlgmr.msra.gmra.mxu0 %v3230_v10  ;;  %3069 = vmatmul.mubr.bf16.vlgmr.msra.gmra.mxu1 %v3231_v11  ;;  %v3294_v10 = vld [vmem:[%s3408_s24 + $0x108] sm:$0xff]  }
  0x2d   : > { %2944 = vmatprep.mubr.bf16.mxu0 %v3232_v12  ;;  %3072 = vmatprep.mubr.bf16.mxu1 %v3233_v13  ;;  %v3295_v11 = vld [vmem:[%s3408_s24 + $0x308] sm:$0xff]   ;;  %v3296_v12 = vld [vmem:[%s3408_s24 + $0x110] sm:$0xff]  }
  0x2e   : > { %v3297_v13 = vld [vmem:[%s3408_s24 + $0x310] sm:$0xff]  }
  0x34   : > { %2945 = vmatmul.mubr.bf16.gmra.mxu0 %v3234_v14  ;;  %3073 = vmatmul.mubr.bf16.gmra.mxu1 %v3235_v15  ;;  %v3298_v14 = vld [vmem:[%s3408_s24 + $0x118] sm:$0xff]  }
  0x35   : > { %2948 = vmatprep.mubr.bf16.mxu0 %v3236_v16  ;;  %3076 = vmatprep.mubr.bf16.mxu1 %v3237_v17  ;;  %v3299_v15 = vld [vmem:[%s3408_s24 + $0x318] sm:$0xff]   ;;  %v3300_v16 = vld [vmem:[%s3408_s24 + $0x120] sm:$0xff]  }
  0x36   : > { %v3301_v17 = vld [vmem:[%s3408_s24 + $0x320] sm:$0xff]  }
  0x3c   : > { %2949 = vmatmul.mubr.bf16.gmra.mxu0 %v3238_v18  ;;  %3077 = vmatmul.mubr.bf16.gmra.mxu1 %v3239_v19  ;;  %v3302_v18 = vld [vmem:[%s3408_s24 + $0x128] sm:$0xff]  }
  0x3d   : > { %2952 = vmatprep.mubr.bf16.mxu0 %v3240_v20  ;;  %3080 = vmatprep.mubr.bf16.mxu1 %v3241_v21  ;;  %v3303_v19 = vld [vmem:[%s3408_s24 + $0x328] sm:$0xff]   ;;  %v3304_v20 = vld [vmem:[%s3408_s24 + $0x130] sm:$0xff]  }
  0x3e   : > { %v3305_v21 = vld [vmem:[%s3408_s24 + $0x330] sm:$0xff]  }
  0x44   : > { %2953 = vmatmul.mubr.bf16.gmra.mxu0 %v3242_v22  ;;  %3081 = vmatmul.mubr.bf16.gmra.mxu1 %v3243_v23  ;;  %v3306_v22 = vld [vmem:[%s3408_s24 + $0x138] sm:$0xff]  }
  0x45   : > { %2956 = vmatprep.mubr.bf16.mxu0 %v3244_v24  ;;  %3084 = vmatprep.mubr.bf16.mxu1 %v3245_v25  ;;  %v3307_v23 = vld [vmem:[%s3408_s24 + $0x338] sm:$0xff]   ;;  %v3308_v24 = vld [vmem:[%s3408_s24 + $0x140] sm:$0xff]  }
  0x46   : > { %v3309_v25 = vld [vmem:[%s3408_s24 + $0x340] sm:$0xff]  }
  0x4c   : > { %2957 = vmatmul.mubr.bf16.gmra.mxu0 %v3246_v26  ;;  %3085 = vmatmul.mubr.bf16.gmra.mxu1 %v3247_v27  ;;  %v3310_v26 = vld [vmem:[%s3408_s24 + $0x148] sm:$0xff]  }
  0x4d   : > { %2960 = vmatprep.mubr.bf16.mxu0 %v3248_v28  ;;  %3088 = vmatprep.mubr.bf16.mxu1 %v3249_v29  ;;  %v3311_v27 = vld [vmem:[%s3408_s24 + $0x348] sm:$0xff]   ;;  %v3312_v28 = vld [vmem:[%s3408_s24 + $0x150] sm:$0xff]  }
  0x4e   : > { %v3313_v29 = vld [vmem:[%s3408_s24 + $0x350] sm:$0xff]  }
  0x54   : > { %2961 = vmatmul.mubr.bf16.gmra.mxu0 %v3250_v30  ;;  %3089 = vmatmul.mubr.bf16.gmra.mxu1 %v3251_v31  ;;  %v3314_v30 = vld [vmem:[%s3408_s24 + $0x158] sm:$0xff]  }
  0x55   : > { %2964 = vmatprep.mubr.bf16.mxu0 %v3252_v32  ;;  %3092 = vmatprep.mubr.bf16.mxu1 %v3253_v33  ;;  %v3315_v31 = vld [vmem:[%s3408_s24 + $0x358] sm:$0xff]   ;;  %v3316_v32 = vld [vmem:[%s3408_s24 + $0x160] sm:$0xff]  }
  0x56   : > { %v3317_v33 = vld [vmem:[%s3408_s24 + $0x360] sm:$0xff]  }
  0x5c   : > { %2965 = vmatmul.mubr.bf16.gmra.mxu0 %v3254_v34  ;;  %3093 = vmatmul.mubr.bf16.gmra.mxu1 %v3255_v35  ;;  %v3318_v34 = vld [vmem:[%s3408_s24 + $0x168] sm:$0xff]  }
  0x5d   : > { %2968 = vmatprep.mubr.bf16.mxu0 %v3256_v36  ;;  %3096 = vmatprep.mubr.bf16.mxu1 %v3257_v37  ;;  %v3319_v35 = vld [vmem:[%s3408_s24 + $0x368] sm:$0xff]   ;;  %v3320_v36 = vld [vmem:[%s3408_s24 + $0x170] sm:$0xff]  }
  0x5e   : > { %v3321_v37 = vld [vmem:[%s3408_s24 + $0x370] sm:$0xff]  }
  0x64   : > { %2969 = vmatmul.mubr.bf16.gmra.mxu0 %v3258_v38  ;;  %3097 = vmatmul.mubr.bf16.gmra.mxu1 %v3259_v39  ;;  %v3322_v38 = vld [vmem:[%s3408_s24 + $0x178] sm:$0xff]  }
  0x65   : > { %2972 = vmatprep.mubr.bf16.mxu0 %v3260_v40  ;;  %3100 = vmatprep.mubr.bf16.mxu1 %v3261_v41  ;;  %v3323_v39 = vld [vmem:[%s3408_s24 + $0x378] sm:$0xff]   ;;  %v3324_v40 = vld [vmem:[%s3408_s24 + $0x180] sm:$0xff]  }
  0x66   : > { %v3325_v41 = vld [vmem:[%s3408_s24 + $0x380] sm:$0xff]  }
  0x6c   : > { %2973 = vmatmul.mubr.bf16.gmra.mxu0 %v3262_v42  ;;  %3101 = vmatmul.mubr.bf16.gmra.mxu1 %v3263_v43  ;;  %v3326_v42 = vld [vmem:[%s3408_s24 + $0x188] sm:$0xff]  }
  0x6d   : > { %2976 = vmatprep.mubr.bf16.mxu0 %v3264_v44  ;;  %3104 = vmatprep.mubr.bf16.mxu1 %v3265_v45  ;;  %v3327_v43 = vld [vmem:[%s3408_s24 + $0x388] sm:$0xff]   ;;  %v3328_v44 = vld [vmem:[%s3408_s24 + $0x190] sm:$0xff]  }
  0x6e   : > { %v3329_v45 = vld [vmem:[%s3408_s24 + $0x390] sm:$0xff]  }
  0x74   : > { %2977 = vmatmul.mubr.bf16.gmra.mxu0 %v3266_v46  ;;  %3105 = vmatmul.mubr.bf16.gmra.mxu1 %v3267_v47  ;;  %v3531_v46 = vld [vmem:[%s4342_s2] ss:$0 sm:$0xff] }
  0x75   : > { %2980 = vmatprep.mubr.bf16.mxu0 %v3268_v48  ;;  %3108 = vmatprep.mubr.bf16.mxu1 %v3269_v49 }
  0x7c   : > { %2981 = vmatmul.mubr.bf16.gmra.mxu0 %v3270_v50  ;;  %3109 = vmatmul.mubr.bf16.gmra.mxu1 %v3271_v51 }
  0x7d   : > { %2984 = vmatprep.mubr.bf16.mxu0 %v3272_v52  ;;  %3112 = vmatprep.mubr.bf16.mxu1 %v3273_v53 }
  0x84   : > { %2985 = vmatmul.mubr.bf16.gmra.mxu0 %v3274_v54  ;;  %3113 = vmatmul.mubr.bf16.gmra.mxu1 %v3275_v55 }
  0x85   : > { %2988 = vmatprep.mubr.bf16.mxu0 %v3276_v56  ;;  %3116 = vmatprep.mubr.bf16.mxu1 %v3277_v57  ;;  %v3330_v57 = vld [vmem:[%s3408_s24 + $0x198] sm:$0xff]  }
  0x8c   : > { %2989 = vmatmul.mubr.bf16.gmra.mxu0 %v3278_v58  ;;  %3117 = vmatmul.mubr.bf16.gmra.mxu1 %v3279_v59  ;;  %v3331_v58 = vld [vmem:[%s3408_s24 + $0x398] sm:$0xff]  }
  0x8d   : > { %2992 = vmatprep.mubr.bf16.mxu0 %v3280_v60  ;;  %3120 = vmatprep.mubr.bf16.mxu1 %v3281_v61  ;;  %v3332_v61 = vld [vmem:[%s3408_s24 + $0x1a0] sm:$0xff]  }
  0x94   : > { %2993 = vmatmul.mubr.bf16.gmra.mxu0 %v3282_v62  ;;  %3121 = vmatmul.mubr.bf16.gmra.mxu1 %v3283_v63  ;;  %v3333_v62 = vld [vmem:[%s3408_s24 + $0x3a0] sm:$0xff]  }
  0x95   : > { %2996 = vmatprep.mubr.bf16.mxu0 %v3284_v0  ;;  %3124 = vmatprep.mubr.bf16.mxu1 %v3285_v1 }
  0x9c   : > { %2997 = vmatmul.mubr.bf16.gmra.mxu0 %v3286_v2  ;;  %3125 = vmatmul.mubr.bf16.gmra.mxu1 %v3287_v3 }
  0x9d   : > { %3000 = vmatprep.mubr.bf16.mxu0 %v3288_v4  ;;  %3128 = vmatprep.mubr.bf16.mxu1 %v3289_v5 }
  0xa4   : > { %3001 = vmatmul.mubr.bf16.gmra.mxu0 %v3290_v6  ;;  %3129 = vmatmul.mubr.bf16.gmra.mxu1 %v3291_v7 }
  0xa5   : > { %3004 = vmatprep.mubr.bf16.mxu0 %v3292_v8  ;;  %3132 = vmatprep.mubr.bf16.mxu1 %v3293_v9 }
  0xac   : > { %3005 = vmatmul.mubr.bf16.gmra.mxu0 %v3294_v10  ;;  %3133 = vmatmul.mubr.bf16.gmra.mxu1 %v3295_v11 }
  0xad   : > { %3008 = vmatprep.mubr.bf16.mxu0 %v3296_v12  ;;  %3136 = vmatprep.mubr.bf16.mxu1 %v3297_v13  ;;  %v3334_v13 = vld [vmem:[%s3408_s24 + $0x1a8] sm:$0xff]  }
  0xb4   : > { %3009 = vmatmul.mubr.bf16.gmra.mxu0 %v3298_v14  ;;  %3137 = vmatmul.mubr.bf16.gmra.mxu1 %v3299_v15  ;;  %v3335_v14 = vld [vmem:[%s3408_s24 + $0x3a8] sm:$0xff]  }
  0xb5   : > { %3012 = vmatprep.mubr.bf16.mxu0 %v3300_v16  ;;  %3140 = vmatprep.mubr.bf16.mxu1 %v3301_v17  ;;  %v3336_v17 = vld [vmem:[%s3408_s24 + $0x1b0] sm:$0xff]  }
  0xbc   : > { %3013 = vmatmul.mubr.bf16.gmra.mxu0 %v3302_v18  ;;  %3141 = vmatmul.mubr.bf16.gmra.mxu1 %v3303_v19  ;;  %v3337_v18 = vld [vmem:[%s3408_s24 + $0x3b0] sm:$0xff]  }
  0xbd   : > { %3016 = vmatprep.mubr.bf16.mxu0 %v3304_v20  ;;  %3144 = vmatprep.mubr.bf16.mxu1 %v3305_v21 }
  0xc4   : > { %3017 = vmatmul.mubr.bf16.gmra.mxu0 %v3306_v22  ;;  %3145 = vmatmul.mubr.bf16.gmra.mxu1 %v3307_v23 }
  0xc5   : > { %3020 = vmatprep.mubr.bf16.mxu0 %v3308_v24  ;;  %3148 = vmatprep.mubr.bf16.mxu1 %v3309_v25 }
  0xcc   : > { %3021 = vmatmul.mubr.bf16.gmra.mxu0 %v3310_v26  ;;  %3149 = vmatmul.mubr.bf16.gmra.mxu1 %v3311_v27 }
  0xcd   : > { %3024 = vmatprep.mubr.bf16.mxu0 %v3312_v28  ;;  %3152 = vmatprep.mubr.bf16.mxu1 %v3313_v29 }
  0xd4   : > { %3025 = vmatmul.mubr.bf16.gmra.mxu0 %v3314_v30  ;;  %3153 = vmatmul.mubr.bf16.gmra.mxu1 %v3315_v31 }
  0xd5   : > { %3028 = vmatprep.mubr.bf16.mxu0 %v3316_v32  ;;  %3156 = vmatprep.mubr.bf16.mxu1 %v3317_v33  ;;  %v3338_v33 = vld [vmem:[%s3408_s24 + $0x1b8] sm:$0xff]  }
  0xdc   : > { %3029 = vmatmul.mubr.bf16.gmra.mxu0 %v3318_v34  ;;  %3157 = vmatmul.mubr.bf16.gmra.mxu1 %v3319_v35  ;;  %v3339_v34 = vld [vmem:[%s3408_s24 + $0x3b8] sm:$0xff]  }
  0xdd   : > { %3032 = vmatprep.mubr.bf16.mxu0 %v3320_v36  ;;  %3160 = vmatprep.mubr.bf16.mxu1 %v3321_v37  ;;  %v3340_v37 = vld [vmem:[%s3408_s24 + $0x1c0] sm:$0xff]  }
  0xe4   : > { %3033 = vmatmul.mubr.bf16.gmra.mxu0 %v3322_v38  ;;  %3161 = vmatmul.mubr.bf16.gmra.mxu1 %v3323_v39  ;;  %v3341_v38 = vld [vmem:[%s3408_s24 + $0x3c0] sm:$0xff]  }
  0xe5   : > { %3036 = vmatprep.mubr.bf16.mxu0 %v3324_v40  ;;  %3164 = vmatprep.mubr.bf16.mxu1 %v3325_v41 }
  0xec   : > { %v2942_v47 = vpop.f32.mrf.mxu0  ;;  %3037 = vmatmul.mubr.bf16.gmra.mxu0 %v3326_v42  ;;  %v3070_v48 = vpop.f32.mrf.mxu1  ;;  %3165 = vmatmul.mubr.bf16.gmra.mxu1 %v3327_v43 }
  0xed   : > { %v1313_v49 = vadd.f32 %v2942_v47, %v3531_v46  ;;  %v1825_v50 = vadd.f32 %v3070_v48, %v3531_v46  ;;  %3040 = vmatprep.mubr.bf16.mxu0 %v3328_v44  ;;  %3168 = vmatprep.mubr.bf16.mxu1 %v3329_v45 }
  0xee   : > { %v1304_v51 = vpop.f32.mrf.mxu0  ;;  %v1816_v52 = vpop.f32.mrf.mxu1 }
  0xef   : > { %2330 = vst.msk [vmem:[%s3536_s14 + $0x10] sm:$0xff] %vm2327_vm0, %v1313_v49  ;;  %2458 = vst.msk [vmem:[%s3536_s14 + $0x410] sm:$0xff] %vm2327_vm0, %v1825_v50  ;;  %v1305_v53 = vadd.f32 %v3531_v46, %v1304_v51  ;;  %v1817_v54 = vadd.f32 %v3531_v46, %v1816_v52 }
  0xf0   : > { %v2943_v55 = vpop.f32.mrf.mxu0  ;;  %v3071_v56 = vpop.f32.mrf.mxu1 }
  0xf1   : > { %2328 = vst.msk [vmem:[%s3536_s14] sm:$0xff] %vm2327_vm0, %v1305_v53  ;;  %2456 = vst.msk [vmem:[%s3536_s14 + $0x400] sm:$0xff] %vm2327_vm0, %v1817_v54  ;;  %v1316_v59 = vadd.f32 %v2943_v55, %v3531_v46  ;;  %v1828_v60 = vadd.f32 %v3071_v56, %v3531_v46  ;;  %v3342_v54 = vld [vmem:[%s3408_s24 + $0x1c8] sm:$0xff]  }
  0xf2   : > { %v1307_v63 = vpop.f32.mrf.mxu0  ;;  %v1819_v0 = vpop.f32.mrf.mxu1  ;;  %v3343_v55 = vld [vmem:[%s3408_s24 + $0x3c8] sm:$0xff]  }
  0xf3   : > { %2331 = vst.msk [vmem:[%s3536_s14 + $0x18] sm:$0xff] %vm2327_vm0, %v1316_v59  ;;  %2459 = vst.msk [vmem:[%s3536_s14 + $0x418] sm:$0xff] %vm2327_vm0, %v1828_v60  ;;  %v1308_v1 = vadd.f32 %v3531_v46, %v1307_v63  ;;  %v1820_v2 = vadd.f32 %v3531_v46, %v1819_v0  ;;  %v3345_v59 = vld [vmem:[%s3408_s24 + $0x3d0] sm:$0xff]  }
  0xf4   : > { %v2946_v3 = vpop.f32.mrf.mxu0  ;;  %3041 = vmatmul.mubr.bf16.gmra.mxu0 %v3330_v57  ;;  %v3074_v4 = vpop.f32.mrf.mxu1  ;;  %3169 = vmatmul.mubr.bf16.gmra.mxu1 %v3331_v58  ;;  %v3344_v58 = vld [vmem:[%s3408_s24 + $0x1d0] sm:$0xff]  }
  0xf5   : > { %2329 = vst.msk [vmem:[%s3536_s14 + $0x8] sm:$0xff] %vm2327_vm0, %v1308_v1  ;;  %2457 = vst.msk [vmem:[%s3536_s14 + $0x408] sm:$0xff] %vm2327_vm0, %v1820_v2  ;;  %v1329_v5 = vadd.f32 %v2946_v3, %v3531_v46  ;;  %v1841_v6 = vadd.f32 %v3074_v4, %v3531_v46  ;;  %3044 = vmatprep.mubr.bf16.mxu0 %v3332_v61  ;;  %3172 = vmatprep.mubr.bf16.mxu1 %v3333_v62 }
  0xf6   : > { %v1320_v7 = vpop.f32.mrf.mxu0  ;;  %v1832_v8 = vpop.f32.mrf.mxu1 }
  0xf7   : > { %2334 = vst.msk [vmem:[%s3536_s14 + $0x30] sm:$0xff] %vm2327_vm0, %v1329_v5  ;;  %2462 = vst.msk [vmem:[%s3536_s14 + $0x430] sm:$0xff] %vm2327_vm0, %v1841_v6  ;;  %v1321_v9 = vadd.f32 %v3531_v46, %v1320_v7  ;;  %v1833_v10 = vadd.f32 %v3531_v46, %v1832_v8 }
  0xf8   : > { %v2947_v11 = vpop.f32.mrf.mxu0  ;;  %v3075_v12 = vpop.f32.mrf.mxu1 }
  0xf9   : > { %2332 = vst.msk [vmem:[%s3536_s14 + $0x20] sm:$0xff] %vm2327_vm0, %v1321_v9  ;;  %2460 = vst.msk [vmem:[%s3536_s14 + $0x420] sm:$0xff] %vm2327_vm0, %v1833_v10  ;;  %v1332_v15 = vadd.f32 %v2947_v11, %v3531_v46  ;;  %v1844_v16 = vadd.f32 %v3075_v12, %v3531_v46  ;;  %v3346_v10 = vld [vmem:[%s3408_s24 + $0x1d8] sm:$0xff]  }
  0xfa   : > { %v1323_v19 = vpop.f32.mrf.mxu0  ;;  %v1835_v20 = vpop.f32.mrf.mxu1  ;;  %v3347_v11 = vld [vmem:[%s3408_s24 + $0x3d8] sm:$0xff]  }
  0xfb   : > { %2335 = vst.msk [vmem:[%s3536_s14 + $0x38] sm:$0xff] %vm2327_vm0, %v1332_v15  ;;  %2463 = vst.msk [vmem:[%s3536_s14 + $0x438] sm:$0xff] %vm2327_vm0, %v1844_v16  ;;  %v1324_v21 = vadd.f32 %v3531_v46, %v1323_v19  ;;  %v1836_v22 = vadd.f32 %v3531_v46, %v1835_v20  ;;  %v3349_v15 = vld [vmem:[%s3408_s24 + $0x3e0] sm:$0xff]  }
  0xfc   : > { %v2950_v23 = vpop.f32.mrf.mxu0  ;;  %3045 = vmatmul.mubr.bf16.gmra.mxu0 %v3334_v13  ;;  %v3078_v24 = vpop.f32.mrf.mxu1  ;;  %3173 = vmatmul.mubr.bf16.gmra.mxu1 %v3335_v14  ;;  %v3348_v14 = vld [vmem:[%s3408_s24 + $0x1e0] sm:$0xff]  }
  0xfd   : > { %2333 = vst.msk [vmem:[%s3536_s14 + $0x28] sm:$0xff] %vm2327_vm0, %v1324_v21  ;;  %2461 = vst.msk [vmem:[%s3536_s14 + $0x428] sm:$0xff] %vm2327_vm0, %v1836_v22  ;;  %v1345_v25 = vadd.f32 %v2950_v23, %v3531_v46  ;;  %v1857_v26 = vadd.f32 %v3078_v24, %v3531_v46  ;;  %3048 = vmatprep.mubr.bf16.mxu0 %v3336_v17  ;;  %3176 = vmatprep.mubr.bf16.mxu1 %v3337_v18 }
  0xfe   : > { %v1336_v27 = vpop.f32.mrf.mxu0  ;;  %v1848_v28 = vpop.f32.mrf.mxu1 }
  0xff   : > { %2338 = vst.msk [vmem:[%s3536_s14 + $0x50] sm:$0xff] %vm2327_vm0, %v1345_v25  ;;  %2466 = vst.msk [vmem:[%s3536_s14 + $0x450] sm:$0xff] %vm2327_vm0, %v1857_v26  ;;  %v1337_v29 = vadd.f32 %v3531_v46, %v1336_v27  ;;  %v1849_v30 = vadd.f32 %v3531_v46, %v1848_v28 }
 0x100   : > { %v2951_v31 = vpop.f32.mrf.mxu0  ;;  %v3079_v32 = vpop.f32.mrf.mxu1 }
 0x101   : > { %2336 = vst.msk [vmem:[%s3536_s14 + $0x40] sm:$0xff] %vm2327_vm0, %v1337_v29  ;;  %2464 = vst.msk [vmem:[%s3536_s14 + $0x440] sm:$0xff] %vm2327_vm0, %v1849_v30  ;;  %v1348_v35 = vadd.f32 %v2951_v31, %v3531_v46  ;;  %v1860_v36 = vadd.f32 %v3079_v32, %v3531_v46  ;;  %v3350_v30 = vld [vmem:[%s3408_s24 + $0x1e8] sm:$0xff]  }
 0x102   : > { %v1339_v39 = vpop.f32.mrf.mxu0  ;;  %v1851_v40 = vpop.f32.mrf.mxu1  ;;  %v3351_v31 = vld [vmem:[%s3408_s24 + $0x3e8] sm:$0xff]  }
 0x103   : > { %2339 = vst.msk [vmem:[%s3536_s14 + $0x58] sm:$0xff] %vm2327_vm0, %v1348_v35  ;;  %2467 = vst.msk [vmem:[%s3536_s14 + $0x458] sm:$0xff] %vm2327_vm0, %v1860_v36  ;;  %v1340_v41 = vadd.f32 %v3531_v46, %v1339_v39  ;;  %v1852_v42 = vadd.f32 %v3531_v46, %v1851_v40  ;;  %v3353_v35 = vld [vmem:[%s3408_s24 + $0x3f0] sm:$0xff]  }
 0x104   : > { %v2954_v43 = vpop.f32.mrf.mxu0  ;;  %3049 = vmatmul.mubr.bf16.gmra.mxu0 %v3338_v33  ;;  %v3082_v44 = vpop.f32.mrf.mxu1  ;;  %3177 = vmatmul.mubr.bf16.gmra.mxu1 %v3339_v34  ;;  %v3352_v34 = vld [vmem:[%s3408_s24 + $0x1f0] sm:$0xff]  }
 0x105   : > { %2337 = vst.msk [vmem:[%s3536_s14 + $0x48] sm:$0xff] %vm2327_vm0, %v1340_v41  ;;  %2465 = vst.msk [vmem:[%s3536_s14 + $0x448] sm:$0xff] %vm2327_vm0, %v1852_v42  ;;  %v1361_v45 = vadd.f32 %v2954_v43, %v3531_v46  ;;  %v1873_v47 = vadd.f32 %v3082_v44, %v3531_v46  ;;  %3052 = vmatprep.mubr.bf16.mxu0 %v3340_v37  ;;  %3180 = vmatprep.mubr.bf16.mxu1 %v3341_v38 }
 0x106   : > { %v1352_v48 = vpop.f32.mrf.mxu0  ;;  %v1864_v49 = vpop.f32.mrf.mxu1 }
 0x107   : > { %2342 = vst.msk [vmem:[%s3536_s14 + $0x70] sm:$0xff] %vm2327_vm0, %v1361_v45  ;;  %2470 = vst.msk [vmem:[%s3536_s14 + $0x470] sm:$0xff] %vm2327_vm0, %v1873_v47  ;;  %v1353_v50 = vadd.f32 %v3531_v46, %v1352_v48  ;;  %v1865_v51 = vadd.f32 %v3531_v46, %v1864_v49 }
 0x108   : > { %v2955_v52 = vpop.f32.mrf.mxu0  ;;  %v3083_v53 = vpop.f32.mrf.mxu1 }
 0x109   : > { %2340 = vst.msk [vmem:[%s3536_s14 + $0x60] sm:$0xff] %vm2327_vm0, %v1353_v50  ;;  %2468 = vst.msk [vmem:[%s3536_s14 + $0x460] sm:$0xff] %vm2327_vm0, %v1865_v51  ;;  %v1364_v56 = vadd.f32 %v2955_v52, %v3531_v46  ;;  %v1876_v57 = vadd.f32 %v3083_v53, %v3531_v46  ;;  %v3354_v51 = vld [vmem:[%s3408_s24 + $0x1f8] sm:$0xff]  }
 0x10a   : > { %v1355_v60 = vpop.f32.mrf.mxu0  ;;  %v1867_v61 = vpop.f32.mrf.mxu1  ;;  %v3355_v52 = vld [vmem:[%s3408_s24 + $0x3f8] sm:$0xff]  }
 0x10b   : > { %2343 = vst.msk [vmem:[%s3536_s14 + $0x78] sm:$0xff] %vm2327_vm0, %v1364_v56  ;;  %2471 = vst.msk [vmem:[%s3536_s14 + $0x478] sm:$0xff] %vm2327_vm0, %v1876_v57  ;;  %v1356_v62 = vadd.f32 %v3531_v46, %v1355_v60  ;;  %v1868_v63 = vadd.f32 %v3531_v46, %v1867_v61 }
 0x10c   : > { %v2958_v0 = vpop.f32.mrf.mxu0  ;;  %3053 = vmatmul.mubr.bf16.gmra.mxu0 %v3342_v54  ;;  %v3086_v1 = vpop.f32.mrf.mxu1  ;;  %3181 = vmatmul.mubr.bf16.gmra.mxu1 %v3343_v55 }
 0x10d   : > { %2341 = vst.msk [vmem:[%s3536_s14 + $0x68] sm:$0xff] %vm2327_vm0, %v1356_v62  ;;  %2469 = vst.msk [vmem:[%s3536_s14 + $0x468] sm:$0xff] %vm2327_vm0, %v1868_v63  ;;  %v1377_v2 = vadd.f32 %v2958_v0, %v3531_v46  ;;  %v1889_v3 = vadd.f32 %v3086_v1, %v3531_v46  ;;  %3056 = vmatprep.mubr.bf16.mxu0 %v3344_v58  ;;  %3184 = vmatprep.mubr.bf16.mxu1 %v3345_v59 }
 0x10e   : > { %v1368_v4 = vpop.f32.mrf.mxu0  ;;  %v1880_v5 = vpop.f32.mrf.mxu1 }
 0x10f   : > { %2346 = vst.msk [vmem:[%s3536_s14 + $0x90] sm:$0xff] %vm2327_vm0, %v1377_v2  ;;  %2474 = vst.msk [vmem:[%s3536_s14 + $0x490] sm:$0xff] %vm2327_vm0, %v1889_v3  ;;  %v1369_v6 = vadd.f32 %v3531_v46, %v1368_v4  ;;  %v1881_v7 = vadd.f32 %v3531_v46, %v1880_v5 }
 0x110   : > { %v2959_v8 = vpop.f32.mrf.mxu0  ;;  %v3087_v9 = vpop.f32.mrf.mxu1 }
 0x111   : > { %2344 = vst.msk [vmem:[%s3536_s14 + $0x80] sm:$0xff] %vm2327_vm0, %v1369_v6  ;;  %2472 = vst.msk [vmem:[%s3536_s14 + $0x480] sm:$0xff] %vm2327_vm0, %v1881_v7  ;;  %v1380_v12 = vadd.f32 %v2959_v8, %v3531_v46  ;;  %v1892_v13 = vadd.f32 %v3087_v9, %v3531_v46 }
 0x112   : > { %v1371_v16 = vpop.f32.mrf.mxu0  ;;  %v1883_v17 = vpop.f32.mrf.mxu1 }
 0x113   : > { %2347 = vst.msk [vmem:[%s3536_s14 + $0x98] sm:$0xff] %vm2327_vm0, %v1380_v12  ;;  %2475 = vst.msk [vmem:[%s3536_s14 + $0x498] sm:$0xff] %vm2327_vm0, %v1892_v13  ;;  %v1372_v18 = vadd.f32 %v3531_v46, %v1371_v16  ;;  %v1884_v19 = vadd.f32 %v3531_v46, %v1883_v17 }
 0x114   : > { %v2962_v20 = vpop.f32.mrf.mxu0  ;;  %3057 = vmatmul.mubr.bf16.gmra.mxu0 %v3346_v10  ;;  %v3090_v21 = vpop.f32.mrf.mxu1  ;;  %3185 = vmatmul.mubr.bf16.gmra.mxu1 %v3347_v11 }
 0x115   : > { %2345 = vst.msk [vmem:[%s3536_s14 + $0x88] sm:$0xff] %vm2327_vm0, %v1372_v18  ;;  %2473 = vst.msk [vmem:[%s3536_s14 + $0x488] sm:$0xff] %vm2327_vm0, %v1884_v19  ;;  %v1393_v22 = vadd.f32 %v2962_v20, %v3531_v46  ;;  %v1905_v23 = vadd.f32 %v3090_v21, %v3531_v46  ;;  %3060 = vmatprep.mubr.bf16.mxu0 %v3348_v14  ;;  %3188 = vmatprep.mubr.bf16.mxu1 %v3349_v15 }
 0x116   : > { %v1384_v24 = vpop.f32.mrf.mxu0  ;;  %v1896_v25 = vpop.f32.mrf.mxu1 }
 0x117   : > { %2350 = vst.msk [vmem:[%s3536_s14 + $0xb0] sm:$0xff] %vm2327_vm0, %v1393_v22  ;;  %2478 = vst.msk [vmem:[%s3536_s14 + $0x4b0] sm:$0xff] %vm2327_vm0, %v1905_v23  ;;  %v1385_v26 = vadd.f32 %v3531_v46, %v1384_v24  ;;  %v1897_v27 = vadd.f32 %v3531_v46, %v1896_v25 }
 0x118   : > { %v2963_v28 = vpop.f32.mrf.mxu0  ;;  %v3091_v29 = vpop.f32.mrf.mxu1 }
 0x119   : > { %2348 = vst.msk [vmem:[%s3536_s14 + $0xa0] sm:$0xff] %vm2327_vm0, %v1385_v26  ;;  %2476 = vst.msk [vmem:[%s3536_s14 + $0x4a0] sm:$0xff] %vm2327_vm0, %v1897_v27  ;;  %v1396_v32 = vadd.f32 %v2963_v28, %v3531_v46  ;;  %v1908_v33 = vadd.f32 %v3091_v29, %v3531_v46 }
 0x11a   : > { %v1387_v36 = vpop.f32.mrf.mxu0  ;;  %v1899_v37 = vpop.f32.mrf.mxu1 }
 0x11b   : > { %2351 = vst.msk [vmem:[%s3536_s14 + $0xb8] sm:$0xff] %vm2327_vm0, %v1396_v32  ;;  %2479 = vst.msk [vmem:[%s3536_s14 + $0x4b8] sm:$0xff] %vm2327_vm0, %v1908_v33  ;;  %v1388_v38 = vadd.f32 %v3531_v46, %v1387_v36  ;;  %v1900_v39 = vadd.f32 %v3531_v46, %v1899_v37 }
 0x11c   : > { %v2966_v40 = vpop.f32.mrf.mxu0  ;;  %3061 = vmatmul.mubr.bf16.gmra.mxu0 %v3350_v30  ;;  %v3094_v41 = vpop.f32.mrf.mxu1  ;;  %3189 = vmatmul.mubr.bf16.gmra.mxu1 %v3351_v31 }
 0x11d   : > { %2349 = vst.msk [vmem:[%s3536_s14 + $0xa8] sm:$0xff] %vm2327_vm0, %v1388_v38  ;;  %2477 = vst.msk [vmem:[%s3536_s14 + $0x4a8] sm:$0xff] %vm2327_vm0, %v1900_v39  ;;  %v1409_v42 = vadd.f32 %v2966_v40, %v3531_v46  ;;  %v1921_v43 = vadd.f32 %v3094_v41, %v3531_v46  ;;  %3064 = vmatprep.mubr.bf16.mxu0 %v3352_v34  ;;  %3192 = vmatprep.mubr.bf16.mxu1 %v3353_v35 }
 0x11e   : > { %v1400_v44 = vpop.f32.mrf.mxu0  ;;  %v1912_v45 = vpop.f32.mrf.mxu1 }
 0x11f   : > { %2354 = vst.msk [vmem:[%s3536_s14 + $0xd0] sm:$0xff] %vm2327_vm0, %v1409_v42  ;;  %2482 = vst.msk [vmem:[%s3536_s14 + $0x4d0] sm:$0xff] %vm2327_vm0, %v1921_v43  ;;  %v1401_v47 = vadd.f32 %v3531_v46, %v1400_v44  ;;  %v1913_v48 = vadd.f32 %v3531_v46, %v1912_v45 }
 0x120   : > { %v2967_v49 = vpop.f32.mrf.mxu0  ;;  %v3095_v50 = vpop.f32.mrf.mxu1 }
 0x121   : > { %2352 = vst.msk [vmem:[%s3536_s14 + $0xc0] sm:$0xff] %vm2327_vm0, %v1401_v47  ;;  %2480 = vst.msk [vmem:[%s3536_s14 + $0x4c0] sm:$0xff] %vm2327_vm0, %v1913_v48  ;;  %v1412_v53 = vadd.f32 %v2967_v49, %v3531_v46  ;;  %v1924_v54 = vadd.f32 %v3095_v50, %v3531_v46 }
 0x122   : > { %v1403_v55 = vpop.f32.mrf.mxu0  ;;  %v1915_v56 = vpop.f32.mrf.mxu1 }
 0x123   : > { %2355 = vst.msk [vmem:[%s3536_s14 + $0xd8] sm:$0xff] %vm2327_vm0, %v1412_v53  ;;  %2483 = vst.msk [vmem:[%s3536_s14 + $0x4d8] sm:$0xff] %vm2327_vm0, %v1924_v54  ;;  %v1404_v57 = vadd.f32 %v3531_v46, %v1403_v55  ;;  %v1916_v58 = vadd.f32 %v3531_v46, %v1915_v56 }
 0x124   : > { %v2970_v59 = vpop.f32.mrf.mxu0  ;;  %3065 = vmatmul.mubr.bf16.gmra.mxu0 %v3354_v51  ;;  %v3098_v60 = vpop.f32.mrf.mxu1  ;;  %3193 = vmatmul.mubr.bf16.gmra.mxu1 %v3355_v52 }
 0x125   : > { %2353 = vst.msk [vmem:[%s3536_s14 + $0xc8] sm:$0xff] %vm2327_vm0, %v1404_v57  ;;  %2481 = vst.msk [vmem:[%s3536_s14 + $0x4c8] sm:$0xff] %vm2327_vm0, %v1916_v58  ;;  %v1425_v61 = vadd.f32 %v2970_v59, %v3531_v46  ;;  %v1937_v62 = vadd.f32 %v3098_v60, %v3531_v46 }
 0x126   : > { %v1416_v63 = vpop.f32.mrf.mxu0  ;;  %v1928_v0 = vpop.f32.mrf.mxu1 }
 0x127   : > { %2358 = vst.msk [vmem:[%s3536_s14 + $0xf0] sm:$0xff] %vm2327_vm0, %v1425_v61  ;;  %2486 = vst.msk [vmem:[%s3536_s14 + $0x4f0] sm:$0xff] %vm2327_vm0, %v1937_v62  ;;  %v1417_v1 = vadd.f32 %v3531_v46, %v1416_v63  ;;  %v1929_v2 = vadd.f32 %v3531_v46, %v1928_v0 }
 0x128   : > { %v2971_v3 = vpop.f32.mrf.mxu0  ;;  %v3099_v4 = vpop.f32.mrf.mxu1 }
 0x129   : > { %2356 = vst.msk [vmem:[%s3536_s14 + $0xe0] sm:$0xff] %vm2327_vm0, %v1417_v1  ;;  %2484 = vst.msk [vmem:[%s3536_s14 + $0x4e0] sm:$0xff] %vm2327_vm0, %v1929_v2  ;;  %v1428_v5 = vadd.f32 %v2971_v3, %v3531_v46  ;;  %v1940_v6 = vadd.f32 %v3099_v4, %v3531_v46 }
 0x12a   : > { %v1419_v7 = vpop.f32.mrf.mxu0  ;;  %v1931_v8 = vpop.f32.mrf.mxu1 }
 0x12b   : > { %2359 = vst.msk [vmem:[%s3536_s14 + $0xf8] sm:$0xff] %vm2327_vm0, %v1428_v5  ;;  %2487 = vst.msk [vmem:[%s3536_s14 + $0x4f8] sm:$0xff] %vm2327_vm0, %v1940_v6  ;;  %v1420_v9 = vadd.f32 %v3531_v46, %v1419_v7  ;;  %v1932_v10 = vadd.f32 %v3531_v46, %v1931_v8 }
 0x12c   : > { %v2974_v11 = vpop.f32.mrf.mxu0  ;;  %v3102_v12 = vpop.f32.mrf.mxu1 }
 0x12d   : > { %2357 = vst.msk [vmem:[%s3536_s14 + $0xe8] sm:$0xff] %vm2327_vm0, %v1420_v9  ;;  %2485 = vst.msk [vmem:[%s3536_s14 + $0x4e8] sm:$0xff] %vm2327_vm0, %v1932_v10  ;;  %v1441_v13 = vadd.f32 %v2974_v11, %v3531_v46  ;;  %v1953_v14 = vadd.f32 %v3102_v12, %v3531_v46 }
 0x12e   : > { %v1432_v15 = vpop.f32.mrf.mxu0  ;;  %v1944_v16 = vpop.f32.mrf.mxu1 }
 0x12f   : > { %2362 = vst.msk [vmem:[%s3536_s14 + $0x110] sm:$0xff] %vm2327_vm0, %v1441_v13  ;;  %2490 = vst.msk [vmem:[%s3536_s14 + $0x510] sm:$0xff] %vm2327_vm0, %v1953_v14  ;;  %v1433_v17 = vadd.f32 %v3531_v46, %v1432_v15  ;;  %v1945_v18 = vadd.f32 %v3531_v46, %v1944_v16 }
 0x130   : > { %v2975_v19 = vpop.f32.mrf.mxu0  ;;  %v3103_v20 = vpop.f32.mrf.mxu1 }
 0x131   : > { %2360 = vst.msk [vmem:[%s3536_s14 + $0x100] sm:$0xff] %vm2327_vm0, %v1433_v17  ;;  %2488 = vst.msk [vmem:[%s3536_s14 + $0x500] sm:$0xff] %vm2327_vm0, %v1945_v18  ;;  %v1444_v21 = vadd.f32 %v2975_v19, %v3531_v46  ;;  %v1956_v22 = vadd.f32 %v3103_v20, %v3531_v46 }
 0x132   : > { %v1435_v23 = vpop.f32.mrf.mxu0  ;;  %v1947_v24 = vpop.f32.mrf.mxu1 }
 0x133   : > { %2363 = vst.msk [vmem:[%s3536_s14 + $0x118] sm:$0xff] %vm2327_vm0, %v1444_v21  ;;  %2491 = vst.msk [vmem:[%s3536_s14 + $0x518] sm:$0xff] %vm2327_vm0, %v1956_v22  ;;  %v1436_v25 = vadd.f32 %v3531_v46, %v1435_v23  ;;  %v1948_v26 = vadd.f32 %v3531_v46, %v1947_v24 }
 0x134   : > { %v2978_v27 = vpop.f32.mrf.mxu0  ;;  %v3106_v28 = vpop.f32.mrf.mxu1 }
 0x135   : > { %2361 = vst.msk [vmem:[%s3536_s14 + $0x108] sm:$0xff] %vm2327_vm0, %v1436_v25  ;;  %2489 = vst.msk [vmem:[%s3536_s14 + $0x508] sm:$0xff] %vm2327_vm0, %v1948_v26  ;;  %v1457_v29 = vadd.f32 %v2978_v27, %v3531_v46  ;;  %v1969_v30 = vadd.f32 %v3106_v28, %v3531_v46 }
 0x136   : > { %v1448_v31 = vpop.f32.mrf.mxu0  ;;  %v1960_v32 = vpop.f32.mrf.mxu1 }
 0x137   : > { %2366 = vst.msk [vmem:[%s3536_s14 + $0x130] sm:$0xff] %vm2327_vm0, %v1457_v29  ;;  %2494 = vst.msk [vmem:[%s3536_s14 + $0x530] sm:$0xff] %vm2327_vm0, %v1969_v30  ;;  %v1449_v33 = vadd.f32 %v3531_v46, %v1448_v31  ;;  %v1961_v34 = vadd.f32 %v3531_v46, %v1960_v32 }
 0x138   : > { %v2979_v35 = vpop.f32.mrf.mxu0  ;;  %v3107_v36 = vpop.f32.mrf.mxu1 }
 0x139   : > { %2364 = vst.msk [vmem:[%s3536_s14 + $0x120] sm:$0xff] %vm2327_vm0, %v1449_v33  ;;  %2492 = vst.msk [vmem:[%s3536_s14 + $0x520] sm:$0xff] %vm2327_vm0, %v1961_v34  ;;  %v1460_v37 = vadd.f32 %v2979_v35, %v3531_v46  ;;  %v1972_v38 = vadd.f32 %v3107_v36, %v3531_v46 }
 0x13a   : > { %v1451_v39 = vpop.f32.mrf.mxu0  ;;  %v1963_v40 = vpop.f32.mrf.mxu1 }
 0x13b   : > { %2367 = vst.msk [vmem:[%s3536_s14 + $0x138] sm:$0xff] %vm2327_vm0, %v1460_v37  ;;  %2495 = vst.msk [vmem:[%s3536_s14 + $0x538] sm:$0xff] %vm2327_vm0, %v1972_v38  ;;  %v1452_v41 = vadd.f32 %v3531_v46, %v1451_v39  ;;  %v1964_v42 = vadd.f32 %v3531_v46, %v1963_v40 }
 0x13c   : > { %v2982_v43 = vpop.f32.mrf.mxu0  ;;  %v3110_v44 = vpop.f32.mrf.mxu1 }
 0x13d   : > { %2365 = vst.msk [vmem:[%s3536_s14 + $0x128] sm:$0xff] %vm2327_vm0, %v1452_v41  ;;  %2493 = vst.msk [vmem:[%s3536_s14 + $0x528] sm:$0xff] %vm2327_vm0, %v1964_v42  ;;  %v1473_v45 = vadd.f32 %v2982_v43, %v3531_v46  ;;  %v1985_v47 = vadd.f32 %v3110_v44, %v3531_v46 }
 0x13e   : > { %v1464_v48 = vpop.f32.mrf.mxu0  ;;  %v1976_v49 = vpop.f32.mrf.mxu1 }
 0x13f   : > { %2370 = vst.msk [vmem:[%s3536_s14 + $0x150] sm:$0xff] %vm2327_vm0, %v1473_v45  ;;  %2498 = vst.msk [vmem:[%s3536_s14 + $0x550] sm:$0xff] %vm2327_vm0, %v1985_v47  ;;  %v1465_v50 = vadd.f32 %v3531_v46, %v1464_v48  ;;  %v1977_v51 = vadd.f32 %v3531_v46, %v1976_v49 }
 0x140   : > { %v2983_v52 = vpop.f32.mrf.mxu0  ;;  %v3111_v53 = vpop.f32.mrf.mxu1 }
 0x141   : > { %2368 = vst.msk [vmem:[%s3536_s14 + $0x140] sm:$0xff] %vm2327_vm0, %v1465_v50  ;;  %2496 = vst.msk [vmem:[%s3536_s14 + $0x540] sm:$0xff] %vm2327_vm0, %v1977_v51  ;;  %v1476_v54 = vadd.f32 %v2983_v52, %v3531_v46  ;;  %v1988_v55 = vadd.f32 %v3111_v53, %v3531_v46 }
 0x142   : > { %v1467_v56 = vpop.f32.mrf.mxu0  ;;  %v1979_v57 = vpop.f32.mrf.mxu1 }
 0x143   : > { %2371 = vst.msk [vmem:[%s3536_s14 + $0x158] sm:$0xff] %vm2327_vm0, %v1476_v54  ;;  %2499 = vst.msk [vmem:[%s3536_s14 + $0x558] sm:$0xff] %vm2327_vm0, %v1988_v55  ;;  %v1468_v58 = vadd.f32 %v3531_v46, %v1467_v56  ;;  %v1980_v59 = vadd.f32 %v3531_v46, %v1979_v57 }
 0x144   : > { %v2986_v60 = vpop.f32.mrf.mxu0  ;;  %v3114_v61 = vpop.f32.mrf.mxu1 }
 0x145   : > { %2369 = vst.msk [vmem:[%s3536_s14 + $0x148] sm:$0xff] %vm2327_vm0, %v1468_v58  ;;  %2497 = vst.msk [vmem:[%s3536_s14 + $0x548] sm:$0xff] %vm2327_vm0, %v1980_v59  ;;  %v1489_v62 = vadd.f32 %v2986_v60, %v3531_v46  ;;  %v2001_v63 = vadd.f32 %v3114_v61, %v3531_v46 }
 0x146   : > { %v1480_v0 = vpop.f32.mrf.mxu0  ;;  %v1992_v1 = vpop.f32.mrf.mxu1 }
 0x147   : > { %2374 = vst.msk [vmem:[%s3536_s14 + $0x170] sm:$0xff] %vm2327_vm0, %v1489_v62  ;;  %2502 = vst.msk [vmem:[%s3536_s14 + $0x570] sm:$0xff] %vm2327_vm0, %v2001_v63  ;;  %v1481_v2 = vadd.f32 %v3531_v46, %v1480_v0  ;;  %v1993_v3 = vadd.f32 %v3531_v46, %v1992_v1 }
 0x148   : > { %v2987_v4 = vpop.f32.mrf.mxu0  ;;  %v3115_v5 = vpop.f32.mrf.mxu1 }
 0x149   : > { %2372 = vst.msk [vmem:[%s3536_s14 + $0x160] sm:$0xff] %vm2327_vm0, %v1481_v2  ;;  %2500 = vst.msk [vmem:[%s3536_s14 + $0x560] sm:$0xff] %vm2327_vm0, %v1993_v3  ;;  %v1492_v6 = vadd.f32 %v2987_v4, %v3531_v46  ;;  %v2004_v7 = vadd.f32 %v3115_v5, %v3531_v46 }
 0x14a   : > { %v1483_v8 = vpop.f32.mrf.mxu0  ;;  %v1995_v9 = vpop.f32.mrf.mxu1 }
 0x14b   : > { %2375 = vst.msk [vmem:[%s3536_s14 + $0x178] sm:$0xff] %vm2327_vm0, %v1492_v6  ;;  %2503 = vst.msk [vmem:[%s3536_s14 + $0x578] sm:$0xff] %vm2327_vm0, %v2004_v7  ;;  %v1484_v10 = vadd.f32 %v3531_v46, %v1483_v8  ;;  %v1996_v11 = vadd.f32 %v3531_v46, %v1995_v9 }
 0x14c   : > { %v2990_v12 = vpop.f32.mrf.mxu0  ;;  %v3118_v13 = vpop.f32.mrf.mxu1 }
 0x14d   : > { %2373 = vst.msk [vmem:[%s3536_s14 + $0x168] sm:$0xff] %vm2327_vm0, %v1484_v10  ;;  %2501 = vst.msk [vmem:[%s3536_s14 + $0x568] sm:$0xff] %vm2327_vm0, %v1996_v11  ;;  %v1505_v14 = vadd.f32 %v2990_v12, %v3531_v46  ;;  %v2017_v15 = vadd.f32 %v3118_v13, %v3531_v46 }
 0x14e   : > { %v1496_v16 = vpop.f32.mrf.mxu0  ;;  %v2008_v17 = vpop.f32.mrf.mxu1 }
 0x14f   : > { %2378 = vst.msk [vmem:[%s3536_s14 + $0x190] sm:$0xff] %vm2327_vm0, %v1505_v14  ;;  %2506 = vst.msk [vmem:[%s3536_s14 + $0x590] sm:$0xff] %vm2327_vm0, %v2017_v15  ;;  %v1497_v18 = vadd.f32 %v3531_v46, %v1496_v16  ;;  %v2009_v19 = vadd.f32 %v3531_v46, %v2008_v17 }
 0x150   : > { %v2991_v20 = vpop.f32.mrf.mxu0  ;;  %v3119_v21 = vpop.f32.mrf.mxu1 }
 0x151   : > { %2376 = vst.msk [vmem:[%s3536_s14 + $0x180] sm:$0xff] %vm2327_vm0, %v1497_v18  ;;  %2504 = vst.msk [vmem:[%s3536_s14 + $0x580] sm:$0xff] %vm2327_vm0, %v2009_v19  ;;  %v1508_v22 = vadd.f32 %v2991_v20, %v3531_v46  ;;  %v2020_v23 = vadd.f32 %v3119_v21, %v3531_v46 }
 0x152   : > { %v1499_v24 = vpop.f32.mrf.mxu0  ;;  %v2011_v25 = vpop.f32.mrf.mxu1 }
 0x153   : > { %2379 = vst.msk [vmem:[%s3536_s14 + $0x198] sm:$0xff] %vm2327_vm0, %v1508_v22  ;;  %2507 = vst.msk [vmem:[%s3536_s14 + $0x598] sm:$0xff] %vm2327_vm0, %v2020_v23  ;;  %v1500_v26 = vadd.f32 %v3531_v46, %v1499_v24  ;;  %v2012_v27 = vadd.f32 %v3531_v46, %v2011_v25 }
 0x154   : > { %v2994_v28 = vpop.f32.mrf.mxu0  ;;  %v3122_v29 = vpop.f32.mrf.mxu1 }
 0x155   : > { %2377 = vst.msk [vmem:[%s3536_s14 + $0x188] sm:$0xff] %vm2327_vm0, %v1500_v26  ;;  %2505 = vst.msk [vmem:[%s3536_s14 + $0x588] sm:$0xff] %vm2327_vm0, %v2012_v27  ;;  %v1521_v30 = vadd.f32 %v2994_v28, %v3531_v46  ;;  %v2033_v31 = vadd.f32 %v3122_v29, %v3531_v46 }
 0x156   : > { %v1512_v32 = vpop.f32.mrf.mxu0  ;;  %v2024_v33 = vpop.f32.mrf.mxu1 }
 0x157   : > { %2382 = vst.msk [vmem:[%s3536_s14 + $0x1b0] sm:$0xff] %vm2327_vm0, %v1521_v30  ;;  %2510 = vst.msk [vmem:[%s3536_s14 + $0x5b0] sm:$0xff] %vm2327_vm0, %v2033_v31  ;;  %v1513_v34 = vadd.f32 %v3531_v46, %v1512_v32  ;;  %v2025_v35 = vadd.f32 %v3531_v46, %v2024_v33 }
 0x158   : > { %v2995_v36 = vpop.f32.mrf.mxu0  ;;  %v3123_v37 = vpop.f32.mrf.mxu1 }
 0x159   : > { %2380 = vst.msk [vmem:[%s3536_s14 + $0x1a0] sm:$0xff] %vm2327_vm0, %v1513_v34  ;;  %2508 = vst.msk [vmem:[%s3536_s14 + $0x5a0] sm:$0xff] %vm2327_vm0, %v2025_v35  ;;  %v1524_v38 = vadd.f32 %v2995_v36, %v3531_v46  ;;  %v2036_v39 = vadd.f32 %v3123_v37, %v3531_v46 }
 0x15a   : > { %v1515_v40 = vpop.f32.mrf.mxu0  ;;  %v2027_v41 = vpop.f32.mrf.mxu1 }
 0x15b   : > { %2383 = vst.msk [vmem:[%s3536_s14 + $0x1b8] sm:$0xff] %vm2327_vm0, %v1524_v38  ;;  %2511 = vst.msk [vmem:[%s3536_s14 + $0x5b8] sm:$0xff] %vm2327_vm0, %v2036_v39  ;;  %v1516_v42 = vadd.f32 %v3531_v46, %v1515_v40  ;;  %v2028_v43 = vadd.f32 %v3531_v46, %v2027_v41 }
 0x15c   : > { %v2998_v44 = vpop.f32.mrf.mxu0  ;;  %v3126_v45 = vpop.f32.mrf.mxu1 }
 0x15d   : > { %2381 = vst.msk [vmem:[%s3536_s14 + $0x1a8] sm:$0xff] %vm2327_vm0, %v1516_v42  ;;  %2509 = vst.msk [vmem:[%s3536_s14 + $0x5a8] sm:$0xff] %vm2327_vm0, %v2028_v43  ;;  %v1537_v47 = vadd.f32 %v2998_v44, %v3531_v46  ;;  %v2049_v48 = vadd.f32 %v3126_v45, %v3531_v46 }
 0x15e   : > { %v1528_v49 = vpop.f32.mrf.mxu0  ;;  %v2040_v50 = vpop.f32.mrf.mxu1 }
 0x15f   : > { %2386 = vst.msk [vmem:[%s3536_s14 + $0x1d0] sm:$0xff] %vm2327_vm0, %v1537_v47  ;;  %2514 = vst.msk [vmem:[%s3536_s14 + $0x5d0] sm:$0xff] %vm2327_vm0, %v2049_v48  ;;  %v1529_v51 = vadd.f32 %v3531_v46, %v1528_v49  ;;  %v2041_v52 = vadd.f32 %v3531_v46, %v2040_v50 }
 0x160   : > { %v2999_v53 = vpop.f32.mrf.mxu0  ;;  %v3127_v54 = vpop.f32.mrf.mxu1 }
 0x161   : > { %2384 = vst.msk [vmem:[%s3536_s14 + $0x1c0] sm:$0xff] %vm2327_vm0, %v1529_v51  ;;  %2512 = vst.msk [vmem:[%s3536_s14 + $0x5c0] sm:$0xff] %vm2327_vm0, %v2041_v52  ;;  %v1540_v55 = vadd.f32 %v2999_v53, %v3531_v46  ;;  %v2052_v56 = vadd.f32 %v3127_v54, %v3531_v46 }
 0x162   : > { %v1531_v57 = vpop.f32.mrf.mxu0  ;;  %v2043_v58 = vpop.f32.mrf.mxu1 }
 0x163   : > { %2387 = vst.msk [vmem:[%s3536_s14 + $0x1d8] sm:$0xff] %vm2327_vm0, %v1540_v55  ;;  %2515 = vst.msk [vmem:[%s3536_s14 + $0x5d8] sm:$0xff] %vm2327_vm0, %v2052_v56  ;;  %v1532_v59 = vadd.f32 %v3531_v46, %v1531_v57  ;;  %v2044_v60 = vadd.f32 %v3531_v46, %v2043_v58 }
 0x164   : > { %v3002_v61 = vpop.f32.mrf.mxu0  ;;  %v3130_v62 = vpop.f32.mrf.mxu1 }
 0x165   : > { %2385 = vst.msk [vmem:[%s3536_s14 + $0x1c8] sm:$0xff] %vm2327_vm0, %v1532_v59  ;;  %2513 = vst.msk [vmem:[%s3536_s14 + $0x5c8] sm:$0xff] %vm2327_vm0, %v2044_v60  ;;  %v1553_v63 = vadd.f32 %v3002_v61, %v3531_v46  ;;  %v2065_v0 = vadd.f32 %v3130_v62, %v3531_v46  ;;  %v4018_v61 = vld [vmem:[%s4342_s2] ss:$0 sm:$0xff] }
 0x166   : > { %v1544_v1 = vpop.f32.mrf.mxu0  ;;  %v2056_v2 = vpop.f32.mrf.mxu1 }
 0x167   : > { %2390 = vst.msk [vmem:[%s3536_s14 + $0x1f0] sm:$0xff] %vm2327_vm0, %v1553_v63  ;;  %2518 = vst.msk [vmem:[%s3536_s14 + $0x5f0] sm:$0xff] %vm2327_vm0, %v2065_v0  ;;  %v1545_v3 = vadd.f32 %v3531_v46, %v1544_v1  ;;  %v2057_v4 = vadd.f32 %v3531_v46, %v2056_v2 }
 0x168   : > { %v3003_v5 = vpop.f32.mrf.mxu0  ;;  %v3131_v6 = vpop.f32.mrf.mxu1 }
 0x169   : > { %2388 = vst.msk [vmem:[%s3536_s14 + $0x1e0] sm:$0xff] %vm2327_vm0, %v1545_v3  ;;  %2516 = vst.msk [vmem:[%s3536_s14 + $0x5e0] sm:$0xff] %vm2327_vm0, %v2057_v4  ;;  %v1556_v7 = vadd.f32 %v3003_v5, %v3531_v46  ;;  %v2068_v8 = vadd.f32 %v3131_v6, %v3531_v46 }
 0x16a   : > { %v1547_v9 = vpop.f32.mrf.mxu0  ;;  %v2059_v10 = vpop.f32.mrf.mxu1 }
 0x16b   : > { %2391 = vst.msk [vmem:[%s3536_s14 + $0x1f8] sm:$0xff] %vm2327_vm0, %v1556_v7  ;;  %2519 = vst.msk [vmem:[%s3536_s14 + $0x5f8] sm:$0xff] %vm2327_vm0, %v2068_v8  ;;  %v1548_v11 = vadd.f32 %v3531_v46, %v1547_v9  ;;  %v2060_v12 = vadd.f32 %v3531_v46, %v2059_v10 }
 0x16c   : > { %v3006_v13 = vpop.f32.mrf.mxu0  ;;  %v3134_v14 = vpop.f32.mrf.mxu1 }
 0x16d   : > { %2389 = vst.msk [vmem:[%s3536_s14 + $0x1e8] sm:$0xff] %vm2327_vm0, %v1548_v11  ;;  %2517 = vst.msk [vmem:[%s3536_s14 + $0x5e8] sm:$0xff] %vm2327_vm0, %v2060_v12  ;;  %v1569_v15 = vadd.f32 %v3006_v13, %v3531_v46  ;;  %v2081_v16 = vadd.f32 %v3134_v14, %v3531_v46 }
 0x16e   : > { %v1560_v17 = vpop.f32.mrf.mxu0  ;;  %v2072_v18 = vpop.f32.mrf.mxu1 }
 0x16f   : > { %2394 = vst.msk [vmem:[%s3536_s14 + $0x210] sm:$0xff] %vm2327_vm0, %v1569_v15  ;;  %2522 = vst.msk [vmem:[%s3536_s14 + $0x610] sm:$0xff] %vm2327_vm0, %v2081_v16  ;;  %v1561_v19 = vadd.f32 %v3531_v46, %v1560_v17  ;;  %v2073_v20 = vadd.f32 %v3531_v46, %v2072_v18 }
 0x170   : > { %v3007_v21 = vpop.f32.mrf.mxu0  ;;  %v3135_v22 = vpop.f32.mrf.mxu1 }
 0x171   : > { %2392 = vst.msk [vmem:[%s3536_s14 + $0x200] sm:$0xff] %vm2327_vm0, %v1561_v19  ;;  %2520 = vst.msk [vmem:[%s3536_s14 + $0x600] sm:$0xff] %vm2327_vm0, %v2073_v20  ;;  %v1572_v23 = vadd.f32 %v3007_v21, %v3531_v46  ;;  %v2084_v24 = vadd.f32 %v3135_v22, %v3531_v46 }
 0x172   : > { %v1563_v25 = vpop.f32.mrf.mxu0  ;;  %v2075_v26 = vpop.f32.mrf.mxu1 }
 0x173   : > { %2395 = vst.msk [vmem:[%s3536_s14 + $0x218] sm:$0xff] %vm2327_vm0, %v1572_v23  ;;  %2523 = vst.msk [vmem:[%s3536_s14 + $0x618] sm:$0xff] %vm2327_vm0, %v2084_v24  ;;  %v1564_v27 = vadd.f32 %v3531_v46, %v1563_v25  ;;  %v2076_v28 = vadd.f32 %v3531_v46, %v2075_v26 }
 0x174   : > { %v3010_v29 = vpop.f32.mrf.mxu0  ;;  %v3138_v30 = vpop.f32.mrf.mxu1 }
 0x175   : > { %2393 = vst.msk [vmem:[%s3536_s14 + $0x208] sm:$0xff] %vm2327_vm0, %v1564_v27  ;;  %2521 = vst.msk [vmem:[%s3536_s14 + $0x608] sm:$0xff] %vm2327_vm0, %v2076_v28  ;;  %v1585_v31 = vadd.f32 %v3010_v29, %v3531_v46  ;;  %v2097_v32 = vadd.f32 %v3138_v30, %v3531_v46 }
 0x176   : > { %v1576_v33 = vpop.f32.mrf.mxu0  ;;  %v2088_v34 = vpop.f32.mrf.mxu1 }
 0x177   : > { %2398 = vst.msk [vmem:[%s3536_s14 + $0x230] sm:$0xff] %vm2327_vm0, %v1585_v31  ;;  %2526 = vst.msk [vmem:[%s3536_s14 + $0x630] sm:$0xff] %vm2327_vm0, %v2097_v32  ;;  %v1577_v35 = vadd.f32 %v3531_v46, %v1576_v33  ;;  %v2089_v36 = vadd.f32 %v3531_v46, %v2088_v34 }
 0x178   : > { %v3011_v37 = vpop.f32.mrf.mxu0  ;;  %v3139_v38 = vpop.f32.mrf.mxu1 }
 0x179   : > { %2396 = vst.msk [vmem:[%s3536_s14 + $0x220] sm:$0xff] %vm2327_vm0, %v1577_v35  ;;  %2524 = vst.msk [vmem:[%s3536_s14 + $0x620] sm:$0xff] %vm2327_vm0, %v2089_v36  ;;  %v1588_v39 = vadd.f32 %v3011_v37, %v3531_v46  ;;  %v2100_v40 = vadd.f32 %v3139_v38, %v3531_v46 }
 0x17a   : > { %v1579_v41 = vpop.f32.mrf.mxu0  ;;  %v2091_v42 = vpop.f32.mrf.mxu1 }
 0x17b   : > { %2399 = vst.msk [vmem:[%s3536_s14 + $0x238] sm:$0xff] %vm2327_vm0, %v1588_v39  ;;  %2527 = vst.msk [vmem:[%s3536_s14 + $0x638] sm:$0xff] %vm2327_vm0, %v2100_v40  ;;  %v1580_v43 = vadd.f32 %v3531_v46, %v1579_v41  ;;  %v2092_v44 = vadd.f32 %v3531_v46, %v2091_v42 }
 0x17c   : > { %v3014_v45 = vpop.f32.mrf.mxu0  ;;  %v3142_v47 = vpop.f32.mrf.mxu1 }
 0x17d   : > { %2397 = vst.msk [vmem:[%s3536_s14 + $0x228] sm:$0xff] %vm2327_vm0, %v1580_v43  ;;  %2525 = vst.msk [vmem:[%s3536_s14 + $0x628] sm:$0xff] %vm2327_vm0, %v2092_v44  ;;  %v1601_v48 = vadd.f32 %v3014_v45, %v3531_v46  ;;  %v2113_v49 = vadd.f32 %v3142_v47, %v3531_v46 }
 0x17e   : > { %v1592_v50 = vpop.f32.mrf.mxu0  ;;  %v2104_v51 = vpop.f32.mrf.mxu1 }
 0x17f   : > { %2402 = vst.msk [vmem:[%s3536_s14 + $0x250] sm:$0xff] %vm2327_vm0, %v1601_v48  ;;  %2530 = vst.msk [vmem:[%s3536_s14 + $0x650] sm:$0xff] %vm2327_vm0, %v2113_v49  ;;  %v1593_v52 = vadd.f32 %v3531_v46, %v1592_v50  ;;  %v2105_v53 = vadd.f32 %v3531_v46, %v2104_v51 }
 0x180   : > { %v3015_v54 = vpop.f32.mrf.mxu0  ;;  %v3143_v55 = vpop.f32.mrf.mxu1 }
 0x181   : > { %2400 = vst.msk [vmem:[%s3536_s14 + $0x240] sm:$0xff] %vm2327_vm0, %v1593_v52  ;;  %2528 = vst.msk [vmem:[%s3536_s14 + $0x640] sm:$0xff] %vm2327_vm0, %v2105_v53  ;;  %v1604_v56 = vadd.f32 %v3015_v54, %v3531_v46  ;;  %v2116_v57 = vadd.f32 %v3143_v55, %v3531_v46 }
 0x182   : > { %v1595_v58 = vpop.f32.mrf.mxu0  ;;  %v2107_v59 = vpop.f32.mrf.mxu1 }
 0x183   : > { %2403 = vst.msk [vmem:[%s3536_s14 + $0x258] sm:$0xff] %vm2327_vm0, %v1604_v56  ;;  %2531 = vst.msk [vmem:[%s3536_s14 + $0x658] sm:$0xff] %vm2327_vm0, %v2116_v57  ;;  %v1596_v60 = vadd.f32 %v3531_v46, %v1595_v58  ;;  %v2108_v62 = vadd.f32 %v4018_v61, %v2107_v59 }
 0x184   : > { %v3018_v63 = vpop.f32.mrf.mxu0  ;;  %v3146_v0 = vpop.f32.mrf.mxu1 }
 0x185   : > { %2401 = vst.msk [vmem:[%s3536_s14 + $0x248] sm:$0xff] %vm2327_vm0, %v1596_v60  ;;  %2529 = vst.msk [vmem:[%s3536_s14 + $0x648] sm:$0xff] %vm2327_vm0, %v2108_v62  ;;  %v1617_v1 = vadd.f32 %v4018_v61, %v3018_v63  ;;  %v2129_v46 = vadd.f32 %v4018_v61, %v3146_v0 }
 0x186   : > { %v1608_v2 = vpop.f32.mrf.mxu0  ;;  %v2120_v3 = vpop.f32.mrf.mxu1 }
 0x187   : > { %2406 = vst.msk [vmem:[%s3536_s14 + $0x270] sm:$0xff] %vm2327_vm0, %v1617_v1  ;;  %2534 = vst.msk [vmem:[%s3536_s14 + $0x670] sm:$0xff] %vm2327_vm0, %v2129_v46  ;;  %v1609_v4 = vadd.f32 %v4018_v61, %v1608_v2  ;;  %v2121_v5 = vadd.f32 %v4018_v61, %v2120_v3 }
 0x188   : > { %v3019_v6 = vpop.f32.mrf.mxu0  ;;  %v3147_v7 = vpop.f32.mrf.mxu1 }
 0x189   : > { %2404 = vst.msk [vmem:[%s3536_s14 + $0x260] sm:$0xff] %vm2327_vm0, %v1609_v4  ;;  %2532 = vst.msk [vmem:[%s3536_s14 + $0x660] sm:$0xff] %vm2327_vm0, %v2121_v5  ;;  %v1620_v8 = vadd.f32 %v4018_v61, %v3019_v6  ;;  %v2132_v9 = vadd.f32 %v4018_v61, %v3147_v7 }
 0x18a   : > { %v1611_v10 = vpop.f32.mrf.mxu0  ;;  %v2123_v11 = vpop.f32.mrf.mxu1 }
 0x18b   : > { %2407 = vst.msk [vmem:[%s3536_s14 + $0x278] sm:$0xff] %vm2327_vm0, %v1620_v8  ;;  %2535 = vst.msk [vmem:[%s3536_s14 + $0x678] sm:$0xff] %vm2327_vm0, %v2132_v9  ;;  %v1612_v12 = vadd.f32 %v4018_v61, %v1611_v10  ;;  %v2124_v13 = vadd.f32 %v4018_v61, %v2123_v11 }
 0x18c   : > { %v3022_v14 = vpop.f32.mrf.mxu0  ;;  %v3150_v15 = vpop.f32.mrf.mxu1 }
 0x18d   : > { %2405 = vst.msk [vmem:[%s3536_s14 + $0x268] sm:$0xff] %vm2327_vm0, %v1612_v12  ;;  %2533 = vst.msk [vmem:[%s3536_s14 + $0x668] sm:$0xff] %vm2327_vm0, %v2124_v13  ;;  %v1633_v16 = vadd.f32 %v4018_v61, %v3022_v14  ;;  %v2145_v17 = vadd.f32 %v4018_v61, %v3150_v15 }
 0x18e   : > { %v1624_v18 = vpop.f32.mrf.mxu0  ;;  %v2136_v19 = vpop.f32.mrf.mxu1 }
 0x18f   : > { %2410 = vst.msk [vmem:[%s3536_s14 + $0x290] sm:$0xff] %vm2327_vm0, %v1633_v16  ;;  %2538 = vst.msk [vmem:[%s3536_s14 + $0x690] sm:$0xff] %vm2327_vm0, %v2145_v17  ;;  %v1625_v20 = vadd.f32 %v4018_v61, %v1624_v18  ;;  %v2137_v21 = vadd.f32 %v4018_v61, %v2136_v19 }
 0x190   : > { %v3023_v22 = vpop.f32.mrf.mxu0  ;;  %v3151_v23 = vpop.f32.mrf.mxu1 }
 0x191   : > { %2408 = vst.msk [vmem:[%s3536_s14 + $0x280] sm:$0xff] %vm2327_vm0, %v1625_v20  ;;  %2536 = vst.msk [vmem:[%s3536_s14 + $0x680] sm:$0xff] %vm2327_vm0, %v2137_v21  ;;  %v1636_v24 = vadd.f32 %v4018_v61, %v3023_v22  ;;  %v2148_v25 = vadd.f32 %v4018_v61, %v3151_v23 }
 0x192   : > { %v1627_v26 = vpop.f32.mrf.mxu0  ;;  %v2139_v27 = vpop.f32.mrf.mxu1 }
 0x193   : > { %2411 = vst.msk [vmem:[%s3536_s14 + $0x298] sm:$0xff] %vm2327_vm0, %v1636_v24  ;;  %2539 = vst.msk [vmem:[%s3536_s14 + $0x698] sm:$0xff] %vm2327_vm0, %v2148_v25  ;;  %v1628_v28 = vadd.f32 %v4018_v61, %v1627_v26  ;;  %v2140_v29 = vadd.f32 %v4018_v61, %v2139_v27 }
 0x194   : > { %v3026_v30 = vpop.f32.mrf.mxu0  ;;  %v3154_v31 = vpop.f32.mrf.mxu1 }
 0x195   : > { %2409 = vst.msk [vmem:[%s3536_s14 + $0x288] sm:$0xff] %vm2327_vm0, %v1628_v28  ;;  %2537 = vst.msk [vmem:[%s3536_s14 + $0x688] sm:$0xff] %vm2327_vm0, %v2140_v29  ;;  %v1649_v32 = vadd.f32 %v4018_v61, %v3026_v30  ;;  %v2161_v33 = vadd.f32 %v4018_v61, %v3154_v31 }
 0x196   : > { %v1640_v34 = vpop.f32.mrf.mxu0  ;;  %v2152_v35 = vpop.f32.mrf.mxu1 }
 0x197   : > { %2414 = vst.msk [vmem:[%s3536_s14 + $0x2b0] sm:$0xff] %vm2327_vm0, %v1649_v32  ;;  %2542 = vst.msk [vmem:[%s3536_s14 + $0x6b0] sm:$0xff] %vm2327_vm0, %v2161_v33  ;;  %v1641_v36 = vadd.f32 %v4018_v61, %v1640_v34  ;;  %v2153_v37 = vadd.f32 %v4018_v61, %v2152_v35 }
 0x198   : > { %v3027_v38 = vpop.f32.mrf.mxu0  ;;  %v3155_v39 = vpop.f32.mrf.mxu1 }
 0x199   : > { %2412 = vst.msk [vmem:[%s3536_s14 + $0x2a0] sm:$0xff] %vm2327_vm0, %v1641_v36  ;;  %2540 = vst.msk [vmem:[%s3536_s14 + $0x6a0] sm:$0xff] %vm2327_vm0, %v2153_v37  ;;  %v1652_v40 = vadd.f32 %v4018_v61, %v3027_v38  ;;  %v2164_v41 = vadd.f32 %v4018_v61, %v3155_v39 }
 0x19a   : > { %v1643_v42 = vpop.f32.mrf.mxu0  ;;  %v2155_v43 = vpop.f32.mrf.mxu1 }
 0x19b   : > { %2415 = vst.msk [vmem:[%s3536_s14 + $0x2b8] sm:$0xff] %vm2327_vm0, %v1652_v40  ;;  %2543 = vst.msk [vmem:[%s3536_s14 + $0x6b8] sm:$0xff] %vm2327_vm0, %v2164_v41  ;;  %v1644_v44 = vadd.f32 %v4018_v61, %v1643_v42  ;;  %v2156_v45 = vadd.f32 %v4018_v61, %v2155_v43 }
 0x19c   : > { %v3030_v47 = vpop.f32.mrf.mxu0  ;;  %v3158_v48 = vpop.f32.mrf.mxu1 }
 0x19d   : > { %2413 = vst.msk [vmem:[%s3536_s14 + $0x2a8] sm:$0xff] %vm2327_vm0, %v1644_v44  ;;  %2541 = vst.msk [vmem:[%s3536_s14 + $0x6a8] sm:$0xff] %vm2327_vm0, %v2156_v45  ;;  %v1665_v49 = vadd.f32 %v4018_v61, %v3030_v47  ;;  %v2177_v50 = vadd.f32 %v4018_v61, %v3158_v48 }
 0x19e   : > { %v1656_v51 = vpop.f32.mrf.mxu0  ;;  %v2168_v52 = vpop.f32.mrf.mxu1 }
 0x19f   : > { %2418 = vst.msk [vmem:[%s3536_s14 + $0x2d0] sm:$0xff] %vm2327_vm0, %v1665_v49  ;;  %2546 = vst.msk [vmem:[%s3536_s14 + $0x6d0] sm:$0xff] %vm2327_vm0, %v2177_v50  ;;  %v1657_v53 = vadd.f32 %v4018_v61, %v1656_v51  ;;  %v2169_v54 = vadd.f32 %v4018_v61, %v2168_v52 }
 0x1a0   : > { %v3031_v55 = vpop.f32.mrf.mxu0  ;;  %v3159_v56 = vpop.f32.mrf.mxu1 }
 0x1a1   : > { %2416 = vst.msk [vmem:[%s3536_s14 + $0x2c0] sm:$0xff] %vm2327_vm0, %v1657_v53  ;;  %2544 = vst.msk [vmem:[%s3536_s14 + $0x6c0] sm:$0xff] %vm2327_vm0, %v2169_v54  ;;  %v1668_v57 = vadd.f32 %v4018_v61, %v3031_v55  ;;  %v2180_v58 = vadd.f32 %v4018_v61, %v3159_v56 }
 0x1a2   : > { %v1659_v59 = vpop.f32.mrf.mxu0  ;;  %v2171_v60 = vpop.f32.mrf.mxu1 }
 0x1a3   : > { %2419 = vst.msk [vmem:[%s3536_s14 + $0x2d8] sm:$0xff] %vm2327_vm0, %v1668_v57  ;;  %2547 = vst.msk [vmem:[%s3536_s14 + $0x6d8] sm:$0xff] %vm2327_vm0, %v2180_v58  ;;  %v1660_v62 = vadd.f32 %v4018_v61, %v1659_v59  ;;  %v2172_v63 = vadd.f32 %v4018_v61, %v2171_v60 }
 0x1a4   : > { %v3034_v0 = vpop.f32.mrf.mxu0  ;;  %v3162_v1 = vpop.f32.mrf.mxu1 }
 0x1a5   : > { %2417 = vst.msk [vmem:[%s3536_s14 + $0x2c8] sm:$0xff] %vm2327_vm0, %v1660_v62  ;;  %2545 = vst.msk [vmem:[%s3536_s14 + $0x6c8] sm:$0xff] %vm2327_vm0, %v2172_v63  ;;  %v1681_v46 = vadd.f32 %v4018_v61, %v3034_v0  ;;  %v2193_v2 = vadd.f32 %v4018_v61, %v3162_v1 }
 0x1a6   : > { %v1672_v3 = vpop.f32.mrf.mxu0  ;;  %v2184_v4 = vpop.f32.mrf.mxu1 }
 0x1a7   : > { %2422 = vst.msk [vmem:[%s3536_s14 + $0x2f0] sm:$0xff] %vm2327_vm0, %v1681_v46  ;;  %2550 = vst.msk [vmem:[%s3536_s14 + $0x6f0] sm:$0xff] %vm2327_vm0, %v2193_v2  ;;  %v1673_v5 = vadd.f32 %v4018_v61, %v1672_v3  ;;  %v2185_v6 = vadd.f32 %v4018_v61, %v2184_v4 }
 0x1a8   : > { %v3035_v7 = vpop.f32.mrf.mxu0  ;;  %v3163_v8 = vpop.f32.mrf.mxu1 }
 0x1a9   : > { %2420 = vst.msk [vmem:[%s3536_s14 + $0x2e0] sm:$0xff] %vm2327_vm0, %v1673_v5  ;;  %2548 = vst.msk [vmem:[%s3536_s14 + $0x6e0] sm:$0xff] %vm2327_vm0, %v2185_v6  ;;  %v1684_v9 = vadd.f32 %v4018_v61, %v3035_v7  ;;  %v2196_v10 = vadd.f32 %v4018_v61, %v3163_v8 }
 0x1aa   : > { %v1675_v11 = vpop.f32.mrf.mxu0  ;;  %v2187_v12 = vpop.f32.mrf.mxu1 }
 0x1ab   : > { %2423 = vst.msk [vmem:[%s3536_s14 + $0x2f8] sm:$0xff] %vm2327_vm0, %v1684_v9  ;;  %2551 = vst.msk [vmem:[%s3536_s14 + $0x6f8] sm:$0xff] %vm2327_vm0, %v2196_v10  ;;  %v1676_v13 = vadd.f32 %v4018_v61, %v1675_v11  ;;  %v2188_v14 = vadd.f32 %v4018_v61, %v2187_v12 }
 0x1ac   : > { %v3038_v15 = vpop.f32.mrf.mxu0  ;;  %v3166_v16 = vpop.f32.mrf.mxu1 }
 0x1ad   : > { %2421 = vst.msk [vmem:[%s3536_s14 + $0x2e8] sm:$0xff] %vm2327_vm0, %v1676_v13  ;;  %2549 = vst.msk [vmem:[%s3536_s14 + $0x6e8] sm:$0xff] %vm2327_vm0, %v2188_v14  ;;  %v1697_v17 = vadd.f32 %v4018_v61, %v3038_v15  ;;  %v2209_v18 = vadd.f32 %v4018_v61, %v3166_v16 }
 0x1ae   : > { %v1688_v19 = vpop.f32.mrf.mxu0  ;;  %v2200_v20 = vpop.f32.mrf.mxu1 }
 0x1af   : > { %2426 = vst.msk [vmem:[%s3536_s14 + $0x310] sm:$0xff] %vm2327_vm0, %v1697_v17  ;;  %2554 = vst.msk [vmem:[%s3536_s14 + $0x710] sm:$0xff] %vm2327_vm0, %v2209_v18  ;;  %v1689_v21 = vadd.f32 %v4018_v61, %v1688_v19  ;;  %v2201_v22 = vadd.f32 %v4018_v61, %v2200_v20 }
 0x1b0   : > { %v3039_v23 = vpop.f32.mrf.mxu0  ;;  %v3167_v24 = vpop.f32.mrf.mxu1 }
 0x1b1   : > { %2424 = vst.msk [vmem:[%s3536_s14 + $0x300] sm:$0xff] %vm2327_vm0, %v1689_v21  ;;  %2552 = vst.msk [vmem:[%s3536_s14 + $0x700] sm:$0xff] %vm2327_vm0, %v2201_v22  ;;  %v1700_v25 = vadd.f32 %v4018_v61, %v3039_v23  ;;  %v2212_v26 = vadd.f32 %v4018_v61, %v3167_v24 }
 0x1b2   : > { %v1691_v27 = vpop.f32.mrf.mxu0  ;;  %v2203_v28 = vpop.f32.mrf.mxu1 }
 0x1b3   : > { %2427 = vst.msk [vmem:[%s3536_s14 + $0x318] sm:$0xff] %vm2327_vm0, %v1700_v25  ;;  %2555 = vst.msk [vmem:[%s3536_s14 + $0x718] sm:$0xff] %vm2327_vm0, %v2212_v26  ;;  %v1692_v29 = vadd.f32 %v4018_v61, %v1691_v27  ;;  %v2204_v30 = vadd.f32 %v4018_v61, %v2203_v28 }
 0x1b4   : > { %v3042_v31 = vpop.f32.mrf.mxu0  ;;  %v3170_v32 = vpop.f32.mrf.mxu1 }
 0x1b5   : > { %2425 = vst.msk [vmem:[%s3536_s14 + $0x308] sm:$0xff] %vm2327_vm0, %v1692_v29  ;;  %2553 = vst.msk [vmem:[%s3536_s14 + $0x708] sm:$0xff] %vm2327_vm0, %v2204_v30  ;;  %v1713_v33 = vadd.f32 %v4018_v61, %v3042_v31  ;;  %v2225_v34 = vadd.f32 %v4018_v61, %v3170_v32 }
 0x1b6   : > { %v1704_v35 = vpop.f32.mrf.mxu0  ;;  %v2216_v36 = vpop.f32.mrf.mxu1 }
 0x1b7   : > { %2430 = vst.msk [vmem:[%s3536_s14 + $0x330] sm:$0xff] %vm2327_vm0, %v1713_v33  ;;  %2558 = vst.msk [vmem:[%s3536_s14 + $0x730] sm:$0xff] %vm2327_vm0, %v2225_v34  ;;  %v1705_v37 = vadd.f32 %v4018_v61, %v1704_v35  ;;  %v2217_v38 = vadd.f32 %v4018_v61, %v2216_v36 }
 0x1b8   : > { %v3043_v39 = vpop.f32.mrf.mxu0  ;;  %v3171_v40 = vpop.f32.mrf.mxu1 }
 0x1b9   : > { %2428 = vst.msk [vmem:[%s3536_s14 + $0x320] sm:$0xff] %vm2327_vm0, %v1705_v37  ;;  %2556 = vst.msk [vmem:[%s3536_s14 + $0x720] sm:$0xff] %vm2327_vm0, %v2217_v38  ;;  %v1716_v41 = vadd.f32 %v4018_v61, %v3043_v39  ;;  %v2228_v42 = vadd.f32 %v4018_v61, %v3171_v40 }
 0x1ba   : > { %v1707_v43 = vpop.f32.mrf.mxu0  ;;  %v2219_v44 = vpop.f32.mrf.mxu1 }
 0x1bb   : > { %2431 = vst.msk [vmem:[%s3536_s14 + $0x338] sm:$0xff] %vm2327_vm0, %v1716_v41  ;;  %2559 = vst.msk [vmem:[%s3536_s14 + $0x738] sm:$0xff] %vm2327_vm0, %v2228_v42  ;;  %v1708_v45 = vadd.f32 %v4018_v61, %v1707_v43  ;;  %v2220_v47 = vadd.f32 %v4018_v61, %v2219_v44 }
 0x1bc   : > { %v3046_v48 = vpop.f32.mrf.mxu0  ;;  %v3174_v49 = vpop.f32.mrf.mxu1 }
 0x1bd   : > { %2429 = vst.msk [vmem:[%s3536_s14 + $0x328] sm:$0xff] %vm2327_vm0, %v1708_v45  ;;  %2557 = vst.msk [vmem:[%s3536_s14 + $0x728] sm:$0xff] %vm2327_vm0, %v2220_v47  ;;  %v1729_v50 = vadd.f32 %v4018_v61, %v3046_v48  ;;  %v2241_v51 = vadd.f32 %v4018_v61, %v3174_v49 }
 0x1be   : > { %v1720_v52 = vpop.f32.mrf.mxu0  ;;  %v2232_v53 = vpop.f32.mrf.mxu1 }
 0x1bf   : > { %2434 = vst.msk [vmem:[%s3536_s14 + $0x350] sm:$0xff] %vm2327_vm0, %v1729_v50  ;;  %2562 = vst.msk [vmem:[%s3536_s14 + $0x750] sm:$0xff] %vm2327_vm0, %v2241_v51  ;;  %v1721_v54 = vadd.f32 %v4018_v61, %v1720_v52  ;;  %v2233_v55 = vadd.f32 %v4018_v61, %v2232_v53 }
 0x1c0   : > { %v3047_v56 = vpop.f32.mrf.mxu0  ;;  %v3175_v57 = vpop.f32.mrf.mxu1 }
 0x1c1   : > { %2432 = vst.msk [vmem:[%s3536_s14 + $0x340] sm:$0xff] %vm2327_vm0, %v1721_v54  ;;  %2560 = vst.msk [vmem:[%s3536_s14 + $0x740] sm:$0xff] %vm2327_vm0, %v2233_v55  ;;  %v1732_v58 = vadd.f32 %v4018_v61, %v3047_v56  ;;  %v2244_v59 = vadd.f32 %v4018_v61, %v3175_v57 }
 0x1c2   : > { %v1723_v60 = vpop.f32.mrf.mxu0  ;;  %v2235_v62 = vpop.f32.mrf.mxu1 }
 0x1c3   : > { %2435 = vst.msk [vmem:[%s3536_s14 + $0x358] sm:$0xff] %vm2327_vm0, %v1732_v58  ;;  %2563 = vst.msk [vmem:[%s3536_s14 + $0x758] sm:$0xff] %vm2327_vm0, %v2244_v59  ;;  %v1724_v63 = vadd.f32 %v4018_v61, %v1723_v60  ;;  %v2236_v0 = vadd.f32 %v4018_v61, %v2235_v62 }
 0x1c4   : > { %v3050_v1 = vpop.f32.mrf.mxu0  ;;  %v3178_v46 = vpop.f32.mrf.mxu1 }
 0x1c5   : > { %2433 = vst.msk [vmem:[%s3536_s14 + $0x348] sm:$0xff] %vm2327_vm0, %v1724_v63  ;;  %2561 = vst.msk [vmem:[%s3536_s14 + $0x748] sm:$0xff] %vm2327_vm0, %v2236_v0  ;;  %v1745_v2 = vadd.f32 %v4018_v61, %v3050_v1  ;;  %v2257_v3 = vadd.f32 %v4018_v61, %v3178_v46 }
 0x1c6   : > { %v1736_v4 = vpop.f32.mrf.mxu0  ;;  %v2248_v5 = vpop.f32.mrf.mxu1 }
 0x1c7   : > { %2438 = vst.msk [vmem:[%s3536_s14 + $0x370] sm:$0xff] %vm2327_vm0, %v1745_v2  ;;  %2566 = vst.msk [vmem:[%s3536_s14 + $0x770] sm:$0xff] %vm2327_vm0, %v2257_v3  ;;  %v1737_v6 = vadd.f32 %v4018_v61, %v1736_v4  ;;  %v2249_v7 = vadd.f32 %v4018_v61, %v2248_v5 }
 0x1c8   : > { %v3051_v8 = vpop.f32.mrf.mxu0  ;;  %v3179_v9 = vpop.f32.mrf.mxu1 }
 0x1c9   : > { %2436 = vst.msk [vmem:[%s3536_s14 + $0x360] sm:$0xff] %vm2327_vm0, %v1737_v6  ;;  %2564 = vst.msk [vmem:[%s3536_s14 + $0x760] sm:$0xff] %vm2327_vm0, %v2249_v7  ;;  %v1748_v10 = vadd.f32 %v4018_v61, %v3051_v8  ;;  %v2260_v11 = vadd.f32 %v4018_v61, %v3179_v9 }
 0x1ca   : > { %v1739_v12 = vpop.f32.mrf.mxu0  ;;  %v2251_v13 = vpop.f32.mrf.mxu1 }
 0x1cb   : > { %2439 = vst.msk [vmem:[%s3536_s14 + $0x378] sm:$0xff] %vm2327_vm0, %v1748_v10  ;;  %2567 = vst.msk [vmem:[%s3536_s14 + $0x778] sm:$0xff] %vm2327_vm0, %v2260_v11  ;;  %v1740_v14 = vadd.f32 %v4018_v61, %v1739_v12  ;;  %v2252_v15 = vadd.f32 %v4018_v61, %v2251_v13 }
 0x1cc   : > { %v3054_v16 = vpop.f32.mrf.mxu0  ;;  %v3182_v17 = vpop.f32.mrf.mxu1 }
 0x1cd   : > { %2437 = vst.msk [vmem:[%s3536_s14 + $0x368] sm:$0xff] %vm2327_vm0, %v1740_v14  ;;  %2565 = vst.msk [vmem:[%s3536_s14 + $0x768] sm:$0xff] %vm2327_vm0, %v2252_v15  ;;  %v1761_v18 = vadd.f32 %v4018_v61, %v3054_v16  ;;  %v2273_v19 = vadd.f32 %v4018_v61, %v3182_v17 }
 0x1ce   : > { %v1752_v20 = vpop.f32.mrf.mxu0  ;;  %v2264_v21 = vpop.f32.mrf.mxu1 }
 0x1cf   : > { %2442 = vst.msk [vmem:[%s3536_s14 + $0x390] sm:$0xff] %vm2327_vm0, %v1761_v18  ;;  %2570 = vst.msk [vmem:[%s3536_s14 + $0x790] sm:$0xff] %vm2327_vm0, %v2273_v19  ;;  %v1753_v22 = vadd.f32 %v4018_v61, %v1752_v20  ;;  %v2265_v23 = vadd.f32 %v4018_v61, %v2264_v21 }
 0x1d0   : > { %v3055_v24 = vpop.f32.mrf.mxu0  ;;  %v3183_v25 = vpop.f32.mrf.mxu1 }
 0x1d1   : > { %2440 = vst.msk [vmem:[%s3536_s14 + $0x380] sm:$0xff] %vm2327_vm0, %v1753_v22  ;;  %2568 = vst.msk [vmem:[%s3536_s14 + $0x780] sm:$0xff] %vm2327_vm0, %v2265_v23  ;;  %v1764_v26 = vadd.f32 %v4018_v61, %v3055_v24  ;;  %v2276_v27 = vadd.f32 %v4018_v61, %v3183_v25 }
 0x1d2   : > { %v1755_v28 = vpop.f32.mrf.mxu0  ;;  %v2267_v29 = vpop.f32.mrf.mxu1 }
 0x1d3   : > { %2443 = vst.msk [vmem:[%s3536_s14 + $0x398] sm:$0xff] %vm2327_vm0, %v1764_v26  ;;  %2571 = vst.msk [vmem:[%s3536_s14 + $0x798] sm:$0xff] %vm2327_vm0, %v2276_v27  ;;  %v1756_v30 = vadd.f32 %v4018_v61, %v1755_v28  ;;  %v2268_v31 = vadd.f32 %v4018_v61, %v2267_v29 }
 0x1d4   : > { %v3058_v32 = vpop.f32.mrf.mxu0  ;;  %v3186_v33 = vpop.f32.mrf.mxu1 }
 0x1d5   : > { %2441 = vst.msk [vmem:[%s3536_s14 + $0x388] sm:$0xff] %vm2327_vm0, %v1756_v30  ;;  %2569 = vst.msk [vmem:[%s3536_s14 + $0x788] sm:$0xff] %vm2327_vm0, %v2268_v31  ;;  %v1777_v34 = vadd.f32 %v4018_v61, %v3058_v32  ;;  %v2289_v35 = vadd.f32 %v4018_v61, %v3186_v33 }
 0x1d6   : > { %v1768_v36 = vpop.f32.mrf.mxu0  ;;  %v2280_v37 = vpop.f32.mrf.mxu1 }
 0x1d7   : > { %2446 = vst.msk [vmem:[%s3536_s14 + $0x3b0] sm:$0xff] %vm2327_vm0, %v1777_v34  ;;  %2574 = vst.msk [vmem:[%s3536_s14 + $0x7b0] sm:$0xff] %vm2327_vm0, %v2289_v35  ;;  %v1769_v38 = vadd.f32 %v4018_v61, %v1768_v36  ;;  %v2281_v39 = vadd.f32 %v4018_v61, %v2280_v37 }
 0x1d8   : > { %v3059_v40 = vpop.f32.mrf.mxu0  ;;  %v3187_v41 = vpop.f32.mrf.mxu1 }
 0x1d9   : > { %2444 = vst.msk [vmem:[%s3536_s14 + $0x3a0] sm:$0xff] %vm2327_vm0, %v1769_v38  ;;  %2572 = vst.msk [vmem:[%s3536_s14 + $0x7a0] sm:$0xff] %vm2327_vm0, %v2281_v39  ;;  %v1780_v42 = vadd.f32 %v4018_v61, %v3059_v40  ;;  %v2292_v43 = vadd.f32 %v4018_v61, %v3187_v41 }
 0x1da   : > { %v1771_v44 = vpop.f32.mrf.mxu0  ;;  %v2283_v45 = vpop.f32.mrf.mxu1 }
 0x1db   : > { %2447 = vst.msk [vmem:[%s3536_s14 + $0x3b8] sm:$0xff] %vm2327_vm0, %v1780_v42  ;;  %2575 = vst.msk [vmem:[%s3536_s14 + $0x7b8] sm:$0xff] %vm2327_vm0, %v2292_v43  ;;  %v1772_v47 = vadd.f32 %v4018_v61, %v1771_v44  ;;  %v2284_v48 = vadd.f32 %v4018_v61, %v2283_v45 }
 0x1dc   : > { %v3062_v49 = vpop.f32.mrf.mxu0  ;;  %v3190_v50 = vpop.f32.mrf.mxu1 }
 0x1dd   : > { %2445 = vst.msk [vmem:[%s3536_s14 + $0x3a8] sm:$0xff] %vm2327_vm0, %v1772_v47  ;;  %2573 = vst.msk [vmem:[%s3536_s14 + $0x7a8] sm:$0xff] %vm2327_vm0, %v2284_v48  ;;  %v1793_v51 = vadd.f32 %v4018_v61, %v3062_v49  ;;  %v2305_v52 = vadd.f32 %v4018_v61, %v3190_v50 }
 0x1de   : > { %v1784_v53 = vpop.f32.mrf.mxu0  ;;  %v2296_v54 = vpop.f32.mrf.mxu1 }
 0x1df   : > { %2450 = vst.msk [vmem:[%s3536_s14 + $0x3d0] sm:$0xff] %vm2327_vm0, %v1793_v51  ;;  %2578 = vst.msk [vmem:[%s3536_s14 + $0x7d0] sm:$0xff] %vm2327_vm0, %v2305_v52  ;;  %v1785_v55 = vadd.f32 %v4018_v61, %v1784_v53  ;;  %v2297_v56 = vadd.f32 %v4018_v61, %v2296_v54 }
 0x1e0   : > { %v3063_v57 = vpop.f32.mrf.mxu0  ;;  %v3191_v58 = vpop.f32.mrf.mxu1 }
 0x1e1   : > { %2448 = vst.msk [vmem:[%s3536_s14 + $0x3c0] sm:$0xff] %vm2327_vm0, %v1785_v55  ;;  %2576 = vst.msk [vmem:[%s3536_s14 + $0x7c0] sm:$0xff] %vm2327_vm0, %v2297_v56  ;;  %v1796_v59 = vadd.f32 %v4018_v61, %v3063_v57  ;;  %v2308_v60 = vadd.f32 %v4018_v61, %v3191_v58 }
 0x1e2   : > { %v1787_v62 = vpop.f32.mrf.mxu0  ;;  %v2299_v63 = vpop.f32.mrf.mxu1 }
 0x1e3   : > { %2451 = vst.msk [vmem:[%s3536_s14 + $0x3d8] sm:$0xff] %vm2327_vm0, %v1796_v59  ;;  %2579 = vst.msk [vmem:[%s3536_s14 + $0x7d8] sm:$0xff] %vm2327_vm0, %v2308_v60  ;;  %v1788_v0 = vadd.f32 %v4018_v61, %v1787_v62  ;;  %v2300_v1 = vadd.f32 %v4018_v61, %v2299_v63 }
 0x1e4   : > { %v3066_v46 = vpop.f32.mrf.mxu0  ;;  %v3194_v2 = vpop.f32.mrf.mxu1 }
 0x1e5   : > { %2449 = vst.msk [vmem:[%s3536_s14 + $0x3c8] sm:$0xff] %vm2327_vm0, %v1788_v0  ;;  %2577 = vst.msk [vmem:[%s3536_s14 + $0x7c8] sm:$0xff] %vm2327_vm0, %v2300_v1  ;;  %v1809_v3 = vadd.f32 %v4018_v61, %v3066_v46  ;;  %v2321_v4 = vadd.f32 %v4018_v61, %v3194_v2 }
 0x1e6   : > { %v1800_v5 = vpop.f32.mrf.mxu0  ;;  %v2312_v6 = vpop.f32.mrf.mxu1 }
 0x1e7   : > { %2454 = vst.msk [vmem:[%s3536_s14 + $0x3f0] sm:$0xff] %vm2327_vm0, %v1809_v3  ;;  %2582 = vst.msk [vmem:[%s3536_s14 + $0x7f0] sm:$0xff] %vm2327_vm0, %v2321_v4  ;;  %v1801_v7 = vadd.f32 %v4018_v61, %v1800_v5  ;;  %v2313_v8 = vadd.f32 %v4018_v61, %v2312_v6 }
 0x1e8   : > { %v3067_v9 = vpop.f32.mrf.mxu0  ;;  %v3195_v10 = vpop.f32.mrf.mxu1 }
 0x1e9   : > { %2452 = vst.msk [vmem:[%s3536_s14 + $0x3e0] sm:$0xff] %vm2327_vm0, %v1801_v7  ;;  %2580 = vst.msk [vmem:[%s3536_s14 + $0x7e0] sm:$0xff] %vm2327_vm0, %v2313_v8  ;;  %v1812_v11 = vadd.f32 %v4018_v61, %v3067_v9  ;;  %v2324_v12 = vadd.f32 %v4018_v61, %v3195_v10 }
 0x1ea   : > { %v1803_v13 = vpop.f32.mrf.mxu0  ;;  %v2315_v14 = vpop.f32.mrf.mxu1 }
 0x1eb   : > { %2455 = vst.msk [vmem:[%s3536_s14 + $0x3f8] sm:$0xff] %vm2327_vm0, %v1812_v11  ;;  %2583 = vst.msk [vmem:[%s3536_s14 + $0x7f8] sm:$0xff] %vm2327_vm0, %v2324_v12  ;;  %v1804_v15 = vadd.f32 %v4018_v61, %v1803_v13  ;;  %v2316_v16 = vadd.f32 %v4018_v61, %v2315_v14 }
 0x1ed   : > { %2453 = vst.msk [vmem:[%s3536_s14 + $0x3e8] sm:$0xff] %vm2327_vm0, %v1804_v15  ;;  %2581 = vst.msk [vmem:[%s3536_s14 + $0x7e8] sm:$0xff] %vm2327_vm0, %v2316_v16 }
 0x1ee PF: > { %s13_s12 = sadd.s32 1, %s3363_s12  }
 0x1ef   : > { %p10_p4 = scmp.ge.s32.totalorder %s13_s12, 6  }
 0x1f1   :  { %12 = sbr.rel (!%p10_p4) target bundleno = 1 (0x1), region = 62 }

</bundles_post_ra>
